<compile_context>
chip_gen: v6e
topology: v6e:2x2x1
jax: 0.10.0
libtpu: 0.0.40
codegen_flags: <defaults>
</compile_context>

<pallas_src>
import functools

import jax
import jax.numpy as jnp
from jax import lax
from jax.experimental import pallas as pl
from jax.experimental.pallas import tpu as pltpu


def _round_up(v, m):
    return (v + m - 1) // m * m


# --------------------------------------------------------------------------
# Pallas kernel
# --------------------------------------------------------------------------
def _interaction_kernel(n_pad, e_tile, hidden, num_layers, num_graphs_p1, approx_recip,
                        # VMEM inputs (per-tile)
                        src_ref, dst_ref,
                        # VMEM inputs (resident)
                        x_ref, batch_col_ref, batch_row_ref,
                        # VMEM inputs (per-tile)
                        edge_ref,
                        # resident weights
                        lin_w, lin_b, wel1, bel1, wel2, bel2,
                        wattn1, battn1, wattn2, battn2,
                        wrel1, brel1, wroot1, wrel2, brel2, wroot2,
                        wlin1, blin1, wlin2, blin2,
                        wlincat1, wlincat2, blincat,
                        lins_w, lins_b, norm_w, norm_b, norm_ms,
                        final_w, final_b,
                        # output
                        out_ref,
                        # scratch
                        x1_ref, agg1_ref, agg2_ref):
    H = hidden
    f32 = jnp.float32
    t = pl.program_id(0)
    nt = pl.num_programs(0)

    def sigmoid(v):
        den = 1.0 + jnp.exp(-v)
        if approx_recip:                      # EUP slot (bf16 production path)
            return pl.reciprocal(den, approx=True)
        return 1.0 / den                      # exact (f32 correctness path)

    def swish(v):
        return v * sigmoid(v)

    def mm(a, w):
        # Weights are pre-cast to mm_dtype in the wrapper; accumulate in f32.
        return jnp.dot(a.astype(w.dtype), w, preferred_element_type=f32)

    def mmw(a, w_ref):
        return mm(a, w_ref[...])

    # ---- step 0: node pre-transform x1 = act(lin(x)); zero accumulators -----
    @pl.when(t == 0)
    def _init():
        x1_ref[...] = swish(mmw(x_ref[...], lin_w) + lin_b[...])
        agg1_ref[...] = jnp.zeros_like(agg1_ref)
        agg2_ref[...] = jnp.zeros_like(agg2_ref)

    # ---- fused edge MLP for both convs (K = 3H matmul, 2H output lanes) -----
    ef = edge_ref[...]                                     # (Et, 3H) = [bond|geom1|geom2]
    pre = mmw(ef, wel1) + bel1[...]                        # (Et, 2H)  edge_lin_1 (both convs)
    ew = mmw(swish(pre), wel2) + bel2[...]                 # (Et, 2H) = [ew1|ew2]

    # ---- gather x_j = x1[src] via one-hot MXU matmul (exact selection) ------
    oh_g = (lax.broadcasted_iota(jnp.int32, (e_tile, n_pad), 1)
            == src_ref[...]).astype(f32)                   # (Et, N)
    xj = jnp.dot(oh_g, x1_ref[...], preferred_element_type=f32)    # (Et, H)

    # ---- per-conv messages + edge attention (no concats / broadcast_to) -----
    m1 = ew[:, :H] * xj                                    # (Et, H)
    m2 = ew[:, H:] * xj                                    # (Et, H)
    a1 = sigmoid(mmw(m1, wattn1) + battn1[...])            # (Et, 1)
    a2 = sigmoid(mmw(m2, wattn2) + battn2[...])            # (Et, 1)
    m1 = m1 * a1
    m2 = m2 * a2

    # ---- scatter-add into the per-node accumulators via one-hot MXU ---------
    # Padded edges carry dst == -1 -> all-zero one-hot column -> dropped.
    oh_s = (lax.broadcasted_iota(jnp.int32, (n_pad, e_tile), 0)
            == dst_ref[...]).astype(f32)                   # (N, Et)
    agg1_ref[...] += jnp.dot(oh_s, m1, preferred_element_type=f32)
    agg2_ref[...] += jnp.dot(oh_s, m2, preferred_element_type=f32)

    # ---- last step: node epilogue --------------------------------------------
    @pl.when(t == nt - 1)
    def _finalize():
        x1 = x1_ref[...]                                   # (N, H) f32
        c1 = mmw(agg1_ref[...], wrel1) + brel1[...] + mmw(x1, wroot1)
        c2 = mmw(agg2_ref[...], wrel2) + brel2[...] + mmw(x1, wroot2)
        h1 = swish(mmw(c1, wlin1) + blin1[...])
        h2 = swish(mmw(c2, wlin2) + blin2[...])
        h = mmw(h1, wlincat1) + mmw(h2, wlincat2) + blincat[...] + x1

        # Residual MLP stack: self.lins alternates [Linear, Dropout]; the
        # module applies h = act(lin(h)) + h to both, Dropout is identity at
        # inference, so its slot collapses to h = act(h) + h.
        for l in range(num_layers):
            h = swish(mm(h, lins_w[l]) + lins_b[l]) + h
            h = swish(h) + h

        # GraphNorm(h, batch): one-hots built in both layouts (no transposes);
        # all stats matmuls in f32 for summation accuracy.
        G1 = num_graphs_p1
        onehot_gn = (lax.broadcasted_iota(jnp.int32, (G1, n_pad), 0)
                     == batch_row_ref[...]).astype(f32)    # (G, N)
        onehot_ng = (lax.broadcasted_iota(jnp.int32, (n_pad, G1), 1)
                     == batch_col_ref[...]).astype(f32)    # (N, G)
        counts = jnp.maximum(jnp.sum(onehot_gn, axis=1, keepdims=True), 1.0)
        inv_counts = 1.0 / counts                          # (G, 1)
        mean_g = jnp.dot(onehot_gn, h, preferred_element_type=f32) * inv_counts
        mean_n = jnp.dot(onehot_ng, mean_g, preferred_element_type=f32)
        centered = h - mean_n * norm_ms[...]
        var_g = jnp.dot(onehot_gn, centered * centered,
                        preferred_element_type=f32) * inv_counts
        var_n = jnp.dot(onehot_ng, var_g, preferred_element_type=f32)
        hn = norm_w[...] * centered / jnp.sqrt(var_n + 1e-5) + norm_b[...]

        # Final projection, lane-padded to a 128-multiple of output columns.
        out_ref[...] = mmw(hn, final_w) + final_b[...]


# --------------------------------------------------------------------------
# Parameter init (torch-style (out, in) weight shapes)
# --------------------------------------------------------------------------
def init_params(key, hidden, num_layers, out_channels):
    keys = iter(jax.random.split(key, 64))

    def glorot(shape):
        fan_out, fan_in = shape[0], shape[1]
        bound = (6.0 / (fan_in + fan_out)) ** 0.5
        return jax.random.uniform(next(keys), shape, jnp.float32, -bound, bound)

    def conv_params():
        return dict(
            rel_w=glorot((hidden, hidden)), rel_b=jnp.zeros((hidden,), jnp.float32),
            root_w=glorot((hidden, hidden)),
            el1_w=glorot((hidden, 2 * hidden)), el1_b=jnp.zeros((hidden,), jnp.float32),
            el2_w=glorot((hidden, hidden)), el2_b=jnp.zeros((hidden,), jnp.float32),
            attn_w=glorot((1, hidden)), attn_b=jnp.zeros((1,), jnp.float32),
        )

    return dict(
        lin_w=glorot((hidden, hidden)), lin_b=jnp.zeros((hidden,), jnp.float32),
        conv1=conv_params(), conv2=conv_params(),
        lin1_w=glorot((hidden, hidden)), lin1_b=jnp.zeros((hidden,), jnp.float32),
        lin2_w=glorot((hidden, hidden)), lin2_b=jnp.zeros((hidden,), jnp.float32),
        lincat_w=glorot((hidden, 2 * hidden)), lincat_b=jnp.zeros((hidden,), jnp.float32),
        lins_w=jnp.stack([glorot((hidden, hidden)) for _ in range(num_layers)]),
        lins_b=jnp.zeros((num_layers, hidden), jnp.float32),
        norm_w=jnp.ones((hidden,), jnp.float32),
        norm_b=jnp.zeros((hidden,), jnp.float32),
        norm_ms=jnp.ones((hidden,), jnp.float32),
        final_w=glorot((out_channels, hidden)), final_b=jnp.zeros((out_channels,), jnp.float32),
    )


# --------------------------------------------------------------------------
# Weight preparation: edge-path weights fused (K >= 2H in the hot loop),
# epilogue weights kept per-conv, matmul weights pre-cast to mm_dtype,
# biases kept in f32.
# --------------------------------------------------------------------------
def _fuse_params(p, num_layers, o_pad, mm_dtype):
    f32 = jnp.float32
    H = p['lin_w'].shape[0]

    def T(w):
        return jnp.asarray(w, f32).T

    def W(w):                       # matmul weight -> (in, out), mm_dtype
        return T(w).astype(mm_dtype)

    def row(b):
        return jnp.asarray(b, f32).reshape(1, -1)

    def Z(r, c):
        return jnp.zeros((r, c), f32)

    def bdiag(a, b):
        return jnp.concatenate(
            [jnp.concatenate([a, Z(a.shape[0], b.shape[1])], axis=1),
             jnp.concatenate([Z(b.shape[0], a.shape[1]), b], axis=1)], axis=0)

    c1, c2 = p['conv1'], p['conv2']
    el1_1, el1_2 = T(c1['el1_w']), T(c2['el1_w'])            # (2H, H) each
    # edge_lin_1 for both convs as one (3H, 2H) weight acting on [bond|geom1|geom2]
    wel1 = jnp.concatenate(
        [jnp.concatenate([el1_1[:H], el1_2[:H]], axis=1),     # bond rows
         jnp.concatenate([el1_1[H:], Z(H, H)], axis=1),       # geom1 rows (conv1 only)
         jnp.concatenate([Z(H, H), el1_2[H:]], axis=1)],      # geom2 rows (conv2 only)
        axis=0).astype(mm_dtype)
    bel1 = jnp.concatenate([row(c1['el1_b']), row(c2['el1_b'])], axis=1)
    wel2 = bdiag(T(c1['el2_w']), T(c2['el2_w'])).astype(mm_dtype)   # (2H, 2H)
    bel2 = jnp.concatenate([row(c1['el2_b']), row(c2['el2_b'])], axis=1)

    lincat = T(p['lincat_w'])                                 # (2H, H)
    lins_w = jnp.transpose(jnp.asarray(p['lins_w'], f32), (0, 2, 1)).astype(mm_dtype)
    lins_b = jnp.asarray(p['lins_b'], f32).reshape(num_layers, 1, H)

    O = p['final_w'].shape[0]
    final_w = Z(H, o_pad).at[:, :O].set(T(p['final_w'])).astype(mm_dtype)
    final_b = Z(1, o_pad).at[:, :O].set(row(p['final_b']))

    return [W(p['lin_w']), row(p['lin_b']),
            wel1, bel1, wel2, bel2,
            W(c1['attn_w']), row(c1['attn_b']), W(c2['attn_w']), row(c2['attn_b']),
            W(c1['rel_w']), row(c1['rel_b']), W(c1['root_w']),
            W(c2['rel_w']), row(c2['rel_b']), W(c2['root_w']),
            W(p['lin1_w']), row(p['lin1_b']), W(p['lin2_w']), row(p['lin2_b']),
            lincat[:H].astype(mm_dtype), lincat[H:].astype(mm_dtype), row(p['lincat_b']),
            lins_w, lins_b,
            row(p['norm_w']), row(p['norm_b']), row(p['norm_ms']),
            final_w, final_b]


# --------------------------------------------------------------------------
# Wrapper
# --------------------------------------------------------------------------
def simple_interaction_block(x, edge_index, edge_attr, edge_geom_attr1,
                             edge_geom_attr2, batch, params,
                             num_graphs, num_layers,
                             edge_tile=512, mm_dtype=jnp.float32):
    N, H = x.shape
    E = edge_index.shape[1]
    O = params['final_w'].shape[0]

    n_pad = _round_up(N, 8)
    edge_tile = max(128, _round_up(int(edge_tile), 128))
    e_tile = int(min(edge_tile, _round_up(max(E, 1), 128)))
    e_pad = _round_up(max(E, 1), e_tile)
    o_pad = _round_up(O, 128)
    g1 = num_graphs + 1        # extra dummy-graph column soaks up padded nodes

    f32 = jnp.float32
    approx_recip = jnp.dtype(mm_dtype) != jnp.dtype(jnp.float32)

    x_p = jnp.zeros((n_pad, H), f32).at[:N].set(x.astype(f32))
    batch_p = jnp.full((n_pad,), num_graphs, jnp.int32).at[:N].set(batch.astype(jnp.int32))
    batch_col = batch_p.reshape(n_pad, 1)
    batch_row = batch_p.reshape(1, n_pad)

    src = edge_index[0].astype(jnp.int32)
    dst = edge_index[1].astype(jnp.int32)
    # Padded edges gather row 0 (harmless) and are dropped by the scatter
    # one-hot (dst == -1 never matches a node id).
    src_col = jnp.zeros((e_pad, 1), jnp.int32).at[:E, 0].set(src)
    dst_row = jnp.full((1, e_pad), -1, jnp.int32).at[0, :E].set(dst)

    edge_feat = jnp.zeros((e_pad, 3 * H), f32)
    edge_feat = edge_feat.at[:E, :H].set(edge_attr.astype(f32))
    edge_feat = edge_feat.at[:E, H:2 * H].set(edge_geom_attr1.astype(f32))
    edge_feat = edge_feat.at[:E, 2 * H:].set(edge_geom_attr2.astype(f32))
    edge_feat = edge_feat.astype(mm_dtype)     # stream the edge features in matmul dtype

    weights = _fuse_params(params, num_layers, o_pad, mm_dtype)

    def full_spec(a):
        nd = a.ndim
        return pl.BlockSpec(a.shape, lambda *_, _nd=nd: (0,) * _nd)

    in_specs = [pl.BlockSpec((e_tile, 1), lambda t: (t, 0)),        # src (Et, 1)
                pl.BlockSpec((1, e_tile), lambda t: (0, t)),        # dst (1, Et)
                full_spec(x_p), full_spec(batch_col), full_spec(batch_row),
                pl.BlockSpec((e_tile, 3 * H), lambda t: (t, 0))]    # edge features
    in_specs += [full_spec(w) for w in weights]
    out_spec = pl.BlockSpec((n_pad, o_pad), lambda t: (0, 0))

    scratch = [pltpu.VMEM((n_pad, H), f32),     # x1 = act(lin(x))
               pltpu.VMEM((n_pad, H), f32),     # conv1 accumulator
               pltpu.VMEM((n_pad, H), f32)]     # conv2 accumulator

    # Explicit VMEM budget: resident weights/node arrays + double-buffered edge
    # tiles + resident output + scratch (with margin); capped below the physical
    # per-TensorCore VMEM of the current chip (64 MiB on v7x, 128 MiB v5e/v6e).
    def nbytes(a):
        return int(a.size) * a.dtype.itemsize
    vmem_est = sum(nbytes(w) for w in weights)
    vmem_est += nbytes(x_p) + nbytes(batch_col) + nbytes(batch_row)
    vmem_est += 2 * (e_tile * 3 * H * edge_feat.dtype.itemsize + 2 * e_tile * 4)
    vmem_est += 2 * n_pad * o_pad * 4
    vmem_est += 3 * n_pad * H * 4
    try:
        vmem_cap = int(pltpu.get_tpu_info().vmem_capacity_bytes)
    except Exception:
        vmem_cap = 64 * 2**20
    vmem_limit = int(min(vmem_cap - 8 * 2**20, max(32 * 2**20, 4 * vmem_est)))

    kernel = functools.partial(_interaction_kernel, n_pad, e_tile, H,
                               num_layers, g1, approx_recip)

    grid_spec = pltpu.PrefetchScalarGridSpec(
        num_scalar_prefetch=0,
        grid=(e_pad // e_tile,),
        in_specs=in_specs,
        out_specs=out_spec,
        scratch_shapes=scratch)

    out = pl.pallas_call(
        kernel,
        out_shape=jax.ShapeDtypeStruct((n_pad, o_pad), f32),
        grid_spec=grid_spec,
        compiler_params=pltpu.CompilerParams(
            dimension_semantics=("arbitrary",),   # sequential message accumulation
            vmem_limit_bytes=vmem_limit),
    )(src_col, dst_row, x_p, batch_col, batch_row, edge_feat, *weights)

    return out[:N, :O]


# --------------------------------------------------------------------------
# Pure-JAX reference (for validation)
# --------------------------------------------------------------------------
def reference_forward(x, edge_index, edge_attr, geom1, geom2, batch, params,
                      num_graphs, num_layers):
    def swish(v):
        return v * (1.0 / (1.0 + jnp.exp(-v)))

    def lin(v, w, b=None):
        y = v @ w.T
        return y + b if b is not None else y

    src, dst = edge_index[0], edge_index[1]
    x = swish(lin(x, params['lin_w'], params['lin_b']))

    def conv(cp, geom):
        ew = jnp.concatenate([edge_attr, geom], axis=1)
        ew = lin(ew, cp['el1_w'], cp['el1_b'])
        ew = lin(swish(ew), cp['el2_w'], cp['el2_b'])
        m = ew * x[src]
        attn = 1.0 / (1.0 + jnp.exp(-lin(m, cp['attn_w'], cp['attn_b'])))
        m = m * attn
        agg = jax.ops.segment_sum(m, dst, num_segments=x.shape[0])
        return lin(agg, cp['rel_w'], cp['rel_b']) + lin(x, cp['root_w'])

    h1 = swish(lin(conv(params['conv1'], geom1), params['lin1_w'], params['lin1_b']))
    h2 = swish(lin(conv(params['conv2'], geom2), params['lin2_w'], params['lin2_b']))
    h = lin(jnp.concatenate([h1, h2], axis=1), params['lincat_w'], params['lincat_b']) + x
    for l in range(num_layers):
        h = swish(lin(h, params['lins_w'][l], params['lins_b'][l])) + h
        h = swish(h) + h
    counts = jnp.maximum(
        jax.ops.segment_sum(jnp.ones((h.shape[0],)), batch, num_segments=num_graphs), 1.0)[:, None]
    mean = jax.ops.segment_sum(h, batch, num_segments=num_graphs) / counts
    out = h - mean[batch] * params['norm_ms']
    var = jax.ops.segment_sum(out * out, batch, num_segments=num_graphs) / counts
    std = jnp.sqrt(var + 1e-5)[batch]
    h = params['norm_w'] * out / std + params['norm_b']
    return lin(h, params['final_w'], params['final_b'])


# --------------------------------------------------------------------------
if __name__ == "__main__":
    N, H, E = 8, 32, 16            # nodes, hidden_channels, edges
    NUM_LAYERS, OUT = 2, 16        # num_layers, output_channels
    NUM_GRAPHS = 2

    key = jax.random.PRNGKey(0)
    k_x, k_ei, k_ea, k_g1, k_g2, k_p = jax.random.split(key, 6)

    x = jax.random.normal(k_x, (N, H), jnp.float32)
    edge_index = jax.random.randint(k_ei, (2, E), 0, N, jnp.int32)
    edge_attr = jax.random.normal(k_ea, (E, H), jnp.float32)
    edge_geom_attr1 = jax.random.normal(k_g1, (E, H), jnp.float32)
    edge_geom_attr2 = jax.random.normal(k_g2, (E, H), jnp.float32)
    batch = jnp.concatenate([jnp.zeros((N // 2,), jnp.int32),
                             jnp.ones((N - N // 2,), jnp.int32)])

    params = init_params(k_p, H, NUM_LAYERS, OUT)

    out = simple_interaction_block(x, edge_index, edge_attr, edge_geom_attr1,
                                   edge_geom_attr2, batch, params,
                                   NUM_GRAPHS, NUM_LAYERS)
    out = jax.block_until_ready(out)

    ref = reference_forward(x, edge_index, edge_attr, edge_geom_attr1,
                            edge_geom_attr2, batch, params,
                            NUM_GRAPHS, NUM_LAYERS)
    assert out.shape == (N, OUT)
    assert jnp.allclose(out, ref, atol=2e-3, rtol=2e-3), \
        f"max abs diff {float(jnp.max(jnp.abs(out - ref)))}"

    print("KERNEL_OK")
</pallas_src>

<mosaic_0001>
module attributes {stable_mosaic.version = 11 : i64} {
  func.func @_interaction_kernel(%arg0: i32, %arg1: memref<128x1xi32, #tpu.memory_space<vmem>>, %arg2: memref<1x128xi32, #tpu.memory_space<vmem>>, %arg3: memref<8x32xf32, #tpu.memory_space<vmem>>, %arg4: memref<8x1xi32, #tpu.memory_space<vmem>>, %arg5: memref<1x8xi32, #tpu.memory_space<vmem>>, %arg6: memref<128x96xf32, #tpu.memory_space<vmem>>, %arg7: memref<32x32xf32, #tpu.memory_space<vmem>>, %arg8: memref<1x32xf32, #tpu.memory_space<vmem>>, %arg9: memref<96x64xf32, #tpu.memory_space<vmem>>, %arg10: memref<1x64xf32, #tpu.memory_space<vmem>>, %arg11: memref<64x64xf32, #tpu.memory_space<vmem>>, %arg12: memref<1x64xf32, #tpu.memory_space<vmem>>, %arg13: memref<32x1xf32, #tpu.memory_space<vmem>>, %arg14: memref<1x1xf32, #tpu.memory_space<vmem>>, %arg15: memref<32x1xf32, #tpu.memory_space<vmem>>, %arg16: memref<1x1xf32, #tpu.memory_space<vmem>>, %arg17: memref<32x32xf32, #tpu.memory_space<vmem>>, %arg18: memref<1x32xf32, #tpu.memory_space<vmem>>, %arg19: memref<32x32xf32, #tpu.memory_space<vmem>>, %arg20: memref<32x32xf32, #tpu.memory_space<vmem>>, %arg21: memref<1x32xf32, #tpu.memory_space<vmem>>, %arg22: memref<32x32xf32, #tpu.memory_space<vmem>>, %arg23: memref<32x32xf32, #tpu.memory_space<vmem>>, %arg24: memref<1x32xf32, #tpu.memory_space<vmem>>, %arg25: memref<32x32xf32, #tpu.memory_space<vmem>>, %arg26: memref<1x32xf32, #tpu.memory_space<vmem>>, %arg27: memref<32x32xf32, #tpu.memory_space<vmem>>, %arg28: memref<32x32xf32, #tpu.memory_space<vmem>>, %arg29: memref<1x32xf32, #tpu.memory_space<vmem>>, %arg30: memref<2x32x32xf32, #tpu.memory_space<vmem>>, %arg31: memref<2x1x32xf32, #tpu.memory_space<vmem>>, %arg32: memref<1x32xf32, #tpu.memory_space<vmem>>, %arg33: memref<1x32xf32, #tpu.memory_space<vmem>>, %arg34: memref<1x32xf32, #tpu.memory_space<vmem>>, %arg35: memref<32x128xf32, #tpu.memory_space<vmem>>, %arg36: memref<1x128xf32, #tpu.memory_space<vmem>>, %arg37: memref<8x128xf32, #tpu.memory_space<vmem>>, %arg38: memref<8x32xf32, #tpu.memory_space<vmem>>, %arg39: memref<8x32xf32, #tpu.memory_space<vmem>>, %arg40: memref<8x32xf32, #tpu.memory_space<vmem>>) attributes {dimension_semantics = [#tpu.dimension_semantics<arbitrary>], iteration_bounds = array<i64: 1>, scalar_prefetch = 0 : i64, scratch_operands = 3 : i64, tpu.core_type = #tpu.core_type<tc>, window_params = [{transform_indices = @transform_0, window_bounds = array<i64: 128, 1>}, {transform_indices = @transform_1, window_bounds = array<i64: 1, 128>}, {pipeline_mode = #tpu.pipeline_mode<synchronous>, transform_indices = @transform_2, window_bounds = array<i64: 8, 32>}, {pipeline_mode = #tpu.pipeline_mode<synchronous>, transform_indices = @transform_3, window_bounds = array<i64: 8, 1>}, {pipeline_mode = #tpu.pipeline_mode<synchronous>, transform_indices = @transform_4, window_bounds = array<i64: 1, 8>}, {transform_indices = @transform_5, window_bounds = array<i64: 128, 96>}, {pipeline_mode = #tpu.pipeline_mode<synchronous>, transform_indices = @transform_6, window_bounds = array<i64: 32, 32>}, {pipeline_mode = #tpu.pipeline_mode<synchronous>, transform_indices = @transform_7, window_bounds = array<i64: 1, 32>}, {pipeline_mode = #tpu.pipeline_mode<synchronous>, transform_indices = @transform_8, window_bounds = array<i64: 96, 64>}, {pipeline_mode = #tpu.pipeline_mode<synchronous>, transform_indices = @transform_9, window_bounds = array<i64: 1, 64>}, {pipeline_mode = #tpu.pipeline_mode<synchronous>, transform_indices = @transform_10, window_bounds = array<i64: 64, 64>}, {pipeline_mode = #tpu.pipeline_mode<synchronous>, transform_indices = @transform_11, window_bounds = array<i64: 1, 64>}, {pipeline_mode = #tpu.pipeline_mode<synchronous>, transform_indices = @transform_12, window_bounds = array<i64: 32, 1>}, {pipeline_mode = #tpu.pipeline_mode<synchronous>, transform_indices = @transform_13, window_bounds = array<i64: 1, 1>}, {pipeline_mode = #tpu.pipeline_mode<synchronous>, transform_indices = @transform_14, window_bounds = array<i64: 32, 1>}, {pipeline_mode = #tpu.pipeline_mode<synchronous>, transform_indices = @transform_15, window_bounds = array<i64: 1, 1>}, {pipeline_mode = #tpu.pipeline_mode<synchronous>, transform_indices = @transform_16, window_bounds = array<i64: 32, 32>}, {pipeline_mode = #tpu.pipeline_mode<synchronous>, transform_indices = @transform_17, window_bounds = array<i64: 1, 32>}, {pipeline_mode = #tpu.pipeline_mode<synchronous>, transform_indices = @transform_18, window_bounds = array<i64: 32, 32>}, {pipeline_mode = #tpu.pipeline_mode<synchronous>, transform_indices = @transform_19, window_bounds = array<i64: 32, 32>}, {pipeline_mode = #tpu.pipeline_mode<synchronous>, transform_indices = @transform_20, window_bounds = array<i64: 1, 32>}, {pipeline_mode = #tpu.pipeline_mode<synchronous>, transform_indices = @transform_21, window_bounds = array<i64: 32, 32>}, {pipeline_mode = #tpu.pipeline_mode<synchronous>, transform_indices = @transform_22, window_bounds = array<i64: 32, 32>}, {pipeline_mode = #tpu.pipeline_mode<synchronous>, transform_indices = @transform_23, window_bounds = array<i64: 1, 32>}, {pipeline_mode = #tpu.pipeline_mode<synchronous>, transform_indices = @transform_24, window_bounds = array<i64: 32, 32>}, {pipeline_mode = #tpu.pipeline_mode<synchronous>, transform_indices = @transform_25, window_bounds = array<i64: 1, 32>}, {pipeline_mode = #tpu.pipeline_mode<synchronous>, transform_indices = @transform_26, window_bounds = array<i64: 32, 32>}, {pipeline_mode = #tpu.pipeline_mode<synchronous>, transform_indices = @transform_27, window_bounds = array<i64: 32, 32>}, {pipeline_mode = #tpu.pipeline_mode<synchronous>, transform_indices = @transform_28, window_bounds = array<i64: 1, 32>}, {pipeline_mode = #tpu.pipeline_mode<synchronous>, transform_indices = @transform_29, window_bounds = array<i64: 2, 32, 32>}, {pipeline_mode = #tpu.pipeline_mode<synchronous>, transform_indices = @transform_30, window_bounds = array<i64: 2, 1, 32>}, {pipeline_mode = #tpu.pipeline_mode<synchronous>, transform_indices = @transform_31, window_bounds = array<i64: 1, 32>}, {pipeline_mode = #tpu.pipeline_mode<synchronous>, transform_indices = @transform_32, window_bounds = array<i64: 1, 32>}, {pipeline_mode = #tpu.pipeline_mode<synchronous>, transform_indices = @transform_33, window_bounds = array<i64: 1, 32>}, {pipeline_mode = #tpu.pipeline_mode<synchronous>, transform_indices = @transform_34, window_bounds = array<i64: 32, 128>}, {pipeline_mode = #tpu.pipeline_mode<synchronous>, transform_indices = @transform_35, window_bounds = array<i64: 1, 128>}, {pipeline_mode = #tpu.pipeline_mode<synchronous>, transform_indices = @transform_36, window_bounds = array<i64: 8, 128>}]} {
    %c0_i32 = arith.constant 0 : i32
    %0 = arith.cmpi eq, %arg0, %c0_i32 : i32
    %1 = arith.extui %0 : i1 to i32
    %c0_i32_0 = arith.constant 0 : i32
    %2 = arith.cmpi ne, %1, %c0_i32_0 : i32
    scf.if %2 {
      %c0_49 = arith.constant 0 : index
      %c0_50 = arith.constant 0 : index
      %79 = vector.load %arg3[%c0_49, %c0_50] : memref<8x32xf32, #tpu.memory_space<vmem>>, vector<8x32xf32>
      %c0_51 = arith.constant 0 : index
      %c0_52 = arith.constant 0 : index
      %80 = vector.load %arg7[%c0_51, %c0_52] : memref<32x32xf32, #tpu.memory_space<vmem>>, vector<32x32xf32>
      %cst_53 = arith.constant dense<0.000000e+00> : vector<8x32xf32>
      %81 = tpu.matmul %79, %80, %cst_53 {dimension_numbers = #tpu.dot_dimension_numbers<[1], [0], [0], [1], [0, 0, 1, 1], [], []>} : vector<8x32xf32>, vector<32x32xf32>, vector<8x32xf32> -> vector<8x32xf32>
      %c0_54 = arith.constant 0 : index
      %c0_55 = arith.constant 0 : index
      %82 = vector.load %arg8[%c0_54, %c0_55] : memref<1x32xf32, #tpu.memory_space<vmem>>, vector<1x32xf32>
      %83 = vector.broadcast %82 : vector<1x32xf32> to vector<8x32xf32>
      %84 = arith.addf %81, %83 : vector<8x32xf32>
      %cst_56 = arith.constant 0.000000e+00 : f32
      %85 = vector.broadcast %cst_56 : f32 to vector<8x32xf32>
      %86 = arith.subf %85, %84 : vector<8x32xf32>
      %87 = math.exp %86 : vector<8x32xf32>
      %cst_57 = arith.constant 1.000000e+00 : f32
      %88 = vector.broadcast %cst_57 : f32 to vector<8x32xf32>
      %89 = arith.addf %88, %87 : vector<8x32xf32>
      %cst_58 = arith.constant 1.000000e+00 : f32
      %90 = vector.broadcast %cst_58 : f32 to vector<8x32xf32>
      %91 = arith.divf %90, %89 : vector<8x32xf32>
      %92 = arith.mulf %84, %91 : vector<8x32xf32>
      %c0_59 = arith.constant 0 : index
      %c0_60 = arith.constant 0 : index
      %93 = vector.load %arg38[%c0_59, %c0_60] : memref<8x32xf32, #tpu.memory_space<vmem>>, vector<8x32xf32>
      tpu.vector_store %arg38[%c0_59, %c0_60], %92 {strides = array<i32>} : memref<8x32xf32, #tpu.memory_space<vmem>>, vector<8x32xf32>,
      %cst_61 = arith.constant 0.000000e+00 : f32
      %94 = vector.broadcast %cst_61 : f32 to vector<8x32xf32>
      %c0_62 = arith.constant 0 : index
      %c0_63 = arith.constant 0 : index
      %95 = vector.load %arg39[%c0_62, %c0_63] : memref<8x32xf32, #tpu.memory_space<vmem>>, vector<8x32xf32>
      tpu.vector_store %arg39[%c0_62, %c0_63], %94 {strides = array<i32>} : memref<8x32xf32, #tpu.memory_space<vmem>>, vector<8x32xf32>,
      %cst_64 = arith.constant 0.000000e+00 : f32
      %96 = vector.broadcast %cst_64 : f32 to vector<8x32xf32>
      %c0_65 = arith.constant 0 : index
      %c0_66 = arith.constant 0 : index
      %97 = vector.load %arg40[%c0_65, %c0_66] : memref<8x32xf32, #tpu.memory_space<vmem>>, vector<8x32xf32>
      tpu.vector_store %arg40[%c0_65, %c0_66], %96 {strides = array<i32>} : memref<8x32xf32, #tpu.memory_space<vmem>>, vector<8x32xf32>,
    } else {
    }
    %c0 = arith.constant 0 : index
    %c0_1 = arith.constant 0 : index
    %3 = vector.load %arg6[%c0, %c0_1] : memref<128x96xf32, #tpu.memory_space<vmem>>, vector<128x96xf32>
    %c0_2 = arith.constant 0 : index
    %c0_3 = arith.constant 0 : index
    %4 = vector.load %arg9[%c0_2, %c0_3] : memref<96x64xf32, #tpu.memory_space<vmem>>, vector<96x64xf32>
    %cst = arith.constant dense<0.000000e+00> : vector<128x64xf32>
    %5 = tpu.matmul %3, %4, %cst {dimension_numbers = #tpu.dot_dimension_numbers<[1], [0], [0], [1], [0, 0, 1, 1], [], []>} : vector<128x96xf32>, vector<96x64xf32>, vector<128x64xf32> -> vector<128x64xf32>
    %c0_4 = arith.constant 0 : index
    %c0_5 = arith.constant 0 : index
    %6 = vector.load %arg10[%c0_4, %c0_5] : memref<1x64xf32, #tpu.memory_space<vmem>>, vector<1x64xf32>
    %7 = vector.broadcast %6 : vector<1x64xf32> to vector<128x64xf32>
    %8 = arith.addf %5, %7 : vector<128x64xf32>
    %cst_6 = arith.constant 0.000000e+00 : f32
    %9 = vector.broadcast %cst_6 : f32 to vector<128x64xf32>
    %10 = arith.subf %9, %8 : vector<128x64xf32>
    %11 = math.exp %10 : vector<128x64xf32>
    %cst_7 = arith.constant 1.000000e+00 : f32
    %12 = vector.broadcast %cst_7 : f32 to vector<128x64xf32>
    %13 = arith.addf %12, %11 : vector<128x64xf32>
    %cst_8 = arith.constant 1.000000e+00 : f32
    %14 = vector.broadcast %cst_8 : f32 to vector<128x64xf32>
    %15 = arith.divf %14, %13 : vector<128x64xf32>
    %16 = arith.mulf %8, %15 : vector<128x64xf32>
    %c0_9 = arith.constant 0 : index
    %c0_10 = arith.constant 0 : index
    %17 = vector.load %arg11[%c0_9, %c0_10] : memref<64x64xf32, #tpu.memory_space<vmem>>, vector<64x64xf32>
    %cst_11 = arith.constant dense<0.000000e+00> : vector<128x64xf32>
    %18 = tpu.matmul %16, %17, %cst_11 {dimension_numbers = #tpu.dot_dimension_numbers<[1], [0], [0], [1], [0, 0, 1, 1], [], []>} : vector<128x64xf32>, vector<64x64xf32>, vector<128x64xf32> -> vector<128x64xf32>
    %c0_12 = arith.constant 0 : index
    %c0_13 = arith.constant 0 : index
    %19 = vector.load %arg12[%c0_12, %c0_13] : memref<1x64xf32, #tpu.memory_space<vmem>>, vector<1x64xf32>
    %20 = vector.broadcast %19 : vector<1x64xf32> to vector<128x64xf32>
    %21 = arith.addf %18, %20 : vector<128x64xf32>
    %22 = tpu.iota {dimensions = array<i32: 1>} : vector<128x8xi32>
    %c0_14 = arith.constant 0 : index
    %c0_15 = arith.constant 0 : index
    %23 = vector.load %arg1[%c0_14, %c0_15] : memref<128x1xi32, #tpu.memory_space<vmem>>, vector<128x1xi32>
    %24 = vector.broadcast %23 : vector<128x1xi32> to vector<128x8xi32>
    %25 = arith.cmpi eq, %22, %24 : vector<128x8xi32>
    %26 = arith.extui %25 : vector<128x8xi1> to vector<128x8xi32>
    %27 = arith.sitofp %26 : vector<128x8xi32> to vector<128x8xf32>
    %c0_16 = arith.constant 0 : index
    %c0_17 = arith.constant 0 : index
    %28 = vector.load %arg38[%c0_16, %c0_17] : memref<8x32xf32, #tpu.memory_space<vmem>>, vector<8x32xf32>
    %cst_18 = arith.constant dense<0.000000e+00> : vector<128x32xf32>
    %29 = tpu.matmul %27, %28, %cst_18 {dimension_numbers = #tpu.dot_dimension_numbers<[1], [0], [0], [1], [0, 0, 1, 1], [], []>} : vector<128x8xf32>, vector<8x32xf32>, vector<128x32xf32> -> vector<128x32xf32>
    %30 = vector.extract_strided_slice %21 {offsets = [0, 0], sizes = [128, 32], strides = [1, 1]} : vector<128x64xf32> to vector<128x32xf32>
    %31 = arith.mulf %30, %29 : vector<128x32xf32>
    %32 = vector.extract_strided_slice %21 {offsets = [0, 32], sizes = [128, 32], strides = [1, 1]} : vector<128x64xf32> to vector<128x32xf32>
    %33 = arith.mulf %32, %29 : vector<128x32xf32>
    %c0_19 = arith.constant 0 : index
    %c0_20 = arith.constant 0 : index
    %34 = vector.load %arg13[%c0_19, %c0_20] : memref<32x1xf32, #tpu.memory_space<vmem>>, vector<32x1xf32>
    %cst_21 = arith.constant dense<0.000000e+00> : vector<128x1xf32>
    %35 = tpu.matmul %31, %34, %cst_21 {dimension_numbers = #tpu.dot_dimension_numbers<[1], [0], [0], [1], [0, 0, 1, 1], [], []>} : vector<128x32xf32>, vector<32x1xf32>, vector<128x1xf32> -> vector<128x1xf32>
    %c0_22 = arith.constant 0 : index
    %c0_23 = arith.constant 0 : index
    %36 = vector.load %arg14[%c0_22, %c0_23] : memref<1x1xf32, #tpu.memory_space<vmem>>, vector<1x1xf32>
    %37 = vector.broadcast %36 : vector<1x1xf32> to vector<128x1xf32>
    %38 = arith.addf %35, %37 : vector<128x1xf32>
    %cst_24 = arith.constant 0.000000e+00 : f32
    %39 = vector.broadcast %cst_24 : f32 to vector<128x1xf32>
    %40 = arith.subf %39, %38 : vector<128x1xf32>
    %41 = math.exp %40 : vector<128x1xf32>
    %cst_25 = arith.constant 1.000000e+00 : f32
    %42 = vector.broadcast %cst_25 : f32 to vector<128x1xf32>
    %43 = arith.addf %42, %41 : vector<128x1xf32>
    %cst_26 = arith.constant 1.000000e+00 : f32
    %44 = vector.broadcast %cst_26 : f32 to vector<128x1xf32>
    %45 = arith.divf %44, %43 : vector<128x1xf32>
    %c0_27 = arith.constant 0 : index
    %c0_28 = arith.constant 0 : index
    %46 = vector.load %arg15[%c0_27, %c0_28] : memref<32x1xf32, #tpu.memory_space<vmem>>, vector<32x1xf32>
    %cst_29 = arith.constant dense<0.000000e+00> : vector<128x1xf32>
    %47 = tpu.matmul %33, %46, %cst_29 {dimension_numbers = #tpu.dot_dimension_numbers<[1], [0], [0], [1], [0, 0, 1, 1], [], []>} : vector<128x32xf32>, vector<32x1xf32>, vector<128x1xf32> -> vector<128x1xf32>
    %c0_30 = arith.constant 0 : index
    %c0_31 = arith.constant 0 : index
    %48 = vector.load %arg16[%c0_30, %c0_31] : memref<1x1xf32, #tpu.memory_space<vmem>>, vector<1x1xf32>
    %49 = vector.broadcast %48 : vector<1x1xf32> to vector<128x1xf32>
    %50 = arith.addf %47, %49 : vector<128x1xf32>
    %cst_32 = arith.constant 0.000000e+00 : f32
    %51 = vector.broadcast %cst_32 : f32 to vector<128x1xf32>
    %52 = arith.subf %51, %50 : vector<128x1xf32>
    %53 = math.exp %52 : vector<128x1xf32>
    %cst_33 = arith.constant 1.000000e+00 : f32
    %54 = vector.broadcast %cst_33 : f32 to vector<128x1xf32>
    %55 = arith.addf %54, %53 : vector<128x1xf32>
    %cst_34 = arith.constant 1.000000e+00 : f32
    %56 = vector.broadcast %cst_34 : f32 to vector<128x1xf32>
    %57 = arith.divf %56, %55 : vector<128x1xf32>
    %58 = vector.broadcast %45 : vector<128x1xf32> to vector<128x32xf32>
    %59 = arith.mulf %31, %58 : vector<128x32xf32>
    %60 = vector.broadcast %57 : vector<128x1xf32> to vector<128x32xf32>
    %61 = arith.mulf %33, %60 : vector<128x32xf32>
    %62 = tpu.iota {dimensions = array<i32: 0>} : vector<8x128xi32>
    %c0_35 = arith.constant 0 : index
    %c0_36 = arith.constant 0 : index
    %63 = vector.load %arg2[%c0_35, %c0_36] : memref<1x128xi32, #tpu.memory_space<vmem>>, vector<1x128xi32>
    %64 = vector.broadcast %63 : vector<1x128xi32> to vector<8x128xi32>
    %65 = arith.cmpi eq, %62, %64 : vector<8x128xi32>
    %66 = arith.extui %65 : vector<8x128xi1> to vector<8x128xi32>
    %67 = arith.sitofp %66 : vector<8x128xi32> to vector<8x128xf32>
    %c0_37 = arith.constant 0 : index
    %c0_38 = arith.constant 0 : index
    %68 = vector.load %arg39[%c0_37, %c0_38] : memref<8x32xf32, #tpu.memory_space<vmem>>, vector<8x32xf32>
    %cst_39 = arith.constant dense<0.000000e+00> : vector<8x32xf32>
    %69 = tpu.matmul %67, %59, %cst_39 {dimension_numbers = #tpu.dot_dimension_numbers<[1], [0], [0], [1], [0, 0, 1, 1], [], []>} : vector<8x128xf32>, vector<128x32xf32>, vector<8x32xf32> -> vector<8x32xf32>
    %70 = arith.addf %68, %69 : vector<8x32xf32>
    %c0_40 = arith.constant 0 : index
    %c0_41 = arith.constant 0 : index
    %71 = vector.load %arg39[%c0_40, %c0_41] : memref<8x32xf32, #tpu.memory_space<vmem>>, vector<8x32xf32>
    tpu.vector_store %arg39[%c0_40, %c0_41], %70 {strides = array<i32>} : memref<8x32xf32, #tpu.memory_space<vmem>>, vector<8x32xf32>,
    %c0_42 = arith.constant 0 : index
    %c0_43 = arith.constant 0 : index
    %72 = vector.load %arg40[%c0_42, %c0_43] : memref<8x32xf32, #tpu.memory_space<vmem>>, vector<8x32xf32>
    %cst_44 = arith.constant dense<0.000000e+00> : vector<8x32xf32>
    %73 = tpu.matmul %67, %61, %cst_44 {dimension_numbers = #tpu.dot_dimension_numbers<[1], [0], [0], [1], [0, 0, 1, 1], [], []>} : vector<8x128xf32>, vector<128x32xf32>, vector<8x32xf32> -> vector<8x32xf32>
    %74 = arith.addf %72, %73 : vector<8x32xf32>
    %c0_45 = arith.constant 0 : index
    %c0_46 = arith.constant 0 : index
    %75 = vector.load %arg40[%c0_45, %c0_46] : memref<8x32xf32, #tpu.memory_space<vmem>>, vector<8x32xf32>
    tpu.vector_store %arg40[%c0_45, %c0_46], %74 {strides = array<i32>} : memref<8x32xf32, #tpu.memory_space<vmem>>, vector<8x32xf32>,
    %c0_i32_47 = arith.constant 0 : i32
    %76 = arith.cmpi eq, %arg0, %c0_i32_47 : i32
    %77 = arith.extui %76 : i1 to i32
    %c0_i32_48 = arith.constant 0 : i32
    %78 = arith.cmpi ne, %77, %c0_i32_48 : i32
    scf.if %78 {
      %c0_49 = arith.constant 0 : index
      %c0_50 = arith.constant 0 : index
      %79 = vector.load %arg38[%c0_49, %c0_50] : memref<8x32xf32, #tpu.memory_space<vmem>>, vector<8x32xf32>
      %c0_51 = arith.constant 0 : index
      %c0_52 = arith.constant 0 : index
      %80 = vector.load %arg39[%c0_51, %c0_52] : memref<8x32xf32, #tpu.memory_space<vmem>>, vector<8x32xf32>
      %c0_53 = arith.constant 0 : index
      %c0_54 = arith.constant 0 : index
      %81 = vector.load %arg17[%c0_53, %c0_54] : memref<32x32xf32, #tpu.memory_space<vmem>>, vector<32x32xf32>
      %cst_55 = arith.constant dense<0.000000e+00> : vector<8x32xf32>
      %82 = tpu.matmul %80, %81, %cst_55 {dimension_numbers = #tpu.dot_dimension_numbers<[1], [0], [0], [1], [0, 0, 1, 1], [], []>} : vector<8x32xf32>, vector<32x32xf32>, vector<8x32xf32> -> vector<8x32xf32>
      %c0_56 = arith.constant 0 : index
      %c0_57 = arith.constant 0 : index
      %83 = vector.load %arg18[%c0_56, %c0_57] : memref<1x32xf32, #tpu.memory_space<vmem>>, vector<1x32xf32>
      %84 = vector.broadcast %83 : vector<1x32xf32> to vector<8x32xf32>
      %85 = arith.addf %82, %84 : vector<8x32xf32>
      %c0_58 = arith.constant 0 : index
      %c0_59 = arith.constant 0 : index
      %86 = vector.load %arg19[%c0_58, %c0_59] : memref<32x32xf32, #tpu.memory_space<vmem>>, vector<32x32xf32>
      %cst_60 = arith.constant dense<0.000000e+00> : vector<8x32xf32>
      %87 = tpu.matmul %79, %86, %cst_60 {dimension_numbers = #tpu.dot_dimension_numbers<[1], [0], [0], [1], [0, 0, 1, 1], [], []>} : vector<8x32xf32>, vector<32x32xf32>, vector<8x32xf32> -> vector<8x32xf32>
      %88 = arith.addf %85, %87 : vector<8x32xf32>
      %c0_61 = arith.constant 0 : index
      %c0_62 = arith.constant 0 : index
      %89 = vector.load %arg40[%c0_61, %c0_62] : memref<8x32xf32, #tpu.memory_space<vmem>>, vector<8x32xf32>
      %c0_63 = arith.constant 0 : index
      %c0_64 = arith.constant 0 : index
      %90 = vector.load %arg20[%c0_63, %c0_64] : memref<32x32xf32, #tpu.memory_space<vmem>>, vector<32x32xf32>
      %cst_65 = arith.constant dense<0.000000e+00> : vector<8x32xf32>
      %91 = tpu.matmul %89, %90, %cst_65 {dimension_numbers = #tpu.dot_dimension_numbers<[1], [0], [0], [1], [0, 0, 1, 1], [], []>} : vector<8x32xf32>, vector<32x32xf32>, vector<8x32xf32> -> vector<8x32xf32>
      %c0_66 = arith.constant 0 : index
      %c0_67 = arith.constant 0 : index
      %92 = vector.load %arg21[%c0_66, %c0_67] : memref<1x32xf32, #tpu.memory_space<vmem>>, vector<1x32xf32>
      %93 = vector.broadcast %92 : vector<1x32xf32> to vector<8x32xf32>
      %94 = arith.addf %91, %93 : vector<8x32xf32>
      %c0_68 = arith.constant 0 : index
      %c0_69 = arith.constant 0 : index
      %95 = vector.load %arg22[%c0_68, %c0_69] : memref<32x32xf32, #tpu.memory_space<vmem>>, vector<32x32xf32>
      %cst_70 = arith.constant dense<0.000000e+00> : vector<8x32xf32>
      %96 = tpu.matmul %79, %95, %cst_70 {dimension_numbers = #tpu.dot_dimension_numbers<[1], [0], [0], [1], [0, 0, 1, 1], [], []>} : vector<8x32xf32>, vector<32x32xf32>, vector<8x32xf32> -> vector<8x32xf32>
      %97 = arith.addf %94, %96 : vector<8x32xf32>
      %c0_71 = arith.constant 0 : index
      %c0_72 = arith.constant 0 : index
      %98 = vector.load %arg23[%c0_71, %c0_72] : memref<32x32xf32, #tpu.memory_space<vmem>>, vector<32x32xf32>
      %cst_73 = arith.constant dense<0.000000e+00> : vector<8x32xf32>
      %99 = tpu.matmul %88, %98, %cst_73 {dimension_numbers = #tpu.dot_dimension_numbers<[1], [0], [0], [1], [0, 0, 1, 1], [], []>} : vector<8x32xf32>, vector<32x32xf32>, vector<8x32xf32> -> vector<8x32xf32>
      %c0_74 = arith.constant 0 : index
      %c0_75 = arith.constant 0 : index
      %100 = vector.load %arg24[%c0_74, %c0_75] : memref<1x32xf32, #tpu.memory_space<vmem>>, vector<1x32xf32>
      %101 = vector.broadcast %100 : vector<1x32xf32> to vector<8x32xf32>
      %102 = arith.addf %99, %101 : vector<8x32xf32>
      %cst_76 = arith.constant 0.000000e+00 : f32
      %103 = vector.broadcast %cst_76 : f32 to vector<8x32xf32>
      %104 = arith.subf %103, %102 : vector<8x32xf32>
      %105 = math.exp %104 : vector<8x32xf32>
      %cst_77 = arith.constant 1.000000e+00 : f32
      %106 = vector.broadcast %cst_77 : f32 to vector<8x32xf32>
      %107 = arith.addf %106, %105 : vector<8x32xf32>
      %cst_78 = arith.constant 1.000000e+00 : f32
      %108 = vector.broadcast %cst_78 : f32 to vector<8x32xf32>
      %109 = arith.divf %108, %107 : vector<8x32xf32>
      %110 = arith.mulf %102, %109 : vector<8x32xf32>
      %c0_79 = arith.constant 0 : index
      %c0_80 = arith.constant 0 : index
      %111 = vector.load %arg25[%c0_79, %c0_80] : memref<32x32xf32, #tpu.memory_space<vmem>>, vector<32x32xf32>
      %cst_81 = arith.constant dense<0.000000e+00> : vector<8x32xf32>
      %112 = tpu.matmul %97, %111, %cst_81 {dimension_numbers = #tpu.dot_dimension_numbers<[1], [0], [0], [1], [0, 0, 1, 1], [], []>} : vector<8x32xf32>, vector<32x32xf32>, vector<8x32xf32> -> vector<8x32xf32>
      %c0_82 = arith.constant 0 : index
      %c0_83 = arith.constant 0 : index
      %113 = vector.load %arg26[%c0_82, %c0_83] : memref<1x32xf32, #tpu.memory_space<vmem>>, vector<1x32xf32>
      %114 = vector.broadcast %113 : vector<1x32xf32> to vector<8x32xf32>
      %115 = arith.addf %112, %114 : vector<8x32xf32>
      %cst_84 = arith.constant 0.000000e+00 : f32
      %116 = vector.broadcast %cst_84 : f32 to vector<8x32xf32>
      %117 = arith.subf %116, %115 : vector<8x32xf32>
      %118 = math.exp %117 : vector<8x32xf32>
      %cst_85 = arith.constant 1.000000e+00 : f32
      %119 = vector.broadcast %cst_85 : f32 to vector<8x32xf32>
      %120 = arith.addf %119, %118 : vector<8x32xf32>
      %cst_86 = arith.constant 1.000000e+00 : f32
      %121 = vector.broadcast %cst_86 : f32 to vector<8x32xf32>
      %122 = arith.divf %121, %120 : vector<8x32xf32>
      %123 = arith.mulf %115, %122 : vector<8x32xf32>
      %c0_87 = arith.constant 0 : index
      %c0_88 = arith.constant 0 : index
      %124 = vector.load %arg27[%c0_87, %c0_88] : memref<32x32xf32, #tpu.memory_space<vmem>>, vector<32x32xf32>
      %cst_89 = arith.constant dense<0.000000e+00> : vector<8x32xf32>
      %125 = tpu.matmul %110, %124, %cst_89 {dimension_numbers = #tpu.dot_dimension_numbers<[1], [0], [0], [1], [0, 0, 1, 1], [], []>} : vector<8x32xf32>, vector<32x32xf32>, vector<8x32xf32> -> vector<8x32xf32>
      %c0_90 = arith.constant 0 : index
      %c0_91 = arith.constant 0 : index
      %126 = vector.load %arg28[%c0_90, %c0_91] : memref<32x32xf32, #tpu.memory_space<vmem>>, vector<32x32xf32>
      %cst_92 = arith.constant dense<0.000000e+00> : vector<8x32xf32>
      %127 = tpu.matmul %123, %126, %cst_92 {dimension_numbers = #tpu.dot_dimension_numbers<[1], [0], [0], [1], [0, 0, 1, 1], [], []>} : vector<8x32xf32>, vector<32x32xf32>, vector<8x32xf32> -> vector<8x32xf32>
      %128 = arith.addf %125, %127 : vector<8x32xf32>
      %c0_93 = arith.constant 0 : index
      %c0_94 = arith.constant 0 : index
      %129 = vector.load %arg29[%c0_93, %c0_94] : memref<1x32xf32, #tpu.memory_space<vmem>>, vector<1x32xf32>
      %130 = vector.broadcast %129 : vector<1x32xf32> to vector<8x32xf32>
      %131 = arith.addf %128, %130 : vector<8x32xf32>
      %132 = arith.addf %131, %79 : vector<8x32xf32>
      %c0_95 = arith.constant 0 : index
      %c0_96 = arith.constant 0 : index
      %c0_97 = arith.constant 0 : index
      %133 = vector.load %arg30[%c0_95, %c0_96, %c0_97] : memref<2x32x32xf32, #tpu.memory_space<vmem>>, vector<1x32x32xf32>
      %134 = vector.shape_cast %133 : vector<1x32x32xf32> to vector<32x32xf32>
      %cst_98 = arith.constant dense<0.000000e+00> : vector<8x32xf32>
      %135 = tpu.matmul %132, %134, %cst_98 {dimension_numbers = #tpu.dot_dimension_numbers<[1], [0], [0], [1], [0, 0, 1, 1], [], []>} : vector<8x32xf32>, vector<32x32xf32>, vector<8x32xf32> -> vector<8x32xf32>
      %c0_99 = arith.constant 0 : index
      %c0_100 = arith.constant 0 : index
      %c0_101 = arith.constant 0 : index
      %136 = vector.load %arg31[%c0_99, %c0_100, %c0_101] : memref<2x1x32xf32, #tpu.memory_space<vmem>>, vector<1x1x32xf32>
      %137 = vector.shape_cast %136 : vector<1x1x32xf32> to vector<1x32xf32>
      %138 = vector.broadcast %137 : vector<1x32xf32> to vector<8x32xf32>
      %139 = arith.addf %135, %138 : vector<8x32xf32>
      %cst_102 = arith.constant 0.000000e+00 : f32
      %140 = vector.broadcast %cst_102 : f32 to vector<8x32xf32>
      %141 = arith.subf %140, %139 : vector<8x32xf32>
      %142 = math.exp %141 : vector<8x32xf32>
      %cst_103 = arith.constant 1.000000e+00 : f32
      %143 = vector.broadcast %cst_103 : f32 to vector<8x32xf32>
      %144 = arith.addf %143, %142 : vector<8x32xf32>
      %cst_104 = arith.constant 1.000000e+00 : f32
      %145 = vector.broadcast %cst_104 : f32 to vector<8x32xf32>
      %146 = arith.divf %145, %144 : vector<8x32xf32>
      %147 = arith.mulf %139, %146 : vector<8x32xf32>
      %148 = arith.addf %147, %132 : vector<8x32xf32>
      %cst_105 = arith.constant 0.000000e+00 : f32
      %149 = vector.broadcast %cst_105 : f32 to vector<8x32xf32>
      %150 = arith.subf %149, %148 : vector<8x32xf32>
      %151 = math.exp %150 : vector<8x32xf32>
      %cst_106 = arith.constant 1.000000e+00 : f32
      %152 = vector.broadcast %cst_106 : f32 to vector<8x32xf32>
      %153 = arith.addf %152, %151 : vector<8x32xf32>
      %cst_107 = arith.constant 1.000000e+00 : f32
      %154 = vector.broadcast %cst_107 : f32 to vector<8x32xf32>
      %155 = arith.divf %154, %153 : vector<8x32xf32>
      %156 = arith.mulf %148, %155 : vector<8x32xf32>
      %157 = arith.addf %156, %148 : vector<8x32xf32>
      %c1 = arith.constant 1 : index
      %c0_108 = arith.constant 0 : index
      %c0_109 = arith.constant 0 : index
      %158 = vector.load %arg30[%c1, %c0_108, %c0_109] : memref<2x32x32xf32, #tpu.memory_space<vmem>>, vector<1x32x32xf32>
      %159 = vector.shape_cast %158 : vector<1x32x32xf32> to vector<32x32xf32>
      %cst_110 = arith.constant dense<0.000000e+00> : vector<8x32xf32>
      %160 = tpu.matmul %157, %159, %cst_110 {dimension_numbers = #tpu.dot_dimension_numbers<[1], [0], [0], [1], [0, 0, 1, 1], [], []>} : vector<8x32xf32>, vector<32x32xf32>, vector<8x32xf32> -> vector<8x32xf32>
      %c1_111 = arith.constant 1 : index
      %c0_112 = arith.constant 0 : index
      %c0_113 = arith.constant 0 : index
      %161 = vector.load %arg31[%c1_111, %c0_112, %c0_113] : memref<2x1x32xf32, #tpu.memory_space<vmem>>, vector<1x1x32xf32>
      %162 = vector.shape_cast %161 : vector<1x1x32xf32> to vector<1x32xf32>
      %163 = vector.broadcast %162 : vector<1x32xf32> to vector<8x32xf32>
      %164 = arith.addf %160, %163 : vector<8x32xf32>
      %cst_114 = arith.constant 0.000000e+00 : f32
      %165 = vector.broadcast %cst_114 : f32 to vector<8x32xf32>
      %166 = arith.subf %165, %164 : vector<8x32xf32>
      %167 = math.exp %166 : vector<8x32xf32>
      %cst_115 = arith.constant 1.000000e+00 : f32
      %168 = vector.broadcast %cst_115 : f32 to vector<8x32xf32>
      %169 = arith.addf %168, %167 : vector<8x32xf32>
      %cst_116 = arith.constant 1.000000e+00 : f32
      %170 = vector.broadcast %cst_116 : f32 to vector<8x32xf32>
      %171 = arith.divf %170, %169 : vector<8x32xf32>
      %172 = arith.mulf %164, %171 : vector<8x32xf32>
      %173 = arith.addf %172, %157 : vector<8x32xf32>
      %cst_117 = arith.constant 0.000000e+00 : f32
      %174 = vector.broadcast %cst_117 : f32 to vector<8x32xf32>
      %175 = arith.subf %174, %173 : vector<8x32xf32>
      %176 = math.exp %175 : vector<8x32xf32>
      %cst_118 = arith.constant 1.000000e+00 : f32
      %177 = vector.broadcast %cst_118 : f32 to vector<8x32xf32>
      %178 = arith.addf %177, %176 : vector<8x32xf32>
      %cst_119 = arith.constant 1.000000e+00 : f32
      %179 = vector.broadcast %cst_119 : f32 to vector<8x32xf32>
      %180 = arith.divf %179, %178 : vector<8x32xf32>
      %181 = arith.mulf %173, %180 : vector<8x32xf32>
      %182 = arith.addf %181, %173 : vector<8x32xf32>
      %183 = tpu.iota {dimensions = array<i32: 0>} : vector<3x8xi32>
      %c0_120 = arith.constant 0 : index
      %c0_121 = arith.constant 0 : index
      %184 = vector.load %arg5[%c0_120, %c0_121] : memref<1x8xi32, #tpu.memory_space<vmem>>, vector<1x8xi32>
      %185 = vector.broadcast %184 : vector<1x8xi32> to vector<3x8xi32>
      %186 = arith.cmpi eq, %183, %185 : vector<3x8xi32>
      %187 = arith.extui %186 : vector<3x8xi1> to vector<3x8xi32>
      %188 = arith.sitofp %187 : vector<3x8xi32> to vector<3x8xf32>
      %189 = tpu.iota {dimensions = array<i32: 1>} : vector<8x3xi32>
      %c0_122 = arith.constant 0 : index
      %c0_123 = arith.constant 0 : index
      %190 = vector.load %arg4[%c0_122, %c0_123] : memref<8x1xi32, #tpu.memory_space<vmem>>, vector<8x1xi32>
      %191 = vector.broadcast %190 : vector<8x1xi32> to vector<8x3xi32>
      %192 = arith.cmpi eq, %189, %191 : vector<8x3xi32>
      %193 = arith.extui %192 : vector<8x3xi1> to vector<8x3xi32>
      %194 = arith.sitofp %193 : vector<8x3xi32> to vector<8x3xf32>
      %cst_124 = arith.constant dense<0.000000e+00> : vector<3xf32>
      %195 = vector.multi_reduction <add>, %188, %cst_124 [1] : vector<3x8xf32> to vector<3xf32>
      %196 = vector.shape_cast %195 : vector<3xf32> to vector<3x1xf32>
      %cst_125 = arith.constant 1.000000e+00 : f32
      %197 = vector.broadcast %cst_125 : f32 to vector<3x1xf32>
      %198 = arith.maximumf %196, %197 : vector<3x1xf32>
      %cst_126 = arith.constant 1.000000e+00 : f32
      %199 = vector.broadcast %cst_126 : f32 to vector<3x1xf32>
      %200 = arith.divf %199, %198 : vector<3x1xf32>
      %cst_127 = arith.constant dense<0.000000e+00> : vector<3x32xf32>
      %201 = tpu.matmul %188, %182, %cst_127 {dimension_numbers = #tpu.dot_dimension_numbers<[1], [0], [0], [1], [0, 0, 1, 1], [], []>} : vector<3x8xf32>, vector<8x32xf32>, vector<3x32xf32> -> vector<3x32xf32>
      %202 = vector.broadcast %200 : vector<3x1xf32> to vector<3x32xf32>
      %203 = arith.mulf %201, %202 : vector<3x32xf32>
      %cst_128 = arith.constant dense<0.000000e+00> : vector<8x32xf32>
      %204 = tpu.matmul %194, %203, %cst_128 {dimension_numbers = #tpu.dot_dimension_numbers<[1], [0], [0], [1], [0, 0, 1, 1], [], []>} : vector<8x3xf32>, vector<3x32xf32>, vector<8x32xf32> -> vector<8x32xf32>
      %c0_129 = arith.constant 0 : index
      %c0_130 = arith.constant 0 : index
      %205 = vector.load %arg34[%c0_129, %c0_130] : memref<1x32xf32, #tpu.memory_space<vmem>>, vector<1x32xf32>
      %206 = vector.broadcast %205 : vector<1x32xf32> to vector<8x32xf32>
      %207 = arith.mulf %204, %206 : vector<8x32xf32>
      %208 = arith.subf %182, %207 : vector<8x32xf32>
      %209 = arith.mulf %208, %208 : vector<8x32xf32>
      %cst_131 = arith.constant dense<0.000000e+00> : vector<3x32xf32>
      %210 = tpu.matmul %188, %209, %cst_131 {dimension_numbers = #tpu.dot_dimension_numbers<[1], [0], [0], [1], [0, 0, 1, 1], [], []>} : vector<3x8xf32>, vector<8x32xf32>, vector<3x32xf32> -> vector<3x32xf32>
      %211 = vector.broadcast %200 : vector<3x1xf32> to vector<3x32xf32>
      %212 = arith.mulf %210, %211 : vector<3x32xf32>
      %cst_132 = arith.constant dense<0.000000e+00> : vector<8x32xf32>
      %213 = tpu.matmul %194, %212, %cst_132 {dimension_numbers = #tpu.dot_dimension_numbers<[1], [0], [0], [1], [0, 0, 1, 1], [], []>} : vector<8x3xf32>, vector<3x32xf32>, vector<8x32xf32> -> vector<8x32xf32>
      %c0_133 = arith.constant 0 : index
      %c0_134 = arith.constant 0 : index
      %214 = vector.load %arg32[%c0_133, %c0_134] : memref<1x32xf32, #tpu.memory_space<vmem>>, vector<1x32xf32>
      %215 = vector.broadcast %214 : vector<1x32xf32> to vector<8x32xf32>
      %216 = arith.mulf %215, %208 : vector<8x32xf32>
      %cst_135 = arith.constant 9.99999974E-6 : f32
      %217 = vector.broadcast %cst_135 : f32 to vector<8x32xf32>
      %218 = arith.addf %213, %217 : vector<8x32xf32>
      %219 = math.sqrt %218 : vector<8x32xf32>
      %220 = arith.divf %216, %219 : vector<8x32xf32>
      %c0_136 = arith.constant 0 : index
      %c0_137 = arith.constant 0 : index
      %221 = vector.load %arg33[%c0_136, %c0_137] : memref<1x32xf32, #tpu.memory_space<vmem>>, vector<1x32xf32>
      %222 = vector.broadcast %221 : vector<1x32xf32> to vector<8x32xf32>
      %223 = arith.addf %220, %222 : vector<8x32xf32>
      %c0_138 = arith.constant 0 : index
      %c0_139 = arith.constant 0 : index
      %224 = vector.load %arg35[%c0_138, %c0_139] : memref<32x128xf32, #tpu.memory_space<vmem>>, vector<32x128xf32>
      %cst_140 = arith.constant dense<0.000000e+00> : vector<8x128xf32>
      %225 = tpu.matmul %223, %224, %cst_140 {dimension_numbers = #tpu.dot_dimension_numbers<[1], [0], [0], [1], [0, 0, 1, 1], [], []>} : vector<8x32xf32>, vector<32x128xf32>, vector<8x128xf32> -> vector<8x128xf32>
      %c0_141 = arith.constant 0 : index
      %c0_142 = arith.constant 0 : index
      %226 = vector.load %arg36[%c0_141, %c0_142] : memref<1x128xf32, #tpu.memory_space<vmem>>, vector<1x128xf32>
      %227 = vector.broadcast %226 : vector<1x128xf32> to vector<8x128xf32>
      %228 = arith.addf %225, %227 : vector<8x128xf32>
      %c0_143 = arith.constant 0 : index
      %c0_144 = arith.constant 0 : index
      %229 = vector.load %arg37[%c0_143, %c0_144] : memref<8x128xf32, #tpu.memory_space<vmem>>, vector<8x128xf32>
      tpu.vector_store %arg37[%c0_143, %c0_144], %228 {strides = array<i32>} : memref<8x128xf32, #tpu.memory_space<vmem>>, vector<8x128xf32>,
    } else {
    }
    return
  }
  func.func @transform_0(%arg0: i32) -> (i32, i32) {
    %c0_i32 = arith.constant 0 : i32
    %c0_i32_0 = arith.constant 0 : i32
    return %arg0, %c0_i32 : i32, i32
  }
  func.func @transform_1(%arg0: i32) -> (i32, i32) {
    %c0_i32 = arith.constant 0 : i32
    %c0_i32_0 = arith.constant 0 : i32
    return %c0_i32, %arg0 : i32, i32
  }
  func.func @transform_2(%arg0: i32) -> (i32, i32) {
    %c0_i32 = arith.constant 0 : i32
    %c0_i32_0 = arith.constant 0 : i32
    %c0_i32_1 = arith.constant 0 : i32
    return %c0_i32, %c0_i32_0 : i32, i32
  }
  func.func @transform_3(%arg0: i32) -> (i32, i32) {
    %c0_i32 = arith.constant 0 : i32
    %c0_i32_0 = arith.constant 0 : i32
    %c0_i32_1 = arith.constant 0 : i32
    return %c0_i32, %c0_i32_0 : i32, i32
  }
  func.func @transform_4(%arg0: i32) -> (i32, i32) {
    %c0_i32 = arith.constant 0 : i32
    %c0_i32_0 = arith.constant 0 : i32
    %c0_i32_1 = arith.constant 0 : i32
    return %c0_i32, %c0_i32_0 : i32, i32
  }
  func.func @transform_5(%arg0: i32) -> (i32, i32) {
    %c0_i32 = arith.constant 0 : i32
    %c0_i32_0 = arith.constant 0 : i32
    return %arg0, %c0_i32 : i32, i32
  }
  func.func @transform_6(%arg0: i32) -> (i32, i32) {
    %c0_i32 = arith.constant 0 : i32
    %c0_i32_0 = arith.constant 0 : i32
    %c0_i32_1 = arith.constant 0 : i32
    return %c0_i32, %c0_i32_0 : i32, i32
  }
  func.func @transform_7(%arg0: i32) -> (i32, i32) {
    %c0_i32 = arith.constant 0 : i32
    %c0_i32_0 = arith.constant 0 : i32
    %c0_i32_1 = arith.constant 0 : i32
    return %c0_i32, %c0_i32_0 : i32, i32
  }
  func.func @transform_8(%arg0: i32) -> (i32, i32) {
    %c0_i32 = arith.constant 0 : i32
    %c0_i32_0 = arith.constant 0 : i32
    %c0_i32_1 = arith.constant 0 : i32
    return %c0_i32, %c0_i32_0 : i32, i32
  }
  func.func @transform_9(%arg0: i32) -> (i32, i32) {
    %c0_i32 = arith.constant 0 : i32
    %c0_i32_0 = arith.constant 0 : i32
    %c0_i32_1 = arith.constant 0 : i32
    return %c0_i32, %c0_i32_0 : i32, i32
  }
  func.func @transform_10(%arg0: i32) -> (i32, i32) {
    %c0_i32 = arith.constant 0 : i32
    %c0_i32_0 = arith.constant 0 : i32
    %c0_i32_1 = arith.constant 0 : i32
    return %c0_i32, %c0_i32_0 : i32, i32
  }
  func.func @transform_11(%arg0: i32) -> (i32, i32) {
    %c0_i32 = arith.constant 0 : i32
    %c0_i32_0 = arith.constant 0 : i32
    %c0_i32_1 = arith.constant 0 : i32
    return %c0_i32, %c0_i32_0 : i32, i32
  }
  func.func @transform_12(%arg0: i32) -> (i32, i32) {
    %c0_i32 = arith.constant 0 : i32
    %c0_i32_0 = arith.constant 0 : i32
    %c0_i32_1 = arith.constant 0 : i32
    return %c0_i32, %c0_i32_0 : i32, i32
  }
  func.func @transform_13(%arg0: i32) -> (i32, i32) {
    %c0_i32 = arith.constant 0 : i32
    %c0_i32_0 = arith.constant 0 : i32
    %c0_i32_1 = arith.constant 0 : i32
    return %c0_i32, %c0_i32_0 : i32, i32
  }
  func.func @transform_14(%arg0: i32) -> (i32, i32) {
    %c0_i32 = arith.constant 0 : i32
    %c0_i32_0 = arith.constant 0 : i32
    %c0_i32_1 = arith.constant 0 : i32
    return %c0_i32, %c0_i32_0 : i32, i32
  }
  func.func @transform_15(%arg0: i32) -> (i32, i32) {
    %c0_i32 = arith.constant 0 : i32
    %c0_i32_0 = arith.constant 0 : i32
    %c0_i32_1 = arith.constant 0 : i32
    return %c0_i32, %c0_i32_0 : i32, i32
  }
  func.func @transform_16(%arg0: i32) -> (i32, i32) {
    %c0_i32 = arith.constant 0 : i32
    %c0_i32_0 = arith.constant 0 : i32
    %c0_i32_1 = arith.constant 0 : i32
    return %c0_i32, %c0_i32_0 : i32, i32
  }
  func.func @transform_17(%arg0: i32) -> (i32, i32) {
    %c0_i32 = arith.constant 0 : i32
    %c0_i32_0 = arith.constant 0 : i32
    %c0_i32_1 = arith.constant 0 : i32
    return %c0_i32, %c0_i32_0 : i32, i32
  }
  func.func @transform_18(%arg0: i32) -> (i32, i32) {
    %c0_i32 = arith.constant 0 : i32
    %c0_i32_0 = arith.constant 0 : i32
    %c0_i32_1 = arith.constant 0 : i32
    return %c0_i32, %c0_i32_0 : i32, i32
  }
  func.func @transform_19(%arg0: i32) -> (i32, i32) {
    %c0_i32 = arith.constant 0 : i32
    %c0_i32_0 = arith.constant 0 : i32
    %c0_i32_1 = arith.constant 0 : i32
    return %c0_i32, %c0_i32_0 : i32, i32
  }
  func.func @transform_20(%arg0: i32) -> (i32, i32) {
    %c0_i32 = arith.constant 0 : i32
    %c0_i32_0 = arith.constant 0 : i32
    %c0_i32_1 = arith.constant 0 : i32
    return %c0_i32, %c0_i32_0 : i32, i32
  }
  func.func @transform_21(%arg0: i32) -> (i32, i32) {
    %c0_i32 = arith.constant 0 : i32
    %c0_i32_0 = arith.constant 0 : i32
    %c0_i32_1 = arith.constant 0 : i32
    return %c0_i32, %c0_i32_0 : i32, i32
  }
  func.func @transform_22(%arg0: i32) -> (i32, i32) {
    %c0_i32 = arith.constant 0 : i32
    %c0_i32_0 = arith.constant 0 : i32
    %c0_i32_1 = arith.constant 0 : i32
    return %c0_i32, %c0_i32_0 : i32, i32
  }
  func.func @transform_23(%arg0: i32) -> (i32, i32) {
    %c0_i32 = arith.constant 0 : i32
    %c0_i32_0 = arith.constant 0 : i32
    %c0_i32_1 = arith.constant 0 : i32
    return %c0_i32, %c0_i32_0 : i32, i32
  }
  func.func @transform_24(%arg0: i32) -> (i32, i32) {
    %c0_i32 = arith.constant 0 : i32
    %c0_i32_0 = arith.constant 0 : i32
    %c0_i32_1 = arith.constant 0 : i32
    return %c0_i32, %c0_i32_0 : i32, i32
  }
  func.func @transform_25(%arg0: i32) -> (i32, i32) {
    %c0_i32 = arith.constant 0 : i32
    %c0_i32_0 = arith.constant 0 : i32
    %c0_i32_1 = arith.constant 0 : i32
    return %c0_i32, %c0_i32_0 : i32, i32
  }
  func.func @transform_26(%arg0: i32) -> (i32, i32) {
    %c0_i32 = arith.constant 0 : i32
    %c0_i32_0 = arith.constant 0 : i32
    %c0_i32_1 = arith.constant 0 : i32
    return %c0_i32, %c0_i32_0 : i32, i32
  }
  func.func @transform_27(%arg0: i32) -> (i32, i32) {
    %c0_i32 = arith.constant 0 : i32
    %c0_i32_0 = arith.constant 0 : i32
    %c0_i32_1 = arith.constant 0 : i32
    return %c0_i32, %c0_i32_0 : i32, i32
  }
  func.func @transform_28(%arg0: i32) -> (i32, i32) {
    %c0_i32 = arith.constant 0 : i32
    %c0_i32_0 = arith.constant 0 : i32
    %c0_i32_1 = arith.constant 0 : i32
    return %c0_i32, %c0_i32_0 : i32, i32
  }
  func.func @transform_29(%arg0: i32) -> (i32, i32, i32) {
    %c0_i32 = arith.constant 0 : i32
    %c0_i32_0 = arith.constant 0 : i32
    %c0_i32_1 = arith.constant 0 : i32
    %c0_i32_2 = arith.constant 0 : i32
    return %c0_i32, %c0_i32_0, %c0_i32_1 : i32, i32, i32
  }
  func.func @transform_30(%arg0: i32) -> (i32, i32, i32) {
    %c0_i32 = arith.constant 0 : i32
    %c0_i32_0 = arith.constant 0 : i32
    %c0_i32_1 = arith.constant 0 : i32
    %c0_i32_2 = arith.constant 0 : i32
    return %c0_i32, %c0_i32_0, %c0_i32_1 : i32, i32, i32
  }
  func.func @transform_31(%arg0: i32) -> (i32, i32) {
    %c0_i32 = arith.constant 0 : i32
    %c0_i32_0 = arith.constant 0 : i32
    %c0_i32_1 = arith.constant 0 : i32
    return %c0_i32, %c0_i32_0 : i32, i32
  }
  func.func @transform_32(%arg0: i32) -> (i32, i32) {
    %c0_i32 = arith.constant 0 : i32
    %c0_i32_0 = arith.constant 0 : i32
    %c0_i32_1 = arith.constant 0 : i32
    return %c0_i32, %c0_i32_0 : i32, i32
  }
  func.func @transform_33(%arg0: i32) -> (i32, i32) {
    %c0_i32 = arith.constant 0 : i32
    %c0_i32_0 = arith.constant 0 : i32
    %c0_i32_1 = arith.constant 0 : i32
    return %c0_i32, %c0_i32_0 : i32, i32
  }
  func.func @transform_34(%arg0: i32) -> (i32, i32) {
    %c0_i32 = arith.constant 0 : i32
    %c0_i32_0 = arith.constant 0 : i32
    %c0_i32_1 = arith.constant 0 : i32
    return %c0_i32, %c0_i32_0 : i32, i32
  }
  func.func @transform_35(%arg0: i32) -> (i32, i32) {
    %c0_i32 = arith.constant 0 : i32
    %c0_i32_0 = arith.constant 0 : i32
    %c0_i32_1 = arith.constant 0 : i32
    return %c0_i32, %c0_i32_0 : i32, i32
  }
  func.func @transform_36(%arg0: i32) -> (i32, i32) {
    %c0_i32 = arith.constant 0 : i32
    %c0_i32_0 = arith.constant 0 : i32
    %c0_i32_1 = arith.constant 0 : i32
    return %c0_i32, %c0_i32_0 : i32, i32
  }
}

</mosaic_0001>

<bundles_post_ra>
// kernel: tpu_custom_call.1
= control target key start
LH: loop header
LB: loop body
LE: loop exit
PB: predicated region body
PF: predicated region fallthrough
CT: control target
= control target key end

     0   :  { %s4871_s6 = smov 1   ;;  %s4872_s10 = smov 2   ;;  %s5932_s0 = inlined_call_operand.smem [shape: u32[37], index: -1, kind: input, shape index: {}] }
   0x1   :  { %s4928_s5 = sld [smem:[%s5932_s0]]   ;;  %s4873_s14 = smov 3  }
   0x2   :  { %s4933_s9 = sld [smem:[%s5932_s0 + %s4871_s6]]   ;;  %s4874_s18 = smov 4  }
   0x3   :  { %s4938_s13 = sld [smem:[%s5932_s0 + %s4872_s10]]   ;;  %s4875_s22 = smov 5  }
   0x4   :  { %s4943_s17 = sld [smem:[%s5932_s0 + %s4873_s14]]   ;;  %s4876_s26 = smov 6  }
   0x5   :  { %s4948_s21 = sld [smem:[%s5932_s0 + %s4874_s18]]   ;;  %s4877_s30 = smov 7  }
   0x6   :  { %s4953_s25 = sld [smem:[%s5932_s0 + %s4875_s22]]   ;;  %s4878_s4 = smov 8  }
   0x7   :  { %s4958_s29 = sld [smem:[%s5932_s0 + %s4876_s26]]   ;;  %s4879_s10 = smov 9  }
   0x8   :  { %s4963_s3 = sld [smem:[%s5932_s0 + %s4877_s30]]   ;;  %s4880_s15 = smov 10  }
   0x9   :  { %s4968_s8 = sld [smem:[%s5932_s0 + %s4878_s4]]   ;;  %s4881_s20 = smov 11  }
   0xa   :  { %5959 = sst [smem:[#allocation24_spill]] %s4943_s17  ;;  %s4882_s26 = smov 12  }
   0xb   :  { %s4973_s14 = sld [smem:[%s5932_s0 + %s4879_s10]]   ;;  %s4883_s1 = smov 13  }
   0xc   :  { %s4978_s19 = sld [smem:[%s5932_s0 + %s4880_s15]]   ;;  %s4884_s7 = smov 14  }
   0xd   :  { %s4983_s24 = sld [smem:[%s5932_s0 + %s4881_s20]]   ;;  %s4885_s15 = smov 16  }
   0xe   :  { %s4988_s30 = sld [smem:[%s5932_s0 + %s4882_s26]]   ;;  %s4886_s22 = smov 17  }
   0xf   :  { %s3667_s6 = sld [smem:[%s5932_s0 + %s4883_s1]]   ;;  %s4887_s28 = smov 18  }
  0x10   :  { %s4996_s12 = sld [smem:[%s5932_s0 + %s4884_s7]]   ;;  %s4888_s7 = smov 19  }
  0x11   :  { %s5001_s20 = sld [smem:[%s5932_s0 + %s4885_s15]]   ;;  %s4889_s15 = smov 20  }
  0x12   :  { %s5006_s27 = sld [smem:[%s5932_s0 + %s4886_s22]]   ;;  %s4890_s22 = smov 21  }
  0x13   :  { %s5011_s4 = sld [smem:[%s5932_s0 + %s4887_s28]]   ;;  %s4891_s28 = smov 22  }
  0x14   :  { %s5016_s17 = sld [smem:[%s5932_s0 + %s4888_s7]]   ;;  %s4892_s10 = smov 23  }
  0x15   :  { %v78_v0 = vstv %s3667_s6  ;;  %s5026_s1 = sld [smem:[%s5932_s0 + %s4890_s22]]   ;;  %s4893_s6 = smov 24  }
  0x16   :  { %79 = vst [vmem:[#allocation5] sm:$0x1] %v78_v0  ;;  %s5031_s7 = sld [smem:[%s5932_s0 + %s4891_s28]]   ;;  %s4894_s22 = smov 25  }
  0x17   :  { %5960 = sst [smem:[#allocation25_spill]] %s5001_s20 }
  0x18   :  { %5961 = sst [smem:[#allocation26_spill]] %s5006_s27  ;;  %s4895_s27 = smov 26  }
  0x19   :  { %s5021_s20 = sld [smem:[%s5932_s0 + %s4889_s15]]  }
  0x1a   :  { %5962 = sst [smem:[#allocation27_spill]] %s5016_s17  ;;  %s4896_s17 = smov 27  }
  0x1b   :  { %5964 = sst [smem:[#allocation29_spill]] %s5026_s1 }
  0x1c   :  { %5965 = sst [smem:[#allocation30_spill]] %s5031_s7 }
  0x1d   :  { %s5036_s15 = sld [smem:[%s5932_s0 + %s4892_s10]]  }
  0x1e   :  { %s5041_s23 = sld [smem:[%s5932_s0 + %s4893_s6]]   ;;  %s4897_s6 = smov 28  }
  0x1f   :  { %5963 = sst [smem:[#allocation28_spill]] %s5021_s20  ;;  %s4898_s20 = smov 29  }
  0x20   :  { %s5046_s1 = sld [smem:[%s5932_s0 + %s4894_s22]]  }
  0x21   :  { %s5051_s7 = sld [smem:[%s5932_s0 + %s4895_s27]]   ;;  %s4899_s27 = smov 30  }
  0x23   :  { %5966 = sst [smem:[#allocation31_spill]] %s5036_s15 }
  0x24   :  { %5967 = sst [smem:[#allocation32_spill]] %s5041_s23 }
  0x25   :  { %s5056_s15 = sld [smem:[%s5932_s0 + %s4896_s17]]   ;;  %s4900_s17 = smov 31  }
  0x26   :  { %5968 = sst [smem:[#allocation33_spill]] %s5046_s1 }
  0x27   :  { %5969 = sst [smem:[#allocation34_spill]] %s5051_s7 }
  0x28   :  { %s5061_s23 = sld [smem:[%s5932_s0 + %s4897_s6]]   ;;  %s4901_s6 = smov 32  }
  0x29   :  { %s5066_s1 = sld [smem:[%s5932_s0 + %s4898_s20]]   ;;  %s4902_s20 = smov 33  }
  0x2a   :  { %s5071_s7 = sld [smem:[%s5932_s0 + %s4899_s27]]   ;;  %s4903_s27 = smov 34  }
  0x2b   :  { %5970 = sst [smem:[#allocation35_spill]] %s5056_s15 }
  0x2c   :  { %s5076_s15 = sld [smem:[%s5932_s0 + %s4900_s17]]   ;;  %s4904_s17 = smov 35  }
  0x2e   :  { %5971 = sst [smem:[#allocation36_spill]] %s5061_s23 }
  0x2f   :  { %5972 = sst [smem:[#allocation37_spill]] %s5066_s1 }
  0x30   :  { %5973 = sst [smem:[#allocation38_spill]] %s5071_s7 }
  0x31   :  { %s5081_s23 = sld [smem:[%s5932_s0 + %s4901_s6]]   ;;  %s4905_s6 = smov 36  }
  0x32   :  { %5974 = sst [smem:[#allocation39_spill]] %s5076_s15 }
  0x33   :  { %s5086_s1 = sld [smem:[%s5932_s0 + %s4902_s20]]   ;;  %s4906_s20 = smov 15  }
  0x34   :  { %s5091_s7 = sld [smem:[%s5932_s0 + %s4903_s27]]  }
  0x35   :  { %s5096_s15 = sld [smem:[%s5932_s0 + %s4904_s17]]  }
  0x37   :  { %5975 = sst [smem:[#allocation40_spill]] %s5081_s23 }
  0x38   :  { %s5101_s23 = sld [smem:[%s5932_s0 + %s4905_s6]]  }
  0x39   :  { %5976 = sst [smem:[#allocation41_spill]] %s5086_s1 }
  0x3a   :  { %s3669_s1 = sld [smem:[%s5932_s0 + %s4906_s20]]  }
  0x40   :  { %v80_v1 = vstv %s3669_s1 }
  0x41   :  { %81 = vst [vmem:[#allocation6] sm:$0x1] %v80_v1 }
  0x42   :  { %82 = vsyncpa [#allocation8], 0 }
  0x43   :  { %83 = vsyncpa [#allocation11], 0 }
  0x44   :  { %84 = vsyncpa [#allocation14], 0 }
  0x45   :  { %85 = vsyncpa [#allocation17], 0 }
  0x46   :  { %86 = vsyncpa [#allocation9], 0  ;;  %s4907_s27 = smov [#allocation10]   ;;  %s4908_s2 = smov [#allocation13]  }
  0x47   :  { %s105_s28 = sshll.u32 %s4907_s27, 4  ;;  %s131_s17 = sshll.u32 %s4908_s2, 4  ;;  %s106_s28 = int_to_ptr.vmem [resolvable:$true] %s105_s28  ;;  %s132_s17 = int_to_ptr.vmem [resolvable:$true] %s131_s17 }
  0x48   :  { %s4729_s10 = scalar_lea.vmem %s106_s28, 128  ;;  %p4734_p1 = scmp.lt.s32.totalorder %s106_s28, %s106_s28 }
  0x49   :  { %p4730_p0 = scmp.ne.s32.totalorder %s106_s28, %s4729_s10  ;;  %p4735_p2 = scmp.lt.s32.totalorder %s4729_s10, %s4729_s10 }
  0x4b   :  { %p4736_p3 = por %p4735_p2, %p4734_p1 }
  0x4d   :  { %p4737_p4 = pnand %p4736_p3, %p4730_p0 }
  0x4f   :  { %4740 = shalt.err (!%p4737_p4)
}
  0x50   :  { %108 = dma.hbm_to_vmem [thread:$0]  %s4938_s13, 128, %s106_s28, [#allocation11]  }
  0x51   :  { %s4749_s0 = scalar_lea.vmem %s132_s17, 16  ;;  %s4753_s1 = scalar_lea.vmem %s132_s17, 32 }
  0x52   :  { %p4750_p5 = scmp.ne.s32.totalorder %s132_s17, %s4749_s0  ;;  %p4754_p6 = scmp.lt.s32.totalorder %s132_s17, %s132_s17 }
  0x53   :  { %p4755_p7 = scmp.lt.s32.totalorder %s4753_s1, %s4749_s0 }
  0x55   :  { %p4756_p8 = por %p4755_p7, %p4754_p6 }
  0x57   :  { %p4757_p9 = pnand %p4756_p8, %p4750_p5 }
  0x59   :  { %4760 = shalt.err (!%p4757_p9)
}
  0x5a   :  { %134 = dma.hbm_to_vmem [thread:$0]  %s4963_s3, 16, %s132_s17, [#allocation14]  }
  0x5b   :  { %s4909_s11 = smov [#allocation7]   ;;  %s4910_s16 = smov [#allocation12]  }
  0x5c   :  { %s95_s6 = sshll.u32 %s4909_s11, 4  ;;  %s117_s18 = sshll.u32 %s4910_s16, 4  ;;  %s96_s6 = int_to_ptr.vmem [resolvable:$true] %s95_s6  ;;  %s118_s18 = int_to_ptr.vmem [resolvable:$true] %s117_s18 }
  0x5d   :  { %s4769_s20 = scalar_lea.vmem %s96_s6, 16  ;;  %s4773_s22 = scalar_lea.vmem %s96_s6, 32 }
  0x5e   :  { %p4770_p10 = scmp.ne.s32.totalorder %s96_s6, %s4769_s20  ;;  %p4774_p11 = scmp.lt.s32.totalorder %s96_s6, %s96_s6 }
  0x5f   :  { %p4775_p12 = scmp.lt.s32.totalorder %s4773_s22, %s4769_s20 }
  0x61   :  { %p4776_p13 = por %p4775_p12, %p4774_p11 }
  0x63   :  { %p4777_p0 = pnand %p4776_p13, %p4770_p10 }
  0x65   :  { %4780 = shalt.err (!%p4777_p0)
}
  0x66   :  { %98 = dma.hbm_to_vmem [thread:$0]  %s4933_s9, 16, %s96_s6, [#allocation8]  }
  0x67   :  { %s4789_s13 = scalar_lea.vmem %s118_s18, 16  ;;  %s4793_s26 = scalar_lea.vmem %s118_s18, 32 }
  0x68   :  { %p4790_p1 = scmp.ne.s32.totalorder %s118_s18, %s4789_s13  ;;  %p4794_p2 = scmp.lt.s32.totalorder %s118_s18, %s118_s18 }
  0x69   :  { %p4795_p3 = scmp.lt.s32.totalorder %s4793_s26, %s4789_s13 }
  0x6b   :  { %p4796_p4 = por %p4795_p3, %p4794_p2 }
  0x6d   :  { %p4797_p5 = pnand %p4796_p4, %p4790_p1 }
  0x6f   :  { %4800 = shalt.err (!%p4797_p5)
}
  0x70   :  { %120 = dma.hbm_to_vmem [thread:$0]  %s4948_s21, 16, %s118_s18, [#allocation11]  }
  0x71   :  { %s4911_s3 = smov [#allocation15]   ;;  %s4912_s28 = smov [#allocation16]  }
  0x72   :  { %s143_s27 = sshll.u32 %s4911_s3, 4  ;;  %s155_s2 = sshll.u32 %s4912_s28, 4  ;;  %s144_s27 = int_to_ptr.vmem [resolvable:$true] %s143_s27  ;;  %s156_s2 = int_to_ptr.vmem [resolvable:$true] %s155_s2 }
  0x73   :  { %s4809_s17 = scalar_lea.vmem %s144_s27, 16  ;;  %s4813_s10 = scalar_lea.vmem %s144_s27, 32 }
  0x74   :  { %p4810_p6 = scmp.ne.s32.totalorder %s144_s27, %s4809_s17  ;;  %p4814_p7 = scmp.lt.s32.totalorder %s144_s27, %s144_s27 }
  0x75   :  { %p4815_p8 = scmp.lt.s32.totalorder %s4813_s10, %s4809_s17 }
  0x77   :  { %p4816_p9 = por %p4815_p8, %p4814_p7 }
  0x79   :  { %p4817_p10 = pnand %p4816_p9, %p4810_p6 }
  0x7b   :  { %4820 = shalt.err (!%p4817_p10)
}
  0x7c   :  { %146 = dma.hbm_to_vmem [thread:$0]  %s4973_s14, 16, %s144_s27, [#allocation14]  }
  0x7d   :  { %s4829_s9 = scalar_lea.vmem %s156_s2, 16  ;;  %s4833_s0 = scalar_lea.vmem %s156_s2, 32 }
  0x7e   :  { %p4830_p11 = scmp.ne.s32.totalorder %s156_s2, %s4829_s9  ;;  %p4834_p12 = scmp.lt.s32.totalorder %s156_s2, %s156_s2 }
  0x7f   :  { %p4835_p13 = scmp.lt.s32.totalorder %s4833_s0, %s4829_s9 }
  0x81   :  { %p4836_p0 = por %p4835_p13, %p4834_p12 }
  0x83   :  { %p4837_p1 = pnand %p4836_p0, %p4830_p11 }
  0x85   :  { %4840 = shalt.err (!%p4837_p1)
}
  0x86   :  { %158 = dma.hbm_to_vmem [thread:$0]  %s4983_s24, 16, %s156_s2, [#allocation17]  }
  0x87   :  { %4861 = dma.done.wait [#allocation8], 16  }
  0x88   :  { %4862 = vsyncadd [#allocation8], 4294967280 }
  0x89   :  { %4863 = dma.done.wait [#allocation11], 144  }
  0x8a   :  { %4864 = vsyncadd [#allocation11], 4294967152 }
  0x8b   :  { %4865 = dma.done.wait [#allocation14], 32  }
  0x8c   :  { %4866 = vsyncadd [#allocation14], 4294967264 }
  0x8d   :  { %4867 = dma.done.wait [#allocation17], 16  }
  0x8e   :  { %4868 = vsyncadd [#allocation17], 4294967280  ;;  %vm241_vm0 = vcmask 261120   ;;  %v5943_v2 = vmov 0.0   ;;  %vm4914_vm1 = vmmov 0   ;;  %v4915_v3 = vmov 0  }
  0x8f   :  { %4044 = vmatprep.subr.mxu0 %v5943_v2  ;;  %4052 = vmatprep.mubr.msk.f32.mxu0 %vm4914_vm1, %v5943_v2  ;;  %323 = vst.msk [vmem:[#allocation3] sm:$0xff] %vm241_vm0, %v5943_v2  ;;  %324 = vst.msk [vmem:[#allocation4] sm:$0xff] %vm241_vm0, %v5943_v2  ;;  %v233_v4 = vld [vmem:[%s4958_s29 + $0x18] sm:$0xff]  ;;  %v232_v6 = vld [vmem:[%s4958_s29 + $0x10] sm:$0xff]  ;;  %vm360_vm2 = vcmask 785408   ;;  %vm681_vm3 = vcmask 523264  }
  0x90   :  { %4493 = vset.pattern.permute.xlu0 %v4915_v3  ;;  %4494 = vset.pattern.permute.xlu1 %v4915_v3  ;;  %v352_v5 = vld [vmem:[%s4968_s8 + $0x58] sm:$0xff]  ;;  %v351_v7 = vld [vmem:[%s4968_s8 + $0x50] sm:$0xff]  ;;  %v231_v8 = vld [vmem:[%s4958_s29 + $0x8] sm:$0xff]  ;;  %vm990_vm5 = vcmask 64512   ;;  %s4917_s21 = smov 96   ;;  %s6009_s14 = sld [smem:[#allocation30_spill]] }
  0x91   :  { %4045 = vmatpush3.msra.mxu0 %v233_v4  ;;  %4055 = vmatprep.subr.mxu1 %v352_v5  ;;  %v350_v9 = vld [vmem:[%s4968_s8 + $0x48] sm:$0xff]  ;;  %v230_v10 = vld [vmem:[%s4958_s29] sm:$0xff]  ;;  %v348_v13 = vld [vmem:[%s4968_s8 + $0x38] sm:$0xff]  ;;  %s6007_s29 = sld [smem:[#allocation25_spill]] }
  0x92   :  { %4046 = vmatprep.subr.mxu0 %v5943_v2  ;;  %4056 = vmatpush3.msra.mxu1 %v352_v5  ;;  %v349_v11 = vld [vmem:[%s4968_s8 + $0x40] sm:$0xff]  ;;  %v347_v15 = vld [vmem:[%s4968_s8 + $0x30] sm:$0xff]  ;;  %v346_v16 = vld [vmem:[%s4968_s8 + $0x28] sm:$0xff]  ;;  %s6011_s24 = sld [smem:[#allocation32_spill]] }
  0x93   :  { %4047 = vmatpush3.msra.mxu0 %v232_v6  ;;  %4057 = vmatprep.subr.mxu1 %v351_v7  ;;  %v229_v12 = vld [vmem:[#allocation10] sm:$0xff]  ;;  %v879_v18 = vld [vmem:[%s4928_s5 + $0x10] sm:$0xff]  ;;  %v878_v20 = vld [vmem:[%s4928_s5 + $0x8] sm:$0xff]  ;;  %s6015_s1 = sld [smem:[#allocation35_spill]] }
  0x94   :  { %4048 = vmatprep.subr.mxu0 %v5943_v2  ;;  %4058 = vmatpush3.msra.mxu1 %v351_v7  ;;  %v325_v14 = vld [vmem:[%s4953_s25] sm:$0xff]  ;;  %v344_v21 = vld [vmem:[%s4968_s8 + $0x18] sm:$0xff]  ;;  %v343_v23 = vld [vmem:[%s4968_s8 + $0x10] sm:$0xff]  ;;  %s6016_s11 = sld [smem:[#allocation31_spill]] }
  0x95   :  { %4049 = vmatpush3.msra.mxu0 %v231_v8  ;;  %4059 = vmatprep.subr.mxu1 %v350_v9  ;;  %v877_v17 = vld [vmem:[%s4928_s5] sm:$0xff]  ;;  %v880_v22 = vld [vmem:[%s4928_s5 + $0x18] sm:$0xff]  ;;  %v342_v25 = vld [vmem:[%s4968_s8 + $0x8] sm:$0xff]  ;;  %s6017_s6 = sld [smem:[#allocation33_spill]] }
  0x96   :  { %4050 = vmatprep.subr.mxu0 %v5943_v2  ;;  %4060 = vmatpush3.msra.mxu1 %v350_v9  ;;  %v345_v19 = vld [vmem:[%s4968_s8 + $0x20] sm:$0xff]  ;;  %v882_v26 = vld [vmem:[%s4928_s5 + $0x28] sm:$0xff]  ;;  %v883_v28 = vld [vmem:[%s4928_s5 + $0x30] sm:$0xff]  ;;  %s6018_s16 = sld [smem:[#allocation37_spill]] }
  0x97   :  { %4051 = vmatpush3.msra.mxu0 %v230_v10  ;;  %4061 = vmatprep.subr.mxu1 %v349_v11  ;;  %v881_v24 = vld [vmem:[%s4928_s5 + $0x20] sm:$0xff]  ;;  %v326_v29 = vld [vmem:[%s4953_s25 + $0x8] sm:$0xff]  ;;  %v884_v30 = vld [vmem:[%s4928_s5 + $0x38] sm:$0xff]  ;;  %s6019_s18 = sld [smem:[#allocation36_spill]] }
  0x98   :  { %4053 = vmatmul.mubr.msk.f32.vlgmr.msra.gmra.mxu0 %vm241_vm0, %v229_v12  ;;  %4062 = vmatpush3.msra.mxu1 %v349_v11  ;;  %v341_v27 = vld [vmem:[%s4968_s8] sm:$0xff]  ;;  %v327_v31 = vld [vmem:[%s4953_s25 + $0x10] sm:$0xff]  ;;  %v328_v33 = vld [vmem:[%s4953_s25 + $0x18] sm:$0xff]  ;;  %s6008_s8 = sld [smem:[#allocation27_spill]] }
  0x99   :  { %4063 = vmatprep.subr.mxu1 %v348_v13  ;;  %4079 = vmatprep.mubr.msk.f32.mxu1 %vm360_vm2, %v325_v14  ;;  %v885_v32 = vld [vmem:[%s4928_s5 + $0x40] sm:$0xff]  ;;  %v886_v34 = vld [vmem:[%s4928_s5 + $0x48] sm:$0xff]  ;;  %v887_v36 = vld [vmem:[%s4928_s5 + $0x50] sm:$0xff]  ;;  %s6020_s20 = sld [smem:[#allocation38_spill]] }
  0x9a   :  { %4064 = vmatpush3.msra.mxu1 %v348_v13  ;;  %894 = vperm.xlu0 %4493, %v877_v17   ;;  %v329_v35 = vld [vmem:[%s4953_s25 + $0x20] sm:$0xff]  ;;  %v330_v37 = vld [vmem:[%s4953_s25 + $0x28] sm:$0xff]  ;;  %v888_v38 = vld [vmem:[%s4928_s5 + $0x58] sm:$0xff]  ;;  %s6021_s22 = sld [smem:[#allocation41_spill]] }
  0x9b   :  { %4065 = vmatprep.subr.mxu1 %v347_v15  ;;  %900 = vperm.xlu1 %4494, %v879_v18   ;;  %v331_v39 = vld [vmem:[%s4953_s25 + $0x30] sm:$0xff]  ;;  %v889_v40 = vld [vmem:[%s4928_s5 + $0x60] sm:$0xff]  ;;  %v332_v41 = vld [vmem:[%s4953_s25 + $0x38] sm:$0xff]  ;;  %s6023_s13 = sld [smem:[#allocation39_spill]] }
  0x9c   :  { %4066 = vmatpush3.msra.mxu1 %v347_v15  ;;  %v890_v42 = vld [vmem:[%s4928_s5 + $0x68] sm:$0xff]  ;;  %v333_v43 = vld [vmem:[%s4953_s25 + $0x40] sm:$0xff]  ;;  %v891_v44 = vld [vmem:[%s4928_s5 + $0x70] sm:$0xff]  ;;  %s6024_s26 = sld [smem:[#allocation40_spill]] }
  0x9d   :  { %4067 = vmatprep.subr.mxu1 %v346_v16  ;;  %v334_v45 = vld [vmem:[%s4953_s25 + $0x48] sm:$0xff]  ;;  %v892_v46 = vld [vmem:[%s4928_s5 + $0x78] sm:$0xff]  ;;  %v335_v47 = vld [vmem:[%s4953_s25 + $0x50] sm:$0xff]  ;;  %s4916_s5 = smov 32  }
  0x9e   :  { %4068 = vmatpush3.msra.mxu1 %v346_v16  ;;  %897 = vperm.xlu0 %4493, %v878_v20   ;;  %v336_v48 = vld [vmem:[%s4953_s25 + $0x58] sm:$0xff]  ;;  %v337_v49 = vld [vmem:[%s4953_s25 + $0x60] sm:$0xff]  ;;  %v338_v50 = vld [vmem:[%s4953_s25 + $0x68] sm:$0xff] }
  0x9f   :  { %4069 = vmatprep.subr.mxu1 %v345_v19  ;;  %903 = vperm.xlu1 %4494, %v880_v22   ;;  %v339_v51 = vld [vmem:[%s4953_s25 + $0x70] sm:$0xff]  ;;  %v340_v52 = vld [vmem:[%s4953_s25 + $0x78] sm:$0xff]  ;;  %v671_v55 = vld [vmem:[%s4978_s19 + $0x28] sm:$0xff]  ;;  %s5991_s25 = sld [smem:[#allocation24_spill]] }
  0xa0   :  { %4070 = vmatpush3.msra.mxu1 %v345_v19  ;;  %v673_v53 = vld [vmem:[%s4978_s19 + $0x38] sm:$0xff]  ;;  %v672_v54 = vld [vmem:[%s4978_s19 + $0x30] sm:$0xff]  ;;  %v670_v56 = vld [vmem:[%s4978_s19 + $0x20] sm:$0xff] }
  0xa1   :  { %4071 = vmatprep.subr.mxu1 %v344_v21  ;;  %4103 = vmatprep.subr.mxu0 %v673_v53  ;;  %v669_v57 = vld [vmem:[%s4978_s19 + $0x18] sm:$0xff]  ;;  %v668_v58 = vld [vmem:[%s4978_s19 + $0x10] sm:$0xff]  ;;  %v667_v59 = vld [vmem:[%s4978_s19 + $0x8] sm:$0xff] }
  0xa2   :  { %4072 = vmatpush3.msra.mxu1 %v344_v21  ;;  %906 = vperm.xlu0 %4493, %v881_v24   ;;  %v666_v60 = vld [vmem:[%s4978_s19] sm:$0xff]  ;;  %v5195_v4 = vld [vmem:[#allocation15] ss:$0 sm:$0xff]  ;;  %s6010_s19 = sld [smem:[#allocation29_spill]] }
  0xa3   :  { %4073 = vmatprep.subr.mxu1 %v343_v23  ;;  %909 = vperm.xlu1 %4494, %v882_v26   ;;  %v3691_v61 = vld [vmem:[#allocation13] ss:$0 sm:$0xff] }
  0xa4   :  { %4074 = vmatpush3.msra.mxu1 %v343_v23  ;;  %4104 = vmatpush3.msra.mxu0 %v673_v53 }
  0xa5   :  { %4075 = vmatprep.subr.mxu1 %v342_v25  ;;  %4105 = vmatprep.subr.mxu0 %v672_v54 }
  0xa6   :  { %4076 = vmatpush3.msra.mxu1 %v342_v25  ;;  %912 = vperm.xlu0 %4493, %v883_v28  }
  0xa7   :  { %4077 = vmatprep.subr.mxu1 %v341_v27  ;;  %915 = vperm.xlu1 %4494, %v884_v30  }
  0xa8   :  { %4078 = vmatpush3.msra.mxu1 %v341_v27  ;;  %4106 = vmatpush3.msra.mxu0 %v672_v54 }
  0xa9   :  { %4080 = vmatmul.mubr.msk.f32.vlgmr.msra.gmra.mxu1 %vm360_vm2, %v326_v29  ;;  %4107 = vmatprep.subr.mxu0 %v671_v55 }
  0xaa   :  { %4082 = vmatprep.mubr.msk.f32.mxu1 %vm360_vm2, %v327_v31  ;;  %918 = vperm.xlu0 %4493, %v885_v32  }
  0xab   :  { %921 = vperm.xlu1 %4494, %v886_v34   ;;  %4108 = vmatpush3.msra.mxu0 %v671_v55 }
  0xac   :  { %4109 = vmatprep.subr.mxu0 %v670_v56 }
  0xad   :  { %4083 = vmatmul.mubr.msk.f32.gmra.mxu1 %vm360_vm2, %v328_v33  ;;  %4110 = vmatpush3.msra.mxu0 %v670_v56 }
  0xae   :  { %4085 = vmatprep.mubr.msk.f32.mxu1 %vm360_vm2, %v329_v35  ;;  %924 = vperm.xlu0 %4493, %v887_v36  }
  0xaf   :  { %927 = vperm.xlu1 %4494, %v888_v38   ;;  %4111 = vmatprep.subr.mxu0 %v669_v57 }
  0xb0   :  { %4112 = vmatpush3.msra.mxu0 %v669_v57 }
  0xb1   :  { %4086 = vmatmul.mubr.msk.f32.gmra.mxu1 %vm360_vm2, %v330_v37  ;;  %4113 = vmatprep.subr.mxu0 %v668_v58 }
  0xb2   :  { %4088 = vmatprep.mubr.msk.f32.mxu1 %vm360_vm2, %v331_v39  ;;  %930 = vperm.xlu0 %4493, %v889_v40  }
  0xb3   :  { %933 = vperm.xlu1 %4494, %v890_v42   ;;  %4114 = vmatpush3.msra.mxu0 %v668_v58 }
  0xb4   :  { %4115 = vmatprep.subr.mxu0 %v667_v59 }
  0xb5   :  { %4089 = vmatmul.mubr.msk.f32.gmra.mxu1 %vm360_vm2, %v332_v41  ;;  %4116 = vmatpush3.msra.mxu0 %v667_v59 }
  0xb6   :  { %4091 = vmatprep.mubr.msk.f32.mxu1 %vm360_vm2, %v333_v43  ;;  %936 = vperm.xlu0 %4493, %v891_v44  }
  0xb7   :  { %939 = vperm.xlu1 %4494, %v892_v46   ;;  %4117 = vmatprep.subr.mxu0 %v666_v60 }
  0xb8   :  { %4118 = vmatpush3.msra.mxu0 %v666_v60 }
  0xb9   :  { %4092 = vmatmul.mubr.msk.f32.gmra.mxu1 %vm360_vm2, %v334_v45 }
  0xba   :  { %4094 = vmatprep.mubr.msk.f32.mxu1 %vm360_vm2, %v335_v47 }
  0xbd   :  { %4095 = vmatmul.mubr.msk.f32.gmra.mxu1 %vm360_vm2, %v336_v48 }
  0xbe   :  { %4097 = vmatprep.mubr.msk.f32.mxu1 %vm360_vm2, %v337_v49 }
  0xc1   :  { %4098 = vmatmul.mubr.msk.f32.gmra.mxu1 %vm360_vm2, %v338_v50 }
  0xc2   :  { %4100 = vmatprep.mubr.msk.f32.mxu1 %vm360_vm2, %v339_v51 }
  0xc5   :  { %4101 = vmatmul.mubr.msk.f32.gmra.mxu1 %vm360_vm2, %v340_v52 }
 0x158   :  { %v311_v62 = vpop.f32.mrf.mxu0 }
 0x159   :  { %v312_v63 = vadd.f32 %v3691_v61, %v311_v62 }
 0x15a   :  { %v4054_v0 = vpop.f32.mrf.mxu0 }
 0x15b   :  { %v315_v1 = vsub.f32 0.0, %v312_v63 }
 0x15d   :  { %v316_v3 = vmul.f32 1.442695, %v315_v1 }
 0x15f   :  { %4495 = vpow2.f32 %v316_v3 }
 0x169   :  { %v4081_v5 = vpop.f32.mrf.mxu1 }
 0x16a   :  { %v5198_v6 = vadd.f32 %v4081_v5, %v5195_v4 }
 0x16b   :  { %v475_v7 = vpop.f32.mrf.mxu1 }
 0x16c   :  { %v4496_v8 = vpop.eup %4495  ;;  %v555_v9 = vsub.f32 0.0, %v5198_v6  ;;  %v5202_v10 = vadd.f32 %v5195_v4, %v475_v7 }
 0x16d   :  { %v318_v11 = vadd.f32 1.0, %v4496_v8  ;;  %v4084_v12 = vpop.f32.mrf.mxu1 }
 0x16e   :  { %v572_v13 = vmul.f32 1.442695, %v555_v9  ;;  %v554_v14 = vsub.f32 0.0, %v5202_v10  ;;  %v5206_v15 = vadd.f32 %v4084_v12, %v5195_v4 }
 0x16f   :  { %4497 = vrcp.f32 %v318_v11  ;;  %v485_v16 = vpop.f32.mrf.mxu1 }
 0x170   :  { %4499 = vpow2.f32 %v572_v13  ;;  %v570_v17 = vmul.f32 1.442695, %v554_v14  ;;  %v557_v18 = vsub.f32 0.0, %v5206_v15  ;;  %v5210_v19 = vadd.f32 %v5195_v4, %v485_v16 }
 0x171   :  { %v4087_v20 = vpop.f32.mrf.mxu1 }
 0x172   :  { %4501 = vpow2.f32 %v570_v17  ;;  %v576_v21 = vmul.f32 1.442695, %v557_v18  ;;  %v556_v22 = vsub.f32 0.0, %v5210_v19  ;;  %v5214_v23 = vadd.f32 %v4087_v20, %v5195_v4 }
 0x173   :  { %v495_v24 = vpop.f32.mrf.mxu1 }
 0x174   :  { %4503 = vpow2.f32 %v576_v21  ;;  %v574_v25 = vmul.f32 1.442695, %v556_v22  ;;  %v559_v26 = vsub.f32 0.0, %v5214_v23  ;;  %v5218_v27 = vadd.f32 %v5195_v4, %v495_v24 }
 0x175   :  { %v4090_v28 = vpop.f32.mrf.mxu1 }
 0x176   :  { %4505 = vpow2.f32 %v574_v25  ;;  %v580_v29 = vmul.f32 1.442695, %v559_v26  ;;  %v558_v30 = vsub.f32 0.0, %v5218_v27  ;;  %v5222_v31 = vadd.f32 %v4090_v28, %v5195_v4 }
 0x177   :  { %v505_v32 = vpop.f32.mrf.mxu1 }
 0x178   :  { %4507 = vpow2.f32 %v580_v29  ;;  %v578_v33 = vmul.f32 1.442695, %v558_v30  ;;  %v561_v34 = vsub.f32 0.0, %v5222_v31  ;;  %v5226_v35 = vadd.f32 %v5195_v4, %v505_v32 }
 0x179   :  { %v4093_v36 = vpop.f32.mrf.mxu1 }
 0x17a   :  { %4509 = vpow2.f32 %v578_v33  ;;  %v584_v37 = vmul.f32 1.442695, %v561_v34  ;;  %v560_v38 = vsub.f32 0.0, %v5226_v35  ;;  %v5230_v39 = vadd.f32 %v4093_v36, %v5195_v4 }
 0x17b   :  { %v515_v40 = vpop.f32.mrf.mxu1 }
 0x17c   :  { %v4498_v41 = vpop.eup %4497  ;;  %4511 = vpow2.f32 %v584_v37  ;;  %v582_v42 = vmul.f32 1.442695, %v560_v38  ;;  %v563_v43 = vsub.f32 0.0, %v5230_v39  ;;  %v5234_v44 = vadd.f32 %v5195_v4, %v515_v40 }
 0x17d   :  { %v4500_v45 = vpop.eup %4499  ;;  %v321_v46 = vmul.f32 %v4498_v41, %v312_v63  ;;  %v4096_v47 = vpop.f32.mrf.mxu1 }
 0x17e   :  { %v603_v48 = vadd.f32 1.0, %v4500_v45  ;;  %4513 = vpow2.f32 %v582_v42  ;;  %v588_v49 = vmul.f32 1.442695, %v563_v43  ;;  %v562_v50 = vsub.f32 0.0, %v5234_v44 }
 0x17f   :  { %v4502_v51 = vpop.eup %4501  ;;  %322 = vst.msk [vmem:[#allocation2] sm:$0xff] %vm241_vm0, %v321_v46  ;;  %v5239_v52 = vadd.f32 %v4096_v47, %v5195_v4  ;;  %v525_v53 = vpop.f32.mrf.mxu1 }
 0x180   :  { %4515 = vrcp.f32 %v603_v48  ;;  %v602_v54 = vadd.f32 1.0, %v4502_v51  ;;  %v586_v55 = vmul.f32 1.442695, %v562_v50  ;;  %v5242_v56 = vadd.f32 %v5195_v4, %v525_v53 }
 0x181   :  { %v4504_v57 = vpop.eup %4503  ;;  %4517 = vpow2.f32 %v588_v49  ;;  %v565_v58 = vsub.f32 0.0, %v5239_v52  ;;  %v4099_v59 = vpop.f32.mrf.mxu1 }
 0x182   :  { %4519 = vrcp.f32 %v602_v54  ;;  %v605_v60 = vadd.f32 1.0, %v4504_v57  ;;  %v564_v61 = vsub.f32 0.0, %v5242_v56  ;;  %v5247_v62 = vadd.f32 %v4099_v59, %v5195_v4 }
 0x183   :  { %v4506_v63 = vpop.eup %4505  ;;  %4521 = vpow2.f32 %v586_v55  ;;  %v592_v0 = vmul.f32 1.442695, %v565_v58  ;;  %v535_v1 = vpop.f32.mrf.mxu1 }
 0x184   :  { %4523 = vrcp.f32 %v605_v60  ;;  %v604_v3 = vadd.f32 1.0, %v4506_v63  ;;  %v590_v5 = vmul.f32 1.442695, %v564_v61  ;;  %v567_v7 = vsub.f32 0.0, %v5247_v62 }
 0x185   :  { %v4508_v8 = vpop.eup %4507  ;;  %4525 = vpow2.f32 %v592_v0  ;;  %v5251_v9 = vadd.f32 %v5195_v4, %v535_v1  ;;  %v4102_v11 = vpop.f32.mrf.mxu1 }
 0x186   :  { %4527 = vrcp.f32 %v604_v3  ;;  %v607_v12 = vadd.f32 1.0, %v4508_v8  ;;  %v596_v13 = vmul.f32 1.442695, %v567_v7  ;;  %v5254_v14 = vadd.f32 %v4102_v11, %v5195_v4  ;;  %v989_v16 = vld [vmem:[#allocation2] sm:$0xff]  ;;  %v895_v3 = vpop.permute.xlu0 %894  ;;  %v901_v7 = vpop.permute.xlu1 %900 }
 0x187   :  { %v4510_v17 = vpop.eup %4509  ;;  %4529 = vpow2.f32 %v590_v5  ;;  %v566_v18 = vsub.f32 0.0, %v5251_v9  ;;  %v545_v20 = vpop.f32.mrf.mxu1  ;;  %4143 = vmatprep.subr.mxu0 %v989_v16 }
 0x188   :  { %4531 = vrcp.f32 %v607_v12  ;;  %v606_v21 = vadd.f32 1.0, %v4510_v17  ;;  %v569_v22 = vsub.f32 0.0, %v5254_v14  ;;  %v5259_v24 = vadd.f32 %v5195_v4, %v545_v20 }
 0x189   :  { %v4512_v25 = vpop.eup %4511  ;;  %4533 = vpow2.f32 %v596_v13  ;;  %v594_v26 = vmul.f32 1.442695, %v566_v18 }
 0x18a   :  { %4535 = vrcp.f32 %v606_v21  ;;  %v609_v28 = vadd.f32 1.0, %v4512_v25  ;;  %v600_v29 = vmul.f32 1.442695, %v569_v22  ;;  %v568_v30 = vsub.f32 0.0, %v5259_v24  ;;  %v898_v13 = vpop.permute.xlu0 %897  ;;  %v904_v18 = vpop.permute.xlu1 %903 }
 0x18b   :  { %v4514_v32 = vpop.eup %4513  ;;  %4537 = vpow2.f32 %v594_v26 }
 0x18c   :  { %4539 = vrcp.f32 %v609_v28  ;;  %v608_v33 = vadd.f32 1.0, %v4514_v32  ;;  %v598_v34 = vmul.f32 1.442695, %v568_v30 }
 0x18d   :  { %v4516_v36 = vpop.eup %4515  ;;  %4541 = vpow2.f32 %v600_v29 }
 0x18e   :  { %v4518_v37 = vpop.eup %4517  ;;  %4543 = vrcp.f32 %v608_v33  ;;  %v651_v43 = vmul.f32 %v4516_v36, %v5198_v6 }
 0x18f   :  { %v4520_v38 = vpop.eup %4519  ;;  %v611_v4 = vadd.f32 1.0, %v4518_v37  ;;  %4545 = vpow2.f32 %v598_v34 }
 0x190   :  { %v4522_v40 = vpop.eup %4521  ;;  %v650_v41 = vmul.f32 %v4520_v38, %v5202_v10 }
 0x191   :  { %v4524_v42 = vpop.eup %4523  ;;  %v610_v45 = vadd.f32 1.0, %v4522_v40  ;;  %4547 = vrcp.f32 %v611_v4 }
 0x192   :  { %v4526_v46 = vpop.eup %4525  ;;  %4119 = vmatprep.mubr.msk.f32.mxu0 %vm681_vm3, %v650_v41  ;;  %v653_v10 = vmul.f32 %v4524_v42, %v5206_v15 }
 0x193   :  { %v4528_v47 = vpop.eup %4527  ;;  %4549 = vrcp.f32 %v610_v45  ;;  %v613_v48 = vadd.f32 1.0, %v4526_v46  ;;  %4120 = vmatmul.mubr.msk.f32.vlgmr.msra.gmra.mxu0 %vm681_vm3, %v651_v43 }
 0x194   :  { %v4530_v49 = vpop.eup %4529  ;;  %v652_v50 = vmul.f32 %v4528_v47, %v5210_v19  ;;  %4144 = vmatpush3.msra.mxu0 %v989_v16 }
 0x195   :  { %v4532_v51 = vpop.eup %4531  ;;  %v612_v53 = vadd.f32 1.0, %v4530_v49  ;;  %4551 = vrcp.f32 %v613_v48 }
 0x196   :  { %v4534_v54 = vpop.eup %4533  ;;  %4122 = vmatprep.mubr.msk.f32.mxu0 %vm681_vm3, %v652_v50  ;;  %v655_v19 = vmul.f32 %v4532_v51, %v5214_v23 }
 0x197   :  { %v4536_v6 = vpop.eup %4535  ;;  %4553 = vrcp.f32 %v612_v53  ;;  %v615_v55 = vadd.f32 1.0, %v4534_v54  ;;  %4123 = vmatmul.mubr.msk.f32.gmra.mxu0 %vm681_vm3, %v653_v10 }
 0x198   :  { %v4538_v57 = vpop.eup %4537  ;;  %v654_v58 = vmul.f32 %v4536_v6, %v5218_v27 }
 0x199   :  { %v4540_v59 = vpop.eup %4539  ;;  %v614_v60 = vadd.f32 1.0, %v4538_v57  ;;  %4555 = vrcp.f32 %v615_v55  ;;  %v1283_v55 = vld [vmem:[%s4988_s30 + $0x18] sm:$0xff]  ;;  %v1282_v57 = vld [vmem:[%s4988_s30 + $0x10] sm:$0xff] }
 0x19a   :  { %v4542_v61 = vpop.eup %4541  ;;  %4125 = vmatprep.mubr.msk.f32.mxu0 %vm681_vm3, %v654_v58  ;;  %v657_v5 = vmul.f32 %v4540_v59, %v5222_v31  ;;  %4169 = vmatprep.subr.mxu1 %v1283_v55  ;;  %v1281_v58 = vld [vmem:[%s4988_s30 + $0x8] sm:$0xff]  ;;  %v1280_v59 = vld [vmem:[%s4988_s30] sm:$0xff]  ;;  %s6012_s30 = sld [smem:[#allocation26_spill]] }
 0x19b   :  { %v4544_v15 = vpop.eup %4543  ;;  %4557 = vrcp.f32 %v614_v60  ;;  %v617_v63 = vadd.f32 1.0, %v4542_v61  ;;  %4126 = vmatmul.mubr.msk.f32.gmra.mxu0 %vm681_vm3, %v655_v19  ;;  %4170 = vmatpush3.msra.mxu1 %v1283_v55 }
 0x19c   :  { %v4546_v0 = vpop.eup %4545  ;;  %v656_v1 = vmul.f32 %v4544_v15, %v5226_v35  ;;  %v5942_v35 = vlaneseq  ;;  %4171 = vmatprep.subr.mxu1 %v1282_v57 }
 0x19d   :  { %v616_v27 = vadd.f32 1.0, %v4546_v0  ;;  %4559 = vrcp.f32 %v617_v63  ;;  %4172 = vmatpush3.msra.mxu1 %v1282_v57 }
 0x19e   :  { %4128 = vmatprep.mubr.msk.f32.mxu0 %vm681_vm3, %v656_v1  ;;  %v4548_v23 = vpop.eup %4547  ;;  %v5285_v22 = vand.u32 127, %v5942_v35  ;;  %4173 = vmatprep.subr.mxu1 %v1281_v58 }
 0x19f   :  { %4561 = vrcp.f32 %v616_v27  ;;  %4129 = vmatmul.mubr.msk.f32.gmra.mxu0 %vm681_vm3, %v657_v5  ;;  %v659_v12 = vmul.f32 %v4548_v23, %v5230_v39  ;;  %4174 = vmatpush3.msra.mxu1 %v1281_v58 }
 0x1a0   :  { %v4550_v8 = vpop.eup %4549  ;;  %5977 = vst [vmem:[#allocation42_spill] sm:$0xff] %v5285_v22  ;;  %vm941_vm4 = vcmp.eq.s32.totalorder %v5285_v22, %v895_v3  ;;  %vm943_vm6 = vcmp.eq.s32.totalorder %v5285_v22, %v901_v7  ;;  %vm942_vm7 = vcmp.eq.s32.totalorder %v5285_v22, %v898_v13  ;;  %vm944_vm8 = vcmp.eq.s32.totalorder %v5285_v22, %v904_v18 }
 0x1a1   :  { %v658_v11 = vmul.f32 %v4550_v8, %v5234_v44  ;;  %v907_v44 = vpop.permute.xlu0 %906  ;;  %v3727_v32 = vsel %vm941_vm4, 1.0, %v5943_v2  ;;  %v3730_v34 = vsel %vm944_vm8, 1.0, %v5943_v2  ;;  %4175 = vmatprep.subr.mxu1 %v1280_v59 }
 0x1a2   :  { %v4552_v16 = vpop.eup %4551  ;;  %vm945_vm9 = vcmp.eq.s32.totalorder %v5285_v22, %v907_v44  ;;  %4176 = vmatpush3.msra.mxu1 %v1280_v59 }
 0x1a3   :  { %4131 = vmatprep.mubr.msk.f32.mxu0 %vm681_vm3, %v658_v11  ;;  %v661_v20 = vmul.f32 %v4552_v16, %v5239_v52  ;;  %v3731_v37 = vsel %vm945_vm9, 1.0, %v5943_v2  ;;  %4233 = vmatprep.subr.mxu1 %v5943_v2  ;;  %v5358_v16 = vld [vmem:[#allocation16] ss:$0 sm:$0xff] }
 0x1a4   :  { %v4554_v31 = vpop.eup %4553  ;;  %4132 = vmatmul.mubr.msk.f32.gmra.mxu0 %vm681_vm3, %v659_v12 }
 0x1a5   :  { %v660_v17 = vmul.f32 %v4554_v31, %v5242_v56  ;;  %v910_v56 = vpop.permute.xlu1 %909  ;;  %v913_v33 = vpop.permute.xlu0 %912 }
 0x1a6   :  { %v4556_v21 = vpop.eup %4555  ;;  %vm946_vm10 = vcmp.eq.s32.totalorder %v5285_v22, %v910_v56  ;;  %vm947_vm11 = vcmp.eq.s32.totalorder %v5285_v22, %v913_v33 }
 0x1a7   :  { %4134 = vmatprep.mubr.msk.f32.mxu0 %vm681_vm3, %v660_v17  ;;  %v663_v26 = vmul.f32 %v4556_v21, %v5247_v62  ;;  %v3732_v4 = vsel %vm946_vm10, 1.0, %v5943_v2  ;;  %v3733_v40 = vsel %vm947_vm11, 1.0, %v5943_v2  ;;  %vm3214_vm10 = vcmask 59392  }
 0x1a8   :  { %v4558_v39 = vpop.eup %4557  ;;  %4135 = vmatmul.mubr.msk.f32.gmra.mxu0 %vm681_vm3, %v661_v20 }
 0x1a9   :  { %v662_v25 = vmul.f32 %v4558_v39, %v5251_v9  ;;  %v916_v62 = vpop.permute.xlu1 %915  ;;  %v3729_v9 = vsel %vm943_vm6, 1.0, %v5943_v2 }
 0x1aa   :  { %v4560_v28 = vpop.eup %4559  ;;  %vm948_vm12 = vcmp.eq.s32.totalorder %v5285_v22, %v916_v62 }
 0x1ab   :  { %4137 = vmatprep.mubr.msk.f32.mxu0 %vm681_vm3, %v662_v25  ;;  %v665_v30 = vmul.f32 %v4560_v28, %v5254_v14  ;;  %v919_v14 = vpop.permute.xlu0 %918  ;;  %v3734_v42 = vsel %vm948_vm12, 1.0, %v5943_v2  ;;  %vm3299_vm12 = vcmask 1042432  }
 0x1ac   :  { %v4562_v52 = vpop.eup %4561  ;;  %4138 = vmatmul.mubr.msk.f32.gmra.mxu0 %vm681_vm3, %v663_v26  ;;  %vm949_vm13 = vcmp.eq.s32.totalorder %v5285_v22, %v919_v14 }
 0x1ad   :  { %v664_v29 = vmul.f32 %v4562_v52, %v5259_v24  ;;  %v3728_v24 = vsel %vm942_vm7, 1.0, %v5943_v2  ;;  %v922_v36 = vpop.permute.xlu1 %921  ;;  %v3735_v43 = vsel %vm949_vm13, 1.0, %v5943_v2  ;;  %vm3295_vm13 = vcmask 23552  }
 0x1ae   :  { %vm950_vm14 = vcmp.eq.s32.totalorder %v5285_v22, %v922_v36 }
 0x1af   :  { %4140 = vmatprep.mubr.msk.f32.mxu0 %vm681_vm3, %v664_v29  ;;  %v925_v38 = vpop.permute.xlu0 %924  ;;  %v3736_v46 = vsel %vm950_vm14, 1.0, %v5943_v2 }
 0x1b0   :  { %4141 = vmatmul.mubr.msk.f32.gmra.mxu0 %vm681_vm3, %v665_v30  ;;  %vm951_vm15 = vcmp.eq.s32.totalorder %v5285_v22, %v925_v38 }
 0x1b1   :  { %4145 = vmatprep.mubr.msk.f32.mxu0 %vm990_vm5, %v3727_v32  ;;  %v928_v41 = vpop.permute.xlu1 %927  ;;  %v3737_v48 = vsel %vm951_vm15, 1.0, %v5943_v2 }
 0x1b2   :  { %vm952_vm2 = vcmp.eq.s32.totalorder %v5285_v22, %v928_v41 }
 0x1b3   :  { %v931_v45 = vpop.permute.xlu0 %930  ;;  %v3738_v50 = vsel %vm952_vm2, 1.0, %v5943_v2 }
 0x1b4   :  { %4146 = vmatmul.mubr.msk.f32.vlgmr.msra.gmra.mxu0 %vm990_vm5, %v3728_v24  ;;  %vm953_vm3 = vcmp.eq.s32.totalorder %v5285_v22, %v931_v45 }
 0x1b5   :  { %4148 = vmatprep.mubr.msk.f32.mxu0 %vm990_vm5, %v3729_v9  ;;  %v934_v47 = vpop.permute.xlu1 %933  ;;  %v3739_v51 = vsel %vm953_vm3, 1.0, %v5943_v2 }
 0x1b6   :  { %vm954_vm4 = vcmp.eq.s32.totalorder %v5285_v22, %v934_v47 }
 0x1b7   :  { %v937_v49 = vpop.permute.xlu0 %936  ;;  %v3740_v53 = vsel %vm954_vm4, 1.0, %v5943_v2 }
 0x1b8   :  { %4149 = vmatmul.mubr.msk.f32.gmra.mxu0 %vm990_vm5, %v3730_v34  ;;  %vm955_vm6 = vcmp.eq.s32.totalorder %v5285_v22, %v937_v49 }
 0x1b9   :  { %4151 = vmatprep.mubr.msk.f32.mxu0 %vm990_vm5, %v3731_v37  ;;  %v940_v10 = vpop.permute.xlu1 %939  ;;  %v3741_v54 = vsel %vm955_vm6, 1.0, %v5943_v2 }
 0x1ba   :  { %vm956_vm7 = vcmp.eq.s32.totalorder %v5285_v22, %v940_v10 }
 0x1bb   :  { %v3742_v6 = vsel %vm956_vm7, 1.0, %v5943_v2 }
 0x1bc   :  { %4152 = vmatmul.mubr.msk.f32.gmra.mxu0 %vm990_vm5, %v3732_v4 }
 0x1bd   :  { %4154 = vmatprep.mubr.msk.f32.mxu0 %vm990_vm5, %v3733_v40 }
 0x1c0   :  { %4155 = vmatmul.mubr.msk.f32.gmra.mxu0 %vm990_vm5, %v3734_v42 }
 0x1c1   :  { %4157 = vmatprep.mubr.msk.f32.mxu0 %vm990_vm5, %v3735_v43 }
 0x1c4   :  { %4158 = vmatmul.mubr.msk.f32.gmra.mxu0 %vm990_vm5, %v3736_v46 }
 0x1c5   :  { %4160 = vmatprep.mubr.msk.f32.mxu0 %vm990_vm5, %v3737_v48 }
 0x1c8   :  { %4161 = vmatmul.mubr.msk.f32.gmra.mxu0 %vm990_vm5, %v3738_v50 }
 0x1c9   :  { %4163 = vmatprep.mubr.msk.f32.mxu0 %vm990_vm5, %v3739_v51 }
 0x1cc   :  { %4164 = vmatmul.mubr.msk.f32.gmra.mxu0 %vm990_vm5, %v3740_v53 }
 0x1cd   :  { %4166 = vmatprep.mubr.msk.f32.mxu0 %vm990_vm5, %v3741_v54 }
 0x1d0   :  { %4167 = vmatmul.mubr.msk.f32.gmra.mxu0 %vm990_vm5, %v3742_v6 }
 0x253   :  { %v4121_v19 = vpop.f32.mrf.mxu0 }
 0x254   :  { %v5365_v18 = vadd.f32 %v4121_v19, %v5358_v16 }
 0x255   :  { %v796_v60 = vpop.f32.mrf.mxu0 }
 0x256   :  { %v5361_v17 = vadd.f32 %v5358_v16, %v796_v60 }
 0x257   :  { %v4124_v61 = vpop.f32.mrf.mxu0 }
 0x258   :  { %v5381_v26 = vadd.f32 %v4124_v61, %v5358_v16 }
 0x259   :  { %v806_v15 = vpop.f32.mrf.mxu0 }
 0x25a   :  { %v5375_v25 = vadd.f32 %v5358_v16, %v806_v15 }
 0x25b   :  { %v4127_v63 = vpop.f32.mrf.mxu0 }
 0x25c   :  { %v5399_v32 = vadd.f32 %v4127_v63, %v5358_v16  ;;  %v1584_v63 = vld [vmem:[%s4996_s12 + $0x18] sm:$0xff] }
 0x25d   :  { %v816_v0 = vpop.f32.mrf.mxu0  ;;  %4201 = vmatprep.subr.mxu0 %v1584_v63 }
 0x25e   :  { %v5393_v30 = vadd.f32 %v5358_v16, %v816_v0  ;;  %4202 = vmatpush3.msra.mxu0 %v1584_v63  ;;  %v1583_v0 = vld [vmem:[%s4996_s12 + $0x10] sm:$0xff] }
 0x25f   :  { %v4130_v1 = vpop.f32.mrf.mxu0  ;;  %4203 = vmatprep.subr.mxu0 %v1583_v0 }
 0x260   :  { %v5417_v34 = vadd.f32 %v4130_v1, %v5358_v16  ;;  %4204 = vmatpush3.msra.mxu0 %v1583_v0  ;;  %v1582_v1 = vld [vmem:[%s4996_s12 + $0x8] sm:$0xff] }
 0x261   :  { %v826_v3 = vpop.f32.mrf.mxu0  ;;  %4205 = vmatprep.subr.mxu0 %v1582_v1 }
 0x262   :  { %v5411_v14 = vadd.f32 %v5358_v16, %v826_v3  ;;  %4206 = vmatpush3.msra.mxu0 %v1582_v1  ;;  %v1581_v3 = vld [vmem:[%s4996_s12] sm:$0xff]  ;;  %s6013_s12 = sld [smem:[#allocation28_spill]] }
 0x263   :  { %4207 = vmatprep.subr.mxu0 %v1581_v3 }
 0x264   :  { %v4133_v5 = vpop.f32.mrf.mxu0  ;;  %4208 = vmatpush3.msra.mxu0 %v1581_v3 }
 0x265   :  { %v5435_v41 = vadd.f32 %v4133_v5, %v5358_v16  ;;  %4268 = vmatprep.subr.mxu0 %v5943_v2 }
 0x266   :  { %v836_v27 = vpop.f32.mrf.mxu0 }
 0x267   :  { %v5429_v40 = vadd.f32 %v5358_v16, %v836_v27 }
 0x268   :  { %v4136_v23 = vpop.f32.mrf.mxu0 }
 0x269   :  { %v5453_v48 = vadd.f32 %v4136_v23, %v5358_v16 }
 0x26a   :  { %v846_v7 = vpop.f32.mrf.mxu0 }
 0x26b   :  { %v5447_v47 = vadd.f32 %v5358_v16, %v846_v7 }
 0x26c   :  { %v5350_v8 = vpop.f32.mrf.mxu0 }
 0x26d   :  { %v5473_v54 = vadd.f32 %v5350_v8, %v5358_v16 }
 0x26e   :  { %v5352_v11 = vpop.f32.mrf.mxu0 }
 0x26f   :  { %v5466_v53 = vadd.f32 %v5358_v16, %v5352_v11 }
 0x270   :  { %v5354_v12 = vpop.f32.mrf.mxu0 }
 0x271   :  { %v5493_v19 = vadd.f32 %v5354_v12, %v5358_v16 }
 0x272   :  { %v5356_v13 = vpop.f32.mrf.mxu0 }
 0x273   :  { %v5486_v59 = vadd.f32 %v5358_v16, %v5356_v13 }
 0x274   :  { %v4147_v31 = vpop.f32.mrf.mxu0 }
 0x275   :  { %1218 = vrot.lane.b32.xlu1 %v4147_v31, %s4916_s5  ;;  %v5372_v39 = vmul.f32 %v4147_v31, %v5365_v18 }
 0x276   :  { %v1105_v20 = vpop.f32.mrf.mxu0 }
 0x277   :  { %v5368_v21 = vmul.f32 %v1105_v20, %v5361_v17  ;;  %1216 = vrot.lane.b32.xlu0 %v1105_v20, %s4916_s5  ;;  %5979 = vst [vmem:[#allocation44_spill] sm:$0xff] %v5372_v39 }
 0x278   :  { %v4150_v44 = vpop.f32.mrf.mxu0 }
 0x279   :  { %5978 = vst [vmem:[#allocation43_spill] sm:$0xff] %v5368_v21  ;;  %1222 = vrot.lane.b32.xlu1 %v4150_v44, %s4916_s5  ;;  %4177 = vmatprep.mubr.msk.f32.mxu1 %vm241_vm0, %v5368_v21  ;;  %v5390_v52 = vmul.f32 %v4150_v44, %v5381_v26 }
 0x27a   :  { %v1115_v28 = vpop.f32.mrf.mxu0  ;;  %4178 = vmatmul.mubr.msk.f32.vlgmr.msra.gmra.mxu1 %vm241_vm0, %v5372_v39 }
 0x27b   :  { %v5386_v56 = vmul.f32 %v1115_v28, %v5375_v25  ;;  %1220 = vrot.lane.b32.xlu0 %v1115_v28, %s4916_s5  ;;  %5981 = vst [vmem:[#allocation46_spill] sm:$0xff] %v5390_v52 }
 0x27c   :  { %v4153_v29 = vpop.f32.mrf.mxu0 }
 0x27d   :  { %5980 = vst [vmem:[#allocation45_spill] sm:$0xff] %v5386_v56  ;;  %1226 = vrot.lane.b32.xlu1 %v4153_v29, %s4916_s5  ;;  %4180 = vmatprep.mubr.msk.f32.mxu1 %vm241_vm0, %v5386_v56  ;;  %v5408_v9 = vmul.f32 %v4153_v29, %v5399_v32 }
 0x27e   :  { %v1125_v33 = vpop.f32.mrf.mxu0  ;;  %4181 = vmatmul.mubr.msk.f32.gmra.mxu1 %vm241_vm0, %v5390_v52 }
 0x27f   :  { %v5404_v62 = vmul.f32 %v1125_v33, %v5393_v30  ;;  %1224 = vrot.lane.b32.xlu0 %v1125_v33, %s4916_s5  ;;  %5983 = vst [vmem:[#allocation48_spill] sm:$0xff] %v5408_v9 }
 0x280   :  { %v4156_v24 = vpop.f32.mrf.mxu0 }
 0x281   :  { %5982 = vst [vmem:[#allocation47_spill] sm:$0xff] %v5404_v62  ;;  %1230 = vrot.lane.b32.xlu1 %v4156_v24, %s4916_s5  ;;  %4183 = vmatprep.mubr.msk.f32.mxu1 %vm241_vm0, %v5404_v62  ;;  %v5426_v38 = vmul.f32 %v4156_v24, %v5417_v34 }
 0x282   :  { %v1135_v36 = vpop.f32.mrf.mxu0  ;;  %4184 = vmatmul.mubr.msk.f32.gmra.mxu1 %vm241_vm0, %v5408_v9 }
 0x283   :  { %v5422_v37 = vmul.f32 %v1135_v36, %v5411_v14  ;;  %1228 = vrot.lane.b32.xlu0 %v1135_v36, %s4916_s5  ;;  %5985 = vst [vmem:[#allocation50_spill] sm:$0xff] %v5426_v38 }
 0x284   :  { %v4159_v4 = vpop.f32.mrf.mxu0 }
 0x285   :  { %5984 = vst [vmem:[#allocation49_spill] sm:$0xff] %v5422_v37  ;;  %1234 = vrot.lane.b32.xlu1 %v4159_v4, %s4916_s5  ;;  %4186 = vmatprep.mubr.msk.f32.mxu1 %vm241_vm0, %v5422_v37  ;;  %v5444_v45 = vmul.f32 %v4159_v4, %v5435_v41 }
 0x286   :  { %v1145_v42 = vpop.f32.mrf.mxu0  ;;  %4187 = vmatmul.mubr.msk.f32.gmra.mxu1 %vm241_vm0, %v5426_v38 }
 0x287   :  { %v5440_v43 = vmul.f32 %v1145_v42, %v5429_v40  ;;  %1232 = vrot.lane.b32.xlu0 %v1145_v42, %s4916_s5  ;;  %5987 = vst [vmem:[#allocation52_spill] sm:$0xff] %v5444_v45 }
 0x288   :  { %v4162_v46 = vpop.f32.mrf.mxu0 }
 0x289   :  { %5986 = vst [vmem:[#allocation51_spill] sm:$0xff] %v5440_v43  ;;  %1238 = vrot.lane.b32.xlu1 %v4162_v46, %s4916_s5  ;;  %4189 = vmatprep.mubr.msk.f32.mxu1 %vm241_vm0, %v5440_v43  ;;  %v5462_v51 = vmul.f32 %v4162_v46, %v5453_v48 }
 0x28a   :  { %v1155_v49 = vpop.f32.mrf.mxu0  ;;  %4190 = vmatmul.mubr.msk.f32.gmra.mxu1 %vm241_vm0, %v5444_v45 }
 0x28b   :  { %v5458_v50 = vmul.f32 %v1155_v49, %v5447_v47  ;;  %1236 = vrot.lane.b32.xlu0 %v1155_v49, %s4916_s5  ;;  %5989 = vst [vmem:[#allocation54_spill] sm:$0xff] %v5462_v51 }
 0x28c   :  { %v4165_v10 = vpop.f32.mrf.mxu0 }
 0x28d   :  { %5988 = vst [vmem:[#allocation53_spill] sm:$0xff] %v5458_v50  ;;  %1242 = vrot.lane.b32.xlu1 %v4165_v10, %s4916_s5  ;;  %4192 = vmatprep.mubr.msk.f32.mxu1 %vm241_vm0, %v5458_v50  ;;  %v5482_v57 = vmul.f32 %v4165_v10, %v5473_v54 }
 0x28e   :  { %v1165_v6 = vpop.f32.mrf.mxu0  ;;  %4193 = vmatmul.mubr.msk.f32.gmra.mxu1 %vm241_vm0, %v5462_v51 }
 0x28f   :  { %v5478_v55 = vmul.f32 %v1165_v6, %v5466_v53  ;;  %1240 = vrot.lane.b32.xlu0 %v1165_v6, %s4916_s5 }
 0x290   :  { %v4168_v58 = vpop.f32.mrf.mxu0 }
 0x291   :  { %1246 = vrot.lane.b32.xlu1 %v4168_v58, %s4916_s5  ;;  %4195 = vmatprep.mubr.msk.f32.mxu1 %vm241_vm0, %v5478_v55  ;;  %v5502_v15 = vmul.f32 %v4168_v58, %v5493_v19 }
 0x292   :  { %v1175_v60 = vpop.f32.mrf.mxu0  ;;  %4196 = vmatmul.mubr.msk.f32.gmra.mxu1 %vm241_vm0, %v5482_v57 }
 0x293   :  { %v5498_v61 = vmul.f32 %v1175_v60, %v5486_v59  ;;  %1244 = vrot.lane.b32.xlu0 %v1175_v60, %s4916_s5 }
 0x295   :  { %4198 = vmatprep.mubr.msk.f32.mxu1 %vm241_vm0, %v5498_v61 }
 0x296   :  { %4199 = vmatmul.mubr.msk.f32.gmra.mxu1 %vm241_vm0, %v5502_v15 }
 0x297   :  { %4265 = vmatprep.mubr.msk.f32.mxu1 %vm4914_vm1, %v5943_v2 }
 0x2e7   :  { %v1219_v5 = vpop.permute.xlu1 %1218 }
 0x2e8   :  { %v5516_v27 = vmul.f32 %v1219_v5, %v5365_v18 }
 0x2e9   :  { %v1217_v23 = vpop.permute.xlu0 %1216 }
 0x2ea   :  { %5990 = vst [vmem:[#allocation55_spill] sm:$0xff] %v5516_v27  ;;  %v5519_v7 = vmul.f32 %v1217_v23, %v5361_v17  ;;  %1610 = vrot.lane.b32.xlu1 %v5516_v27, %s4917_s21 }
 0x2eb   :  { %v1223_v8 = vpop.permute.xlu1 %1222 }
 0x2ec   :  { %v5524_v11 = vmul.f32 %v1223_v8, %v5381_v26  ;;  %1608 = vrot.lane.b32.xlu0 %v5519_v7, %s4917_s21 }
 0x2ed   :  { %v1221_v12 = vpop.permute.xlu0 %1220 }
 0x2ee   :  { %v5529_v13 = vmul.f32 %v1221_v12, %v5375_v25  ;;  %1614 = vrot.lane.b32.xlu1 %v5524_v11, %s4917_s21 }
 0x2ef   :  { %v1227_v16 = vpop.permute.xlu1 %1226 }
 0x2f0   :  { %v5534_v31 = vmul.f32 %v1227_v16, %v5399_v32  ;;  %1612 = vrot.lane.b32.xlu0 %v5529_v13, %s4917_s21 }
 0x2f1   :  { %v1225_v17 = vpop.permute.xlu0 %1224 }
 0x2f2   :  { %v5539_v18 = vmul.f32 %v1225_v17, %v5393_v30  ;;  %1618 = vrot.lane.b32.xlu1 %v5534_v31, %s4917_s21 }
 0x2f3   :  { %v1231_v20 = vpop.permute.xlu1 %1230 }
 0x2f4   :  { %v5544_v44 = vmul.f32 %v1231_v20, %v5417_v34  ;;  %1616 = vrot.lane.b32.xlu0 %v5539_v18, %s4917_s21 }
 0x2f5   :  { %v1229_v25 = vpop.permute.xlu0 %1228 }
 0x2f6   :  { %v5549_v26 = vmul.f32 %v1229_v25, %v5411_v14  ;;  %1622 = vrot.lane.b32.xlu1 %v5544_v44, %s4917_s21 }
 0x2f7   :  { %v1235_v28 = vpop.permute.xlu1 %1234 }
 0x2f8   :  { %v5554_v29 = vmul.f32 %v1235_v28, %v5435_v41  ;;  %1620 = vrot.lane.b32.xlu0 %v5549_v26, %s4917_s21 }
 0x2f9   :  { %v1233_v30 = vpop.permute.xlu0 %1232 }
 0x2fa   :  { %v5559_v32 = vmul.f32 %v1233_v30, %v5429_v40  ;;  %1626 = vrot.lane.b32.xlu1 %v5554_v29, %s4917_s21 }
 0x2fb   :  { %v1239_v33 = vpop.permute.xlu1 %1238 }
 0x2fc   :  { %v5564_v24 = vmul.f32 %v1239_v33, %v5453_v48  ;;  %1624 = vrot.lane.b32.xlu0 %v5559_v32, %s4917_s21 }
 0x2fd   :  { %v1237_v14 = vpop.permute.xlu0 %1236 }
 0x2fe   :  { %v5569_v34 = vmul.f32 %v1237_v14, %v5447_v47  ;;  %1630 = vrot.lane.b32.xlu1 %v5564_v24, %s4917_s21 }
 0x2ff   :  { %v1243_v36 = vpop.permute.xlu1 %1242 }
 0x300   :  { %v5574_v4 = vmul.f32 %v1243_v36, %v5473_v54  ;;  %1628 = vrot.lane.b32.xlu0 %v5569_v34, %s4917_s21 }
 0x301   :  { %v1241_v40 = vpop.permute.xlu0 %1240 }
 0x302   :  { %v5579_v41 = vmul.f32 %v1241_v40, %v5466_v53  ;;  %1634 = vrot.lane.b32.xlu1 %v5574_v4, %s4917_s21 }
 0x303   :  { %v1247_v42 = vpop.permute.xlu1 %1246 }
 0x304   :  { %v5584_v46 = vmul.f32 %v1247_v42, %v5493_v19  ;;  %1632 = vrot.lane.b32.xlu0 %v5579_v41, %s4917_s21 }
 0x305   :  { %v1245_v47 = vpop.permute.xlu0 %1244 }
 0x306   :  { %v5589_v48 = vmul.f32 %v1245_v47, %v5486_v59  ;;  %1638 = vrot.lane.b32.xlu1 %v5584_v46, %s4917_s21 }
 0x308   :  { %1636 = vrot.lane.b32.xlu0 %v5589_v48, %s4917_s21 }
 0x33a   :  { %v5613_v12 = vpop.f32.mrf.mxu1 }
 0x33c   :  { %v5615_v16 = vpop.f32.mrf.mxu1 }
 0x33e   :  { %v5617_v17 = vpop.f32.mrf.mxu1 }
 0x340   :  { %v5621_v25 = vpop.f32.mrf.mxu1 }
 0x342   :  { %v5625_v33 = vpop.f32.mrf.mxu1 }
 0x344   :  { %v5629_v40 = vpop.f32.mrf.mxu1 }
 0x35c   :  { %v1611_v49 = vpop.permute.xlu1 %1610 }
 0x35e   :  { %v1609_v10 = vpop.permute.xlu0 %1608 }
 0x35f   :  { %4209 = vmatprep.mubr.msk.f32.mxu0 %vm241_vm0, %v1609_v10 }
 0x360   :  { %v1615_v53 = vpop.permute.xlu1 %1614  ;;  %4210 = vmatmul.mubr.msk.f32.vlgmr.msra.gmra.mxu0 %vm241_vm0, %v1611_v49  ;;  %v5631_v49 = vpop.f32.mrf.mxu1 }
 0x362   :  { %v1613_v54 = vpop.permute.xlu0 %1612 }
 0x363   :  { %4212 = vmatprep.mubr.msk.f32.mxu0 %vm241_vm0, %v1613_v54  ;;  %v5633_v54 = vpop.f32.mrf.mxu1 }
 0x364   :  { %v1619_v6 = vpop.permute.xlu1 %1618  ;;  %4213 = vmatmul.mubr.msk.f32.gmra.mxu0 %vm241_vm0, %v1615_v53 }
 0x366   :  { %v1617_v58 = vpop.permute.xlu0 %1616 }
 0x367   :  { %4215 = vmatprep.mubr.msk.f32.mxu0 %vm241_vm0, %v1617_v58 }
 0x368   :  { %v1623_v59 = vpop.permute.xlu1 %1622  ;;  %4216 = vmatmul.mubr.msk.f32.gmra.mxu0 %vm241_vm0, %v1619_v6 }
 0x36a   :  { %v1621_v19 = vpop.permute.xlu0 %1620 }
 0x36b   :  { %4218 = vmatprep.mubr.msk.f32.mxu0 %vm241_vm0, %v1621_v19 }
 0x36c   :  { %v1627_v60 = vpop.permute.xlu1 %1626  ;;  %4219 = vmatmul.mubr.msk.f32.gmra.mxu0 %vm241_vm0, %v1623_v59  ;;  %v5635_v59 = vpop.f32.mrf.mxu1 }
 0x36e   :  { %v1625_v63 = vpop.permute.xlu0 %1624 }
 0x36f   :  { %4221 = vmatprep.mubr.msk.f32.mxu0 %vm241_vm0, %v1625_v63 }
 0x370   :  { %v1631_v0 = vpop.permute.xlu1 %1630  ;;  %4222 = vmatmul.mubr.msk.f32.gmra.mxu0 %vm241_vm0, %v1627_v60  ;;  %v3776_v60 = vld [vmem:[#allocation6] ss:$0 sm:$0xff] }
 0x372   :  { %v1629_v1 = vpop.permute.xlu0 %1628 }
 0x373   :  { %4224 = vmatprep.mubr.msk.f32.mxu0 %vm241_vm0, %v1629_v1  ;;  %v5637_v1 = vpop.f32.mrf.mxu1 }
 0x374   :  { %4225 = vmatmul.mubr.msk.f32.gmra.mxu0 %vm241_vm0, %v1631_v0  ;;  %v1635_v3 = vpop.permute.xlu1 %1634 }
 0x375   :  { %v5639_v22 = vpop.f32.mrf.mxu1 }
 0x376   :  { %v1633_v5 = vpop.permute.xlu0 %1632 }
 0x377   :  { %4227 = vmatprep.mubr.msk.f32.mxu0 %vm241_vm0, %v1633_v5  ;;  %v5641_v50 = vpop.f32.mrf.mxu1 }
 0x378   :  { %4228 = vmatmul.mubr.msk.f32.gmra.mxu0 %vm241_vm0, %v1635_v3  ;;  %v1639_v8 = vpop.permute.xlu1 %1638 }
 0x37a   :  { %v1637_v23 = vpop.permute.xlu0 %1636 }
 0x37b   :  { %4230 = vmatprep.mubr.msk.f32.mxu0 %vm241_vm0, %v1637_v23 }
 0x37c   :  { %4231 = vmatmul.mubr.msk.f32.gmra.mxu0 %vm241_vm0, %v1639_v8 }
 0x37d   :  { %4300 = vmatprep.mubr.msk.f32.mxu0 %vm4914_vm1, %v5943_v2 }
 0x420   :  { %v5619_v20 = vpop.f32.mrf.mxu0 }
 0x422   :  { %v5623_v28 = vpop.f32.mrf.mxu0 }
 0x424   :  { %v4214_v30 = vpop.f32.mrf.mxu0 }
 0x426   :  { %v5627_v14 = vpop.f32.mrf.mxu0 }
 0x428   :  { %v4217_v36 = vpop.f32.mrf.mxu0 }
 0x42a   :  { %v1758_v42 = vpop.f32.mrf.mxu0 }
 0x42c   :  { %v4220_v47 = vpop.f32.mrf.mxu0 }
 0x42e   :  { %v1768_v10 = vpop.f32.mrf.mxu0 }
 0x430   :  { %v4223_v53 = vpop.f32.mrf.mxu0 }
 0x431   :  { %v1784_v37 = vadd.f32 %v4223_v53, %v3776_v60  ;;  %v1764_v53 = vadd.f32 %v4217_v36, %v3776_v60  ;;  %v1744_v36 = vadd.f32 %v5619_v20, %v3776_v60 }
 0x432   :  { %v1778_v6 = vpop.f32.mrf.mxu0 }
 0x433   :  { %v1826_v51 = vsub.f32 0.0, %v1784_v37 }
 0x434   :  { %v4226_v58 = vpop.f32.mrf.mxu0 }
 0x435   :  { %v1794_v23 = vadd.f32 %v4226_v58, %v3776_v60 }
 0x436   :  { %v1788_v19 = vpop.f32.mrf.mxu0 }
 0x437   :  { %v1789_v21 = vadd.f32 %v3776_v60, %v1788_v19  ;;  %v1828_v38 = vsub.f32 0.0, %v1794_v23  ;;  %v4197_v19 = vpop.f32.mrf.mxu1 }
 0x438   :  { %v4229_v63 = vpop.f32.mrf.mxu0 }
 0x439   :  { %v1804_v0 = vadd.f32 %v4229_v63, %v3776_v60  ;;  %v1827_v58 = vsub.f32 0.0, %v1789_v21  ;;  %v1855_v27 = vmul.f32 1.442695, %v1828_v38  ;;  %v1466_v23 = vpop.f32.mrf.mxu1  ;;  %v1749_v38 = vadd.f32 %v3776_v60, %v5627_v14 }
 0x43a   :  { %v1798_v3 = vpop.f32.mrf.mxu0 }
 0x43b   :  { %v1830_v5 = vsub.f32 0.0, %v1804_v0  ;;  %v1799_v8 = vadd.f32 %v3776_v60, %v1798_v3  ;;  %v1779_v0 = vadd.f32 %v3776_v60, %v1778_v6 }
 0x43c   :  { %v4232_v35 = vpop.f32.mrf.mxu0 }
 0x43d   :  { %v1814_v2 = vadd.f32 %v4232_v35, %v3776_v60  ;;  %v1829_v39 = vsub.f32 0.0, %v1799_v8  ;;  %v1859_v52 = vmul.f32 1.442695, %v1830_v5  ;;  %v1774_v35 = vadd.f32 %v4220_v47, %v3776_v60  ;;  %v4200_v47 = vpop.f32.mrf.mxu1 }
 0x43e   :  { %v1808_v56 = vpop.f32.mrf.mxu0  ;;  %v1769_v5 = vadd.f32 %v3776_v60, %v1768_v10 }
 0x43f   :  { %v1832_v62 = vsub.f32 0.0, %v1814_v2  ;;  %v1809_v9 = vadd.f32 %v3776_v60, %v1808_v56  ;;  %v1857_v43 = vmul.f32 1.442695, %v1829_v39  ;;  %4563 = vpow2.f32 %v1859_v52 }
 0x440   :  { %v1825_v2 = vsub.f32 0.0, %v1779_v0  ;;  %v1853_v56 = vmul.f32 1.442695, %v1827_v58  ;;  %v1824_v39 = vsub.f32 0.0, %v1774_v35  ;;  %v1823_v6 = vsub.f32 0.0, %v1769_v5  ;;  %v1476_v35 = vpop.f32.mrf.mxu1 }
 0x441   :  { %v1863_v63 = vmul.f32 1.442695, %v1832_v62  ;;  %v1831_v45 = vsub.f32 0.0, %v1809_v9  ;;  %v1851_v62 = vmul.f32 1.442695, %v1826_v51  ;;  %v1759_v9 = vadd.f32 %v3776_v60, %v1758_v42 }
 0x442   :  { %v1849_v21 = vmul.f32 1.442695, %v1825_v2  ;;  %v1754_v52 = vadd.f32 %v4214_v30, %v3776_v60  ;;  %v1847_v37 = vmul.f32 1.442695, %v1824_v39  ;;  %v1845_v10 = vmul.f32 1.442695, %v1823_v6 }
 0x443   :  { %v1861_v3 = vmul.f32 1.442695, %v1831_v45  ;;  %4565 = vpow2.f32 %v1863_v63  ;;  %v1822_v45 = vsub.f32 0.0, %v1764_v53  ;;  %v1739_v63 = vadd.f32 %v3776_v60, %v5623_v28 }
 0x444   :  { %4567 = vpow2.f32 %v1857_v43  ;;  %v1821_v43 = vsub.f32 0.0, %v1759_v9  ;;  %v1820_v8 = vsub.f32 0.0, %v1754_v52  ;;  %v1819_v0 = vsub.f32 0.0, %v1749_v38 }
 0x445   :  { %4569 = vpow2.f32 %v1861_v3  ;;  %v1843_v51 = vmul.f32 1.442695, %v1822_v45  ;;  %v5646_v3 = vld [vmem:[#allocation5] ss:$0 sm:$0xff]  ;;  %v1817_v60 = vsub.f32 0.0, %v1739_v63 }
 0x446   :  { %4571 = vpow2.f32 %v1855_v27  ;;  %v1841_v30 = vmul.f32 1.442695, %v1821_v43  ;;  %v1482_v2 = vadd.f32 %v4200_v47, %v5646_v3  ;;  %v1839_v20 = vmul.f32 1.442695, %v1820_v8 }
 0x447   :  { %4573 = vpow2.f32 %v1853_v56  ;;  %v1818_v56 = vsub.f32 0.0, %v1744_v36  ;;  %v1477_v28 = vadd.f32 %v5646_v3, %v1476_v35  ;;  %v1837_v9 = vmul.f32 1.442695, %v1819_v0 }
 0x448   :  { %4575 = vpow2.f32 %v1851_v62  ;;  %v1472_v52 = vadd.f32 %v4197_v19, %v5646_v3  ;;  %v1500_v45 = vsub.f32 0.0, %v1482_v2  ;;  %v1467_v47 = vadd.f32 %v5646_v3, %v1466_v23 }
 0x449   :  { %4577 = vpow2.f32 %v1849_v21  ;;  %v1833_v36 = vmul.f32 1.442695, %v1817_v60 }
 0x44a   :  { %4579 = vpow2.f32 %v1847_v37  ;;  %v1835_v37 = vmul.f32 1.442695, %v1818_v56  ;;  %v1531_v63 = vmul.f32 1.442695, %v1500_v45 }
 0x44b   :  { %4581 = vpow2.f32 %v1845_v10  ;;  %v1499_v10 = vsub.f32 0.0, %v1477_v28 }
 0x44c   :  { %v4564_v27 = vpop.eup %4563  ;;  %4583 = vpow2.f32 %v1843_v51 }
 0x44d   :  { %v1878_v53 = vadd.f32 1.0, %v4564_v27  ;;  %v1462_v27 = vadd.f32 %v5639_v22, %v5646_v3  ;;  %v1529_v23 = vmul.f32 1.442695, %v1499_v10 }
 0x44f   :  { %v1496_v2 = vsub.f32 0.0, %v1462_v27 }
 0x450   :  { %v4566_v42 = vpop.eup %4565 }
 0x451   :  { %v4568_v58 = vpop.eup %4567  ;;  %v1880_v14 = vadd.f32 1.0, %v4566_v42  ;;  %v1498_v42 = vsub.f32 0.0, %v1472_v52 }
 0x452   :  { %v4570_v5 = vpop.eup %4569  ;;  %v1877_v6 = vadd.f32 1.0, %v4568_v58  ;;  %v1497_v58 = vsub.f32 0.0, %v1467_v47 }
 0x453   :  { %4585 = vrcp.f32 %v1880_v14  ;;  %v1879_v39 = vadd.f32 1.0, %v4570_v5  ;;  %v4572_v62 = vpop.eup %4571  ;;  %v1452_v5 = vadd.f32 %v5635_v59, %v5646_v3  ;;  %v1527_v22 = vmul.f32 1.442695, %v1498_v42 }
 0x454   :  { %4587 = vpow2.f32 %v1841_v30  ;;  %v4574_v21 = vpop.eup %4573  ;;  %v1876_v38 = vadd.f32 1.0, %v4572_v62  ;;  %v1457_v30 = vadd.f32 %v5646_v3, %v5641_v50  ;;  %v1525_v62 = vmul.f32 1.442695, %v1497_v58 }
 0x455   :  { %4589 = vrcp.f32 %v1879_v39  ;;  %v4576_v43 = vpop.eup %4575  ;;  %v1875_v8 = vadd.f32 1.0, %v4574_v21  ;;  %v1447_v39 = vadd.f32 %v5646_v3, %v5637_v1  ;;  %v1442_v59 = vadd.f32 %v5631_v49, %v5646_v3 }
 0x456   :  { %4591 = vpow2.f32 %v1839_v20  ;;  %v4578_v51 = vpop.eup %4577  ;;  %v1874_v19 = vadd.f32 1.0, %v4576_v43  ;;  %v1495_v50 = vsub.f32 0.0, %v1457_v30  ;;  %v1523_v21 = vmul.f32 1.442695, %v1496_v2 }
 0x457   :  { %4593 = vrcp.f32 %v1878_v53  ;;  %v4580_v0 = vpop.eup %4579  ;;  %v1873_v35 = vadd.f32 1.0, %v4578_v51  ;;  %v1437_v1 = vadd.f32 %v5646_v3, %v5633_v54  ;;  %v1432_v49 = vadd.f32 %v5625_v33, %v5646_v3 }
 0x458   :  { %4595 = vpow2.f32 %v1837_v9  ;;  %v4582_v14 = vpop.eup %4581  ;;  %v1872_v20 = vadd.f32 1.0, %v4580_v0  ;;  %v1521_v43 = vmul.f32 1.442695, %v1495_v50  ;;  %v1427_v54 = vadd.f32 %v5646_v3, %v5629_v40 }
 0x459   :  { %4597 = vrcp.f32 %v1877_v6  ;;  %v4584_v56 = vpop.eup %4583  ;;  %v1871_v60 = vadd.f32 1.0, %v4582_v14  ;;  %v1494_v6 = vsub.f32 0.0, %v1452_v5  ;;  %v1490_v33 = vsub.f32 0.0, %v1432_v49 }
 0x45a   :  { %4599 = vpow2.f32 %v1835_v37  ;;  %v1870_v45 = vadd.f32 1.0, %v4584_v56  ;;  %v1489_v40 = vsub.f32 0.0, %v1427_v54 }
 0x45b   :  { %4601 = vrcp.f32 %v1876_v38  ;;  %v1493_v38 = vsub.f32 0.0, %v1447_v39  ;;  %v1519_v51 = vmul.f32 1.442695, %v1494_v6  ;;  %v1511_v50 = vmul.f32 1.442695, %v1490_v33 }
 0x45c   :  { %4603 = vpow2.f32 %v1833_v36 }
 0x45d   :  { %4605 = vrcp.f32 %v1875_v8  ;;  %v1492_v8 = vsub.f32 0.0, %v1442_v59  ;;  %v1517_v0 = vmul.f32 1.442695, %v1493_v38  ;;  %v1417_v59 = vadd.f32 %v5646_v3, %v5621_v25 }
 0x45e   :  { %4607 = vpow2.f32 %v1531_v63  ;;  %v1412_v38 = vadd.f32 %v5613_v12, %v5646_v3 }
 0x45f   :  { %4609 = vrcp.f32 %v1874_v19  ;;  %v1491_v19 = vsub.f32 0.0, %v1437_v1 }
 0x460   :  { %v4586_v53 = vpop.eup %4585  ;;  %4611 = vpow2.f32 %v1529_v23 }
 0x461   :  { %v4588_v28 = vpop.eup %4587  ;;  %4613 = vrcp.f32 %v1873_v35  ;;  %2086 = vperm.xlu0 %4493, %v4586_v53   ;;  %v1515_v35 = vmul.f32 1.442695, %v1492_v8  ;;  %v1513_v56 = vmul.f32 1.442695, %v1491_v19 }
 0x462   :  { %v4590_v9 = vpop.eup %4589  ;;  %4615 = vpow2.f32 %v1527_v22  ;;  %v1869_v10 = vadd.f32 1.0, %v4588_v28  ;;  %v1422_v22 = vadd.f32 %v5617_v17, %v5646_v3  ;;  %v1509_v17 = vmul.f32 1.442695, %v1489_v40 }
 0x463   :  { %v4592_v52 = vpop.eup %4591  ;;  %4617 = vrcp.f32 %v1872_v20  ;;  %2081 = vperm.xlu1 %4494, %v4590_v9  }
 0x464   :  { %v4594_v37 = vpop.eup %4593  ;;  %4619 = vpow2.f32 %v1525_v62  ;;  %v1868_v42 = vadd.f32 1.0, %v4592_v52  ;;  %v1488_v9 = vsub.f32 0.0, %v1422_v22 }
 0x465   :  { %v4596_v47 = vpop.eup %4595  ;;  %4621 = vrcp.f32 %v1871_v60  ;;  %2076 = vperm.xlu0 %4493, %v4594_v37  }
 0x466   :  { %v4598_v36 = vpop.eup %4597  ;;  %4623 = vpow2.f32 %v1523_v21  ;;  %v1867_v58 = vadd.f32 1.0, %v4596_v47  ;;  %v1487_v47 = vsub.f32 0.0, %v1417_v59 }
 0x467   :  { %v4600_v27 = vpop.eup %4599  ;;  %4625 = vrcp.f32 %v1870_v45  ;;  %2071 = vperm.xlu1 %4494, %v4598_v36  }
 0x468   :  { %v4602_v63 = vpop.eup %4601  ;;  %4627 = vpow2.f32 %v1521_v43  ;;  %v1866_v5 = vadd.f32 1.0, %v4600_v27  ;;  %v1507_v43 = vmul.f32 1.442695, %v1488_v9  ;;  %v1486_v27 = vsub.f32 0.0, %v1412_v38 }
 0x469   :  { %v4604_v30 = vpop.eup %4603  ;;  %4629 = vrcp.f32 %v1869_v10  ;;  %2066 = vperm.xlu0 %4493, %v4602_v63   ;;  %v1505_v63 = vmul.f32 1.442695, %v1487_v47 }
 0x46a   :  { %v4606_v23 = vpop.eup %4605  ;;  %4631 = vpow2.f32 %v1519_v51  ;;  %v1865_v53 = vadd.f32 1.0, %v4604_v30 }
 0x46b   :  { %v4608_v14 = vpop.eup %4607  ;;  %4633 = vrcp.f32 %v1868_v42  ;;  %2061 = vperm.xlu1 %4494, %v4606_v23   ;;  %v1407_v42 = vadd.f32 %v5646_v3, %v5615_v16  ;;  %v1503_v23 = vmul.f32 1.442695, %v1486_v27 }
 0x46c   :  { %v4610_v2 = vpop.eup %4609  ;;  %4635 = vpow2.f32 %v1517_v0  ;;  %v1548_v28 = vadd.f32 1.0, %v4608_v14 }
 0x46d   :  { %v4612_v20 = vpop.eup %4611  ;;  %4637 = vrcp.f32 %v1867_v58  ;;  %2056 = vperm.xlu0 %4493, %v4610_v2   ;;  %v1485_v33 = vsub.f32 0.0, %v1407_v42 }
 0x46e   :  { %v4614_v39 = vpop.eup %4613  ;;  %4639 = vpow2.f32 %v1515_v35  ;;  %v1547_v21 = vadd.f32 1.0, %v4612_v20 }
 0x46f   :  { %v4616_v62 = vpop.eup %4615  ;;  %4641 = vrcp.f32 %v1866_v5  ;;  %2051 = vperm.xlu1 %4494, %v4614_v39   ;;  %v1501_v22 = vmul.f32 1.442695, %v1485_v33 }
 0x470   :  { %v4618_v60 = vpop.eup %4617  ;;  %4643 = vpow2.f32 %v1513_v56  ;;  %v1546_v37 = vadd.f32 1.0, %v4616_v62 }
 0x471   :  { %v4620_v6 = vpop.eup %4619  ;;  %4645 = vrcp.f32 %v1865_v53  ;;  %2046 = vperm.xlu0 %4493, %v4618_v60  }
 0x472   :  { %v4622_v52 = vpop.eup %4621  ;;  %4647 = vpow2.f32 %v1511_v50  ;;  %v1545_v10 = vadd.f32 1.0, %v4620_v6 }
 0x473   :  { %v4624_v45 = vpop.eup %4623  ;;  %4649 = vrcp.f32 %v1548_v28  ;;  %2041 = vperm.xlu1 %4494, %v4622_v52  }
 0x474   :  { %v4626_v1 = vpop.eup %4625  ;;  %4651 = vpow2.f32 %v1509_v17  ;;  %v1544_v8 = vadd.f32 1.0, %v4624_v45 }
 0x475   :  { %v4628_v25 = vpop.eup %4627  ;;  %4653 = vrcp.f32 %v1547_v21  ;;  %2036 = vperm.xlu0 %4493, %v4626_v1  }
 0x476   :  { %v4630_v36 = vpop.eup %4629  ;;  %4655 = vrcp.f32 %v1546_v37  ;;  %v1543_v54 = vadd.f32 1.0, %v4628_v25 }
 0x477   :  { %v4632_v49 = vpop.eup %4631  ;;  %2031 = vperm.xlu1 %4494, %v4630_v36   ;;  %4657 = vpow2.f32 %v1507_v43 }
 0x478   :  { %v4634_v51 = vpop.eup %4633  ;;  %4659 = vrcp.f32 %v1545_v10  ;;  %v1542_v30 = vadd.f32 1.0, %v4632_v49 }
 0x479   :  { %v4636_v12 = vpop.eup %4635  ;;  %2026 = vperm.xlu0 %4493, %v4634_v51   ;;  %4661 = vrcp.f32 %v1544_v8 }
 0x47a   :  { %v4638_v19 = vpop.eup %4637  ;;  %4663 = vpow2.f32 %v1505_v63  ;;  %v1541_v14 = vadd.f32 1.0, %v4636_v12 }
 0x47b   :  { %v4640_v0 = vpop.eup %4639  ;;  %2021 = vperm.xlu1 %4494, %v4638_v19   ;;  %4665 = vrcp.f32 %v1543_v54 }
 0x47c   :  { %v4642_v58 = vpop.eup %4641  ;;  %v1540_v5 = vadd.f32 1.0, %v4640_v0  ;;  %4667 = vrcp.f32 %v1542_v30 }
 0x47d   :  { %v4644_v35 = vpop.eup %4643  ;;  %2016 = vperm.xlu0 %4493, %v4642_v58   ;;  %4669 = vpow2.f32 %v1503_v23 }
 0x47e   :  { %v4646_v16 = vpop.eup %4645  ;;  %v1539_v56 = vadd.f32 1.0, %v4644_v35  ;;  %4671 = vrcp.f32 %v1541_v14 }
 0x47f   :  { %v4648_v3 = vpop.eup %4647  ;;  %2011 = vperm.xlu1 %4494, %v4646_v16   ;;  %4673 = vrcp.f32 %v1540_v5 }
 0x480   :  { %v4650_v2 = vpop.eup %4649  ;;  %v1538_v53 = vadd.f32 1.0, %v4648_v3  ;;  %4675 = vpow2.f32 %v1501_v22 }
 0x481   :  { %v4652_v40 = vpop.eup %4651  ;;  %1990 = vperm.xlu0 %4493, %v4650_v2   ;;  %4677 = vrcp.f32 %v1539_v56 }
 0x482   :  { %v4654_v20 = vpop.eup %4653  ;;  %v1537_v62 = vadd.f32 1.0, %v4652_v40  ;;  %4679 = vrcp.f32 %v1538_v53 }
 0x483   :  { %1985 = vperm.xlu1 %4494, %v4654_v20   ;;  %v4656_v39 = vpop.eup %4655 }
 0x484   :  { %v4658_v50 = vpop.eup %4657  ;;  %4681 = vrcp.f32 %v1537_v62 }
 0x485   :  { %1980 = vperm.xlu0 %4493, %v4656_v39   ;;  %v4660_v28 = vpop.eup %4659  ;;  %v1536_v59 = vadd.f32 1.0, %v4658_v50  ;;  %v3207_v39 = vld [vmem:[%s5991_s25] sm:$0xff] }
 0x486   :  { %v4662_v60 = vpop.eup %4661 }
 0x487   :  { %1975 = vperm.xlu1 %4494, %v4660_v28   ;;  %v4664_v9 = vpop.eup %4663  ;;  %4683 = vrcp.f32 %v1536_v59  ;;  %v5994_v59 = vld [vmem:[#allocation54_spill] sm:$0xff] }
 0x488   :  { %v4666_v17 = vpop.eup %4665  ;;  %v1535_v52 = vadd.f32 1.0, %v4664_v9 }
 0x489   :  { %1970 = vperm.xlu0 %4493, %v4662_v60   ;;  %v4668_v6 = vpop.eup %4667  ;;  %v5993_v60 = vld [vmem:[#allocation55_spill] sm:$0xff] }
 0x48a   :  { %v4670_v21 = vpop.eup %4669  ;;  %4685 = vrcp.f32 %v1535_v52 }
 0x48b   :  { %1965 = vperm.xlu1 %4494, %v4666_v17   ;;  %v4672_v45 = vpop.eup %4671  ;;  %v1534_v38 = vadd.f32 1.0, %v4670_v21  ;;  %v5996_v21 = vld [vmem:[#allocation52_spill] sm:$0xff] }
 0x48c   :  { %v4674_v37 = vpop.eup %4673 }
 0x48d   :  { %1960 = vperm.xlu0 %4493, %v4668_v6   ;;  %v4676_v1 = vpop.eup %4675  ;;  %4687 = vrcp.f32 %v1534_v38 }
 0x48e   :  { %v4678_v43 = vpop.eup %4677  ;;  %v1533_v25 = vadd.f32 1.0, %v4676_v1 }
 0x48f   :  { %1955 = vperm.xlu1 %4494, %v4672_v45   ;;  %v4680_v47 = vpop.eup %4679 }
 0x490   :  { %4689 = vrcp.f32 %v1533_v25 }
 0x491   :  { %1950 = vperm.xlu0 %4493, %v4674_v37   ;;  %v4682_v10 = vpop.eup %4681  ;;  %v5997_v37 = vld [vmem:[#allocation51_spill] sm:$0xff] }
 0x493   :  { %1945 = vperm.xlu1 %4494, %v4678_v43   ;;  %v5998_v43 = vld [vmem:[#allocation50_spill] sm:$0xff] }
 0x494   :  { %v4684_v36 = vpop.eup %4683 }
 0x495   :  { %1940 = vperm.xlu0 %4493, %v4680_v47  }
 0x497   :  { %1935 = vperm.xlu1 %4494, %v4682_v10   ;;  %v4686_v49 = vpop.eup %4685  ;;  %v5999_v10 = vld [vmem:[#allocation49_spill] sm:$0xff] }
 0x49a   :  { %v4688_v8 = vpop.eup %4687 }
 0x49b   :  { %1930 = vperm.xlu1 %4494, %v4684_v36  }
 0x49d   :  { %v4690_v51 = vpop.eup %4689 }
 0x49f   :  { %1925 = vperm.xlu1 %4494, %v4686_v49  }
 0x4a3   :  { %1920 = vperm.xlu1 %4494, %v4688_v8   ;;  %v6000_v8 = vld [vmem:[#allocation48_spill] sm:$0xff] }
 0x4a7   :  { %1915 = vperm.xlu1 %4494, %v4690_v51  }
 0x4dc   :  { %v2087_v27 = vpop.permute.xlu0 %2086 }
 0x4dd   :  { %v2104_v0 = vmul.f32 %v2087_v27, %v5584_v46 }
 0x4de   :  { %v2082_v42 = vpop.permute.xlu1 %2081 }
 0x4df   :  { %v2103_v33 = vmul.f32 %v2082_v42, %v5589_v48  ;;  %v6001_v42 = vld [vmem:[#allocation47_spill] sm:$0xff] }
 0x4e0   :  { %v2077_v63 = vpop.permute.xlu0 %2076 }
 0x4e1   :  { %v2102_v12 = vmul.f32 %v2077_v63, %v5574_v4 }
 0x4e2   :  { %v2072_v54 = vpop.permute.xlu1 %2071 }
 0x4e3   :  { %2231 = vrot.lane.b32.xlu0 %v2102_v12, %s4917_s21  ;;  %v2101_v16 = vmul.f32 %v2072_v54, %v5579_v41  ;;  %v6002_v54 = vld [vmem:[#allocation46_spill] sm:$0xff] }
 0x4e4   :  { %v2067_v19 = vpop.permute.xlu0 %2066 }
 0x4e5   :  { %v2100_v48 = vmul.f32 %v2067_v19, %v5564_v24 }
 0x4e6   :  { %v2062_v30 = vpop.permute.xlu1 %2061 }
 0x4e7   :  { %v2099_v58 = vmul.f32 %v2062_v30, %v5569_v34  ;;  %2235 = vrot.lane.b32.xlu0 %v2104_v0, %s4917_s21  ;;  %v6003_v30 = vld [vmem:[#allocation45_spill] sm:$0xff] }
 0x4e8   :  { %v2057_v23 = vpop.permute.xlu0 %2056 }
 0x4e9   :  { %2225 = vrot.lane.b32.xlu1 %v2099_v58, %s4917_s21  ;;  %v2098_v41 = vmul.f32 %v2057_v23, %v5554_v29 }
 0x4ea   :  { %v2052_v35 = vpop.permute.xlu1 %2051 }
 0x4eb   :  { %v2097_v14 = vmul.f32 %v2052_v35, %v5559_v32  ;;  %2233 = vrot.lane.b32.xlu0 %v2103_v33, %s4917_s21  ;;  %v6004_v33 = vld [vmem:[#allocation44_spill] sm:$0xff] }
 0x4ec   :  { %v2047_v4 = vpop.permute.xlu0 %2046 }
 0x4ed   :  { %2221 = vrot.lane.b32.xlu1 %v2097_v14, %s4917_s21  ;;  %v2096_v24 = vmul.f32 %v2047_v4, %v5544_v44  ;;  %v5992_v44 = vmov 0.0   ;;  %v6005_v14 = vlaneseq }
 0x4ee   :  { %v2042_v46 = vpop.permute.xlu1 %2041 }
 0x4ef   :  { %v2095_v34 = vmul.f32 %v2042_v46, %v5549_v26  ;;  %2229 = vrot.lane.b32.xlu0 %v2101_v16, %s4917_s21  ;;  %v5739_v4 = vshrl.u32 %v6005_v14, 7  ;;  %v5741_v16 = vld [vmem:[#allocation7] ss:$0 sm:$0xff] }
 0x4f0   :  { %v2037_v3 = vpop.permute.xlu0 %2036 }
 0x4f1   :  { %2217 = vrot.lane.b32.xlu1 %v2095_v34, %s4917_s21  ;;  %v2094_v29 = vmul.f32 %v2037_v3, %v5534_v31  ;;  %v6006_v34 = vld [vmem:[#allocation43_spill] sm:$0xff]  ;;  %vm2112_vm8 = vcmp.eq.s32.totalorder %v5739_v4, %v5741_v16 }
 0x4f2   :  { %v2032_v5 = vpop.permute.xlu1 %2031 }
 0x4f3   :  { %v2093_v32 = vmul.f32 %v2032_v5, %v5539_v18  ;;  %2227 = vrot.lane.b32.xlu0 %v2100_v48, %s4917_s21  ;;  %v4918_v48 = vmov 1.0  }
 0x4f4   :  { %v2027_v2 = vpop.permute.xlu0 %2026 }
 0x4f5   :  { %2213 = vrot.lane.b32.xlu1 %v2093_v32, %s4917_s21 }
 0x4f6   :  { %v2022_v22 = vpop.permute.xlu1 %2021 }
 0x4f7   :  { %v2091_v26 = vmul.f32 %v2022_v22, %v5529_v13  ;;  %2223 = vrot.lane.b32.xlu0 %v2098_v41, %s4917_s21 }
 0x4f8   :  { %v2017_v40 = vpop.permute.xlu0 %2016 }
 0x4f9   :  { %2209 = vrot.lane.b32.xlu1 %v2091_v26, %s4917_s21  ;;  %v2090_v9 = vmul.f32 %v2017_v40, %v5993_v60 }
 0x4fa   :  { %v2012_v56 = vpop.permute.xlu1 %2011 }
 0x4fb   :  { %v2089_v18 = vmul.f32 %v2012_v56, %v5519_v7  ;;  %2219 = vrot.lane.b32.xlu0 %v2096_v24, %s4917_s21  ;;  %v2092_v7 = vmul.f32 %v2027_v2, %v5524_v11  ;;  %v5995_v11 = vld [vmem:[#allocation53_spill] sm:$0xff]  ;;  %v2333_v24 = vld [vmem:[%s6007_s29 + $0x18] sm:$0xff] }
 0x4fc   :  { %v1991_v20 = vpop.permute.xlu0 %1990 }
 0x4fd   :  { %v2008_v53 = vmul.f32 %v1991_v20, %v5502_v15  ;;  %2205 = vrot.lane.b32.xlu1 %v2089_v18, %s4917_s21  ;;  %v2332_v20 = vld [vmem:[%s6007_s29 + $0x10] sm:$0xff] }
 0x4fe   :  { %v1986_v13 = vpop.permute.xlu1 %1985 }
 0x4ff   :  { %v2007_v50 = vmul.f32 %v1986_v13, %v5498_v61  ;;  %2215 = vrot.lane.b32.xlu0 %v2094_v29, %s4917_s21  ;;  %4234 = vmatpush3.msra.mxu1 %v2008_v53  ;;  %v2331_v29 = vld [vmem:[%s6007_s29 + $0x8] sm:$0xff]  ;;  %v2330_v53 = vld [vmem:[%s6007_s29] sm:$0xff] }
 0x500   :  { %4235 = vmatprep.subr.mxu1 %v5992_v44  ;;  %v1981_v62 = vpop.permute.xlu0 %1980 }
 0x501   :  { %v2006_v28 = vmul.f32 %v1981_v62, %v5482_v57  ;;  %4236 = vmatpush3.msra.mxu1 %v2007_v50  ;;  %3209 = vperm.xlu1 %4494, %v3207_v39  }
 0x502   :  { %4237 = vmatprep.subr.mxu1 %v5992_v44  ;;  %v1976_v15 = vpop.permute.xlu1 %1975 }
 0x503   :  { %v2005_v31 = vmul.f32 %v1976_v15, %v5478_v55  ;;  %2211 = vrot.lane.b32.xlu0 %v2092_v7, %s4917_s21  ;;  %4238 = vmatpush3.msra.mxu1 %v2006_v28 }
 0x504   :  { %v1971_v61 = vpop.permute.xlu0 %1970  ;;  %4239 = vmatprep.subr.mxu1 %v5992_v44 }
 0x505   :  { %v2004_v17 = vmul.f32 %v1971_v61, %v5994_v59  ;;  %4240 = vmatpush3.msra.mxu1 %v2005_v31  ;;  %v2115_v31 = vld [vmem:[#allocation3] sm:$0xff]  ;;  %v2417_v59 = vld [vmem:[%s5011_s4 + $0x18] sm:$0xff] }
 0x506   :  { %4241 = vmatprep.subr.mxu1 %v5992_v44  ;;  %v1966_v57 = vpop.permute.xlu1 %1965 }
 0x507   :  { %v2003_v6 = vmul.f32 %v1966_v57, %v5995_v11  ;;  %2207 = vrot.lane.b32.xlu0 %v2090_v9, %s4917_s21  ;;  %4242 = vmatpush3.msra.mxu1 %v2004_v17  ;;  %v2416_v57 = vld [vmem:[%s5011_s4 + $0x10] sm:$0xff]  ;;  %v2415_v11 = vld [vmem:[%s5011_s4 + $0x8] sm:$0xff] }
 0x508   :  { %v1961_v55 = vpop.permute.xlu0 %1960  ;;  %4243 = vmatprep.subr.mxu1 %v5992_v44 }
 0x509   :  { %v2002_v52 = vmul.f32 %v1961_v55, %v5996_v21  ;;  %4244 = vmatpush3.msra.mxu1 %v2003_v6  ;;  %v2414_v6 = vld [vmem:[%s5011_s4] sm:$0xff]  ;;  %v2496_v55 = vld [vmem:[%s6008_s8 + $0x18] sm:$0xff]  ;;  %s6014_s4 = sld [smem:[#allocation34_spill]] }
 0x50a   :  { %4245 = vmatprep.subr.mxu1 %v5992_v44  ;;  %v1956_v45 = vpop.permute.xlu1 %1955  ;;  %v5796_v21 = vld [vmem:[#allocation2] sm:$0xff] }
 0x50b   :  { %v2001_v1 = vmul.f32 %v1956_v45, %v5997_v37  ;;  %4246 = vmatpush3.msra.mxu1 %v2002_v52  ;;  %v2495_v52 = vld [vmem:[%s6008_s8 + $0x10] sm:$0xff]  ;;  %v2494_v45 = vld [vmem:[%s6008_s8 + $0x8] sm:$0xff]  ;;  %v2493_v37 = vld [vmem:[%s6008_s8] sm:$0xff] }
 0x50c   :  { %v1951_v38 = vpop.permute.xlu0 %1950  ;;  %4247 = vmatprep.subr.mxu1 %v5992_v44 }
 0x50d   :  { %v2000_v47 = vmul.f32 %v1951_v38, %v5998_v43  ;;  %4248 = vmatpush3.msra.mxu1 %v2001_v1  ;;  %v2655_v1 = vld [vmem:[%s6009_s14 + $0x18] sm:$0xff]  ;;  %v2654_v38 = vld [vmem:[%s6009_s14 + $0x10] sm:$0xff]  ;;  %v2653_v43 = vld [vmem:[%s6009_s14 + $0x8] sm:$0xff] }
 0x50e   :  { %4249 = vmatprep.subr.mxu1 %v5992_v44  ;;  %v1946_v25 = vpop.permute.xlu1 %1945 }
 0x50f   :  { %v1999_v36 = vmul.f32 %v1946_v25, %v5999_v10  ;;  %4250 = vmatpush3.msra.mxu1 %v2000_v47  ;;  %v2652_v47 = vld [vmem:[%s6009_s14] sm:$0xff]  ;;  %v2188_v25 = vld [vmem:[#allocation4] sm:$0xff] }
 0x510   :  { %v1941_v49 = vpop.permute.xlu0 %1940  ;;  %4251 = vmatprep.subr.mxu1 %v5992_v44 }
 0x511   :  { %v1998_v51 = vmul.f32 %v1941_v49, %v6000_v8  ;;  %4252 = vmatpush3.msra.mxu1 %v1999_v36  ;;  %v2580_v8 = vld [vmem:[%s6010_s19 + $0x18] sm:$0xff] }
 0x512   :  { %4253 = vmatprep.subr.mxu1 %v5992_v44  ;;  %v1936_v27 = vpop.permute.xlu1 %1935 }
 0x513   :  { %v1997_v63 = vmul.f32 %v1936_v27, %v6001_v42  ;;  %4254 = vmatpush3.msra.mxu1 %v1998_v51  ;;  %v2579_v27 = vld [vmem:[%s6010_s19 + $0x10] sm:$0xff]  ;;  %v2578_v42 = vld [vmem:[%s6010_s19 + $0x8] sm:$0xff] }
 0x514   :  { %4255 = vmatprep.subr.mxu1 %v5992_v44 }
 0x515   :  { %4256 = vmatpush3.msra.mxu1 %v1997_v63  ;;  %v2577_v63 = vld [vmem:[%s6010_s19] sm:$0xff] }
 0x516   :  { %v1931_v12 = vpop.permute.xlu1 %1930  ;;  %4257 = vmatprep.subr.mxu1 %v5992_v44 }
 0x517   :  { %v1996_v19 = vmul.f32 %v1931_v12, %v6002_v54  ;;  %v2746_v12 = vld [vmem:[%s6011_s24 + $0x18] sm:$0xff]  ;;  %v2745_v54 = vld [vmem:[%s6011_s24 + $0x10] sm:$0xff] }
 0x519   :  { %4258 = vmatpush3.msra.mxu1 %v1996_v19  ;;  %v2744_v19 = vld [vmem:[%s6011_s24 + $0x8] sm:$0xff] }
 0x51a   :  { %v1926_v0 = vpop.permute.xlu1 %1925  ;;  %4259 = vmatprep.subr.mxu1 %v5992_v44 }
 0x51b   :  { %v1995_v58 = vmul.f32 %v1926_v0, %v6003_v30  ;;  %v2743_v0 = vld [vmem:[%s6011_s24] sm:$0xff] }
 0x51d   :  { %4260 = vmatpush3.msra.mxu1 %v1995_v58  ;;  %v3797_v58 = vld [vmem:[%s6012_s30] ss:$0 sm:$0xff] }
 0x51e   :  { %v1921_v23 = vpop.permute.xlu1 %1920  ;;  %4261 = vmatprep.subr.mxu1 %v5992_v44 }
 0x51f   :  { %v1994_v35 = vmul.f32 %v1921_v23, %v6004_v33 }
 0x521   :  { %4262 = vmatpush3.msra.mxu1 %v1994_v35 }
 0x522   :  { %v1916_v46 = vpop.permute.xlu1 %1915  ;;  %4263 = vmatprep.subr.mxu1 %v5992_v44 }
 0x523   :  { %v1993_v3 = vmul.f32 %v1916_v46, %v6006_v34 }
 0x525   :  { %4264 = vmatpush3.msra.mxu1 %v1993_v3  ;;  %v3800_v3 = vld [vmem:[%s6013_s12] ss:$0 sm:$0xff] }
 0x526   :  { %4266 = vmatmul.mubr.msk.f32.vlgmr.msra.gmra.mxu1 %vm2112_vm8, %v4918_v48  ;;  %4303 = vmatprep.subr.mxu1 %v5992_v44 }
 0x527   :  { %4311 = vmatprep.mubr.msk.f32.mxu1 %vm4914_vm1, %v5992_v44  ;;  %4304 = vmatpush3.msra.mxu1 %v2333_v24  ;;  %v2841_v24 = vld [vmem:[%s6015_s1 + $0x18] sm:$0xff] }
 0x528   :  { %4305 = vmatprep.subr.mxu1 %v5992_v44 }
 0x529   :  { %4306 = vmatpush3.msra.mxu1 %v2332_v20  ;;  %v2838_v20 = vld [vmem:[%s6015_s1] sm:$0xff] }
 0x52a   :  { %4307 = vmatprep.subr.mxu1 %v5992_v44 }
 0x52b   :  { %4308 = vmatpush3.msra.mxu1 %v2331_v29  ;;  %v3803_v29 = vld [vmem:[%s6016_s11] ss:$0 sm:$0xff] }
 0x52c   :  { %4309 = vmatprep.subr.mxu1 %v5992_v44 }
 0x52d   :  { %4310 = vmatpush3.msra.mxu1 %v2330_v53 }
 0x52e   :  { %4314 = vmatprep.subr.mxu1 %v5992_v44 }
 0x555   :  { %v2232_v5 = vpop.permute.xlu0 %2231 }
 0x559   :  { %v2236_v32 = vpop.permute.xlu0 %2235 }
 0x55a   :  { %4269 = vmatpush3.msra.mxu0 %v2236_v32 }
 0x55b   :  { %4270 = vmatprep.subr.mxu0 %v5992_v44  ;;  %v2226_v2 = vpop.permute.xlu1 %2225 }
 0x55d   :  { %v2234_v41 = vpop.permute.xlu0 %2233 }
 0x55e   :  { %4271 = vmatpush3.msra.mxu0 %v2234_v41  ;;  %v2837_v41 = vld [vmem:[%s6014_s4 + $0x18] sm:$0xff] }
 0x55f   :  { %4272 = vmatprep.subr.mxu0 %v5992_v44  ;;  %v2222_v26 = vpop.permute.xlu1 %2221 }
 0x560   :  { %4273 = vmatpush3.msra.mxu0 %v2232_v5 }
 0x561   :  { %4274 = vmatprep.subr.mxu0 %v5992_v44  ;;  %v2230_v22 = vpop.permute.xlu0 %2229 }
 0x562   :  { %4275 = vmatpush3.msra.mxu0 %v2230_v22  ;;  %v2836_v22 = vld [vmem:[%s6014_s4 + $0x10] sm:$0xff] }
 0x563   :  { %4276 = vmatprep.subr.mxu0 %v5992_v44  ;;  %v2218_v56 = vpop.permute.xlu1 %2217 }
 0x565   :  { %v2228_v40 = vpop.permute.xlu0 %2227 }
 0x566   :  { %4277 = vmatpush3.msra.mxu0 %v2228_v40  ;;  %v2834_v40 = vld [vmem:[%s6014_s4] sm:$0xff] }
 0x567   :  { %4278 = vmatprep.subr.mxu0 %v5992_v44  ;;  %v2214_v39 = vpop.permute.xlu1 %2213 }
 0x568   :  { %4279 = vmatpush3.msra.mxu0 %v2226_v2 }
 0x569   :  { %v2224_v18 = vpop.permute.xlu0 %2223  ;;  %4280 = vmatprep.subr.mxu0 %v5992_v44 }
 0x56a   :  { %4281 = vmatpush3.msra.mxu0 %v2224_v18  ;;  %v2839_v18 = vld [vmem:[%s6015_s1 + $0x8] sm:$0xff] }
 0x56b   :  { %4282 = vmatprep.subr.mxu0 %v5992_v44  ;;  %v2210_v62 = vpop.permute.xlu1 %2209 }
 0x56c   :  { %4283 = vmatpush3.msra.mxu0 %v2222_v26  ;;  %v2835_v26 = vld [vmem:[%s6014_s4 + $0x8] sm:$0xff] }
 0x56d   :  { %v2220_v13 = vpop.permute.xlu0 %2219  ;;  %4284 = vmatprep.subr.mxu0 %v5992_v44 }
 0x56e   :  { %4285 = vmatpush3.msra.mxu0 %v2220_v13 }
 0x56f   :  { %4286 = vmatprep.subr.mxu0 %v5992_v44  ;;  %v2206_v15 = vpop.permute.xlu1 %2205 }
 0x570   :  { %4287 = vmatpush3.msra.mxu0 %v2218_v56  ;;  %v2840_v56 = vld [vmem:[%s6015_s1 + $0x10] sm:$0xff] }
 0x571   :  { %v2216_v50 = vpop.permute.xlu0 %2215  ;;  %4288 = vmatprep.subr.mxu0 %v5992_v44 }
 0x572   :  { %4289 = vmatpush3.msra.mxu0 %v2216_v50 }
 0x573   :  { %4290 = vmatprep.subr.mxu0 %v5992_v44 }
 0x574   :  { %4291 = vmatpush3.msra.mxu0 %v2214_v39 }
 0x575   :  { %v2212_v7 = vpop.permute.xlu0 %2211  ;;  %4292 = vmatprep.subr.mxu0 %v5992_v44 }
 0x576   :  { %4293 = vmatpush3.msra.mxu0 %v2212_v7 }
 0x577   :  { %4294 = vmatprep.subr.mxu0 %v5992_v44 }
 0x578   :  { %4295 = vmatpush3.msra.mxu0 %v2210_v62 }
 0x579   :  { %v2208_v28 = vpop.permute.xlu0 %2207  ;;  %4296 = vmatprep.subr.mxu0 %v5992_v44 }
 0x57a   :  { %4297 = vmatpush3.msra.mxu0 %v2208_v28 }
 0x57b   :  { %4298 = vmatprep.subr.mxu0 %v5992_v44 }
 0x57c   :  { %4299 = vmatpush3.msra.mxu0 %v2206_v15 }
 0x57d   :  { %4301 = vmatmul.mubr.msk.f32.vlgmr.msra.gmra.mxu0 %vm2112_vm8, %v4918_v48  ;;  %4347 = vmatprep.subr.mxu0 %v5992_v44 }
 0x57e   :  { %4355 = vmatprep.mubr.msk.f32.mxu0 %vm4914_vm1, %v5992_v44  ;;  %4348 = vmatpush3.msra.mxu0 %v2655_v1  ;;  %v2998_v1 = vld [vmem:[%s6018_s16 + $0x8] sm:$0xff] }
 0x57f   :  { %4349 = vmatprep.subr.mxu0 %v5992_v44 }
 0x580   :  { %4350 = vmatpush3.msra.mxu0 %v2654_v38  ;;  %v2997_v38 = vld [vmem:[%s6018_s16] sm:$0xff] }
 0x581   :  { %4351 = vmatprep.subr.mxu0 %v5992_v44 }
 0x582   :  { %4352 = vmatpush3.msra.mxu0 %v2653_v43 }
 0x583   :  { %4353 = vmatprep.subr.mxu0 %v5992_v44 }
 0x584   :  { %4354 = vmatpush3.msra.mxu0 %v2652_v47 }
 0x585   :  { %4369 = vmatprep.subr.mxu0 %v5992_v44 }
 0x5e6   :  { %v2182_v61 = vpop.f32.mrf.mxu1 }
 0x5e7   :  { %v2186_v60 = vadd.f32 %v2182_v61, %v2115_v31  ;;  %v3805_v61 = vld [vmem:[%s6017_s6] ss:$0 sm:$0xff] }
 0x5e8   :  { %v4267_v9 = vpop.f32.mrf.mxu1 }
 0x5e9   :  { %2187 = vst.msk [vmem:[#allocation3] sm:$0xff] %vm241_vm0, %v2186_v60 }
 0x5f0   :  { %v2329_v17 = vld [vmem:[#allocation3] sm:$0xff] }
 0x5f1   :  { %4312 = vmatmul.mubr.msk.f32.vlgmr.msra.gmra.mxu1 %vm241_vm0, %v2329_v17 }
 0x5f2   :  { %4315 = vmatpush3.msra.mxu1 %v2417_v59  ;;  %4322 = vmatprep.mubr.msk.f32.mxu1 %vm4914_vm1, %v5992_v44 }
 0x5f3   :  { %4316 = vmatprep.subr.mxu1 %v5992_v44 }
 0x5f4   :  { %4317 = vmatpush3.msra.mxu1 %v2416_v57 }
 0x5f5   :  { %4318 = vmatprep.subr.mxu1 %v5992_v44 }
 0x5f6   :  { %4319 = vmatpush3.msra.mxu1 %v2415_v11 }
 0x5f7   :  { %4320 = vmatprep.subr.mxu1 %v5992_v44 }
 0x5f8   :  { %4321 = vmatpush3.msra.mxu1 %v2414_v6 }
 0x5f9   :  { %4323 = vmatmul.mubr.msk.f32.vlgmr.msra.gmra.mxu1 %vm241_vm0, %v5796_v21  ;;  %4325 = vmatprep.subr.mxu1 %v5992_v44 }
 0x5fa   :  { %4326 = vmatpush3.msra.mxu1 %v2496_v55  ;;  %4333 = vmatprep.mubr.msk.f32.mxu1 %vm4914_vm1, %v5992_v44 }
 0x5fb   :  { %4327 = vmatprep.subr.mxu1 %v5992_v44 }
 0x5fc   :  { %4328 = vmatpush3.msra.mxu1 %v2495_v52 }
 0x5fd   :  { %4329 = vmatprep.subr.mxu1 %v5992_v44 }
 0x5fe   :  { %4330 = vmatpush3.msra.mxu1 %v2494_v45  ;;  %v3000_v45 = vld [vmem:[%s6018_s16 + $0x18] sm:$0xff] }
 0x5ff   :  { %4331 = vmatprep.subr.mxu1 %v5992_v44 }
 0x600   :  { %4332 = vmatpush3.msra.mxu1 %v2493_v37  ;;  %v2999_v37 = vld [vmem:[%s6018_s16 + $0x10] sm:$0xff] }
 0x601   :  { %4336 = vmatprep.subr.mxu1 %v5992_v44 }
 0x63d   :  { %v2319_v10 = vpop.f32.mrf.mxu0 }
 0x63e   :  { %v2323_v36 = vadd.f32 %v2319_v10, %v2188_v25  ;;  %v3809_v10 = vld [vmem:[%s6019_s18] ss:$0 sm:$0xff] }
 0x63f   :  { %v4302_v49 = vpop.f32.mrf.mxu0 }
 0x640   :  { %2324 = vst.msk [vmem:[#allocation4] sm:$0xff] %vm241_vm0, %v2323_v36 }
 0x647   :  { %v2492_v51 = vld [vmem:[#allocation4] sm:$0xff] }
 0x648   :  { %4334 = vmatmul.mubr.msk.f32.vlgmr.msra.gmra.mxu1 %vm241_vm0, %v2492_v51 }
 0x649   :  { %4337 = vmatpush3.msra.mxu1 %v2580_v8  ;;  %4344 = vmatprep.mubr.msk.f32.mxu1 %vm4914_vm1, %v5992_v44 }
 0x64a   :  { %4338 = vmatprep.subr.mxu1 %v5992_v44 }
 0x64b   :  { %4339 = vmatpush3.msra.mxu1 %v2579_v27  ;;  %v3815_v27 = vld [vmem:[%s6018_s16 + $0x38] sm:$0xff] }
 0x64c   :  { %4340 = vmatprep.subr.mxu1 %v5992_v44 }
 0x64d   :  { %4341 = vmatpush3.msra.mxu1 %v2578_v42  ;;  %v3814_v42 = vld [vmem:[%s6018_s16 + $0x30] sm:$0xff] }
 0x64e   :  { %4342 = vmatprep.subr.mxu1 %v5992_v44 }
 0x64f   :  { %4343 = vmatpush3.msra.mxu1 %v2577_v63  ;;  %v3813_v63 = vld [vmem:[%s6018_s16 + $0x28] sm:$0xff] }
 0x650   :  { %4345 = vmatmul.mubr.msk.f32.vlgmr.msra.gmra.mxu1 %vm241_vm0, %v5796_v21  ;;  %4358 = vmatprep.subr.mxu1 %v5992_v44 }
 0x651   :  { %4366 = vmatprep.mubr.msk.f32.mxu1 %vm4914_vm1, %v5992_v44  ;;  %4359 = vmatpush3.msra.mxu1 %v2746_v12  ;;  %v3812_v12 = vld [vmem:[%s6018_s16 + $0x20] sm:$0xff] }
 0x652   :  { %4360 = vmatprep.subr.mxu1 %v5992_v44 }
 0x653   :  { %4361 = vmatpush3.msra.mxu1 %v2745_v54 }
 0x654   :  { %4362 = vmatprep.subr.mxu1 %v5992_v44 }
 0x655   :  { %4363 = vmatpush3.msra.mxu1 %v2744_v19 }
 0x656   :  { %4364 = vmatprep.subr.mxu1 %v5992_v44 }
 0x657   :  { %4365 = vmatpush3.msra.mxu1 %v2743_v0 }
 0x658   :  { %4380 = vmatprep.subr.mxu1 %v5992_v44 }
 0x6b1   :  { %v2410_v30 = vpop.f32.mrf.mxu1 }
 0x6b2   :  { %v2411_v33 = vadd.f32 %v3797_v58, %v2410_v30 }
 0x6b3   :  { %v4313_v23 = vpop.f32.mrf.mxu1 }
 0x6b9   :  { %v2487_v35 = vpop.f32.mrf.mxu1 }
 0x6ba   :  { %v2491_v14 = vadd.f32 %v2487_v35, %v2411_v33 }
 0x6bb   :  { %v4324_v16 = vpop.f32.mrf.mxu1 }
 0x6bc   :  { %4356 = vmatmul.mubr.msk.f32.vlgmr.msra.gmra.mxu0 %vm241_vm0, %v2491_v14 }
 0x6bd   :  { %4377 = vmatprep.mubr.msk.f32.mxu0 %vm4914_vm1, %v5992_v44  ;;  %4370 = vmatpush3.msra.mxu0 %v2841_v24 }
 0x6be   :  { %4371 = vmatprep.subr.mxu0 %v5992_v44 }
 0x6bf   :  { %4372 = vmatpush3.msra.mxu0 %v2840_v56 }
 0x6c0   :  { %4373 = vmatprep.subr.mxu0 %v5992_v44 }
 0x6c1   :  { %4374 = vmatpush3.msra.mxu0 %v2839_v18 }
 0x6c2   :  { %4375 = vmatprep.subr.mxu0 %v5992_v44 }
 0x6c3   :  { %4376 = vmatpush3.msra.mxu0 %v2838_v20 }
 0x6c4   :  { %4391 = vmatprep.subr.mxu0 %v5992_v44 }
 0x708   :  { %v2573_v46 = vpop.f32.mrf.mxu1 }
 0x709   :  { %v2574_v48 = vadd.f32 %v3800_v3, %v2573_v46 }
 0x70a   :  { %v4335_v34 = vpop.f32.mrf.mxu1 }
 0x710   :  { %v2647_v5 = vpop.f32.mrf.mxu1 }
 0x711   :  { %v2651_v32 = vadd.f32 %v2647_v5, %v2574_v48 }
 0x712   :  { %v4346_v2 = vpop.f32.mrf.mxu1 }
 0x713   :  { %4367 = vmatmul.mubr.msk.f32.vlgmr.msra.gmra.mxu1 %vm241_vm0, %v2651_v32 }
 0x714   :  { %4388 = vmatprep.mubr.msk.f32.mxu1 %vm4914_vm1, %v5992_v44  ;;  %4381 = vmatpush3.msra.mxu1 %v2837_v41  ;;  %v3819_v41 = vld [vmem:[#allocation12] ss:$0 sm:$0xff] }
 0x715   :  { %4382 = vmatprep.subr.mxu1 %v5992_v44  ;;  %vm3204_vm9 = vcmp.eq.s32.totalorder %v5739_v4, %v3819_v41 }
 0x716   :  { %4383 = vmatpush3.msra.mxu1 %v2836_v22  ;;  %v3820_v22 = vsel %vm3204_vm9, 1.0, %v5992_v44 }
 0x717   :  { %4384 = vmatprep.subr.mxu1 %v5992_v44 }
 0x718   :  { %4385 = vmatpush3.msra.mxu1 %v2835_v26  ;;  %v3215_v26 = vsel %vm3214_vm10, %v3820_v22, 0.0 }
 0x719   :  { %4386 = vmatprep.subr.mxu1 %v5992_v44  ;;  %3216 = vadd.xlane.f32.xlu0 %v3215_v26 }
 0x71a   :  { %4387 = vmatpush3.msra.mxu1 %v2834_v40  ;;  %v3817_v40 = vld [vmem:[%s6020_s20 + $0x1] ss:$0 sm:$0xff] }
 0x71b   :  { %4402 = vmatprep.subr.mxu1 %v5992_v44 }
 0x77c   :  { %v2732_v53 = vpop.f32.mrf.mxu0 }
 0x77d   :  { %v2733_v13 = vadd.f32 %v3803_v29, %v2732_v53 }
 0x77e   :  { %v4357_v39 = vpop.f32.mrf.mxu0 }
 0x77f   :  { %v2736_v50 = vsub.f32 0.0, %v2733_v13 }
 0x781   :  { %v2737_v62 = vmul.f32 1.442695, %v2736_v50 }
 0x783   :  { %4691 = vpow2.f32 %v2737_v62 }
 0x790   :  { %v4692_v7 = vpop.eup %4691 }
 0x791   :  { %v2739_v28 = vadd.f32 1.0, %v4692_v7 }
 0x793   :  { %4693 = vrcp.f32 %v2739_v28 }
 0x7a0   :  { %v4694_v15 = vpop.eup %4693 }
 0x7a1   :  { %v2742_v31 = vmul.f32 %v4694_v15, %v2733_v13 }
 0x7a3   :  { %4389 = vmatmul.mubr.msk.f32.vlgmr.msra.gmra.mxu1 %vm241_vm0, %v2742_v31 }
 0x7a4   :  { %4410 = vmatprep.mubr.msk.f32.mxu1 %vm4914_vm1, %v5992_v44  ;;  %4403 = vmatpush3.msra.mxu1 %v3815_v27  ;;  %v3553_v27 = vld [vmem:[%s5091_s7 + $0x8] sm:$0xff] }
 0x7a5   :  { %4404 = vmatprep.subr.mxu1 %v5992_v44 }
 0x7a6   :  { %4405 = vmatpush3.msra.mxu1 %v3814_v42  ;;  %v3552_v42 = vld [vmem:[%s5091_s7] sm:$0xff] }
 0x7a7   :  { %4406 = vmatprep.subr.mxu1 %v5992_v44 }
 0x7a8   :  { %4407 = vmatpush3.msra.mxu1 %v3813_v63 }
 0x7a9   :  { %4408 = vmatprep.subr.mxu1 %v5992_v44 }
 0x7aa   :  { %4409 = vmatpush3.msra.mxu1 %v3812_v12 }
 0x7ab   :  { %4413 = vmatprep.subr.mxu1 %v5992_v44 }
 0x7d3   :  { %v2823_v60 = vpop.f32.mrf.mxu1 }
 0x7d4   :  { %v2824_v9 = vadd.f32 %v3805_v61, %v2823_v60 }
 0x7d5   :  { %v4368_v59 = vpop.f32.mrf.mxu1 }
 0x7d6   :  { %v2827_v17 = vsub.f32 0.0, %v2824_v9 }
 0x7d8   :  { %v2828_v57 = vmul.f32 1.442695, %v2827_v17  ;;  %v3210_v17 = vpop.permute.xlu1 %3209 }
 0x7da   :  { %4695 = vpow2.f32 %v2828_v57 }
 0x7e7   :  { %v4696_v11 = vpop.eup %4695 }
 0x7e8   :  { %v2830_v6 = vadd.f32 1.0, %v4696_v11  ;;  %v6022_v11 = vld [vmem:[#allocation42_spill] sm:$0xff] }
 0x7e9   :  { %vm3211_vm11 = vcmp.eq.s32.totalorder %v6022_v11, %v3210_v17 }
 0x7ea   :  { %4697 = vrcp.f32 %v2830_v6 }
 0x7f7   :  { %v4698_v55 = vpop.eup %4697 }
 0x7f8   :  { %v2833_v52 = vmul.f32 %v4698_v55, %v2824_v9  ;;  %v3217_v9 = vpop.xlane.xlu0 %3216 }
 0x7f9   :  { %v3218_v59 = vmax.f32 %v3217_v9, 1.0 }
 0x7fa   :  { %4378 = vmatmul.mubr.msk.f32.vlgmr.msra.gmra.mxu0 %vm241_vm0, %v2833_v52 }
 0x7fb   :  { %4399 = vmatprep.mubr.msk.f32.mxu0 %vm4914_vm1, %v5992_v44  ;;  %4392 = vmatpush3.msra.mxu0 %v3000_v45  ;;  %v3821_v45 = vsel %vm3211_vm11, 1.0, %v5992_v44 }
 0x7fc   :  { %4393 = vmatprep.subr.mxu0 %v5992_v44 }
 0x7fd   :  { %4394 = vmatpush3.msra.mxu0 %v2999_v37  ;;  %v3825_v37 = vld [vmem:[%s6021_s22] ss:$0 sm:$0xff] }
 0x7fe   :  { %4395 = vmatprep.subr.mxu0 %v5992_v44 }
 0x7ff   :  { %4396 = vmatpush3.msra.mxu0 %v2998_v1 }
 0x800   :  { %4397 = vmatprep.subr.mxu0 %v5992_v44 }
 0x801   :  { %4398 = vmatpush3.msra.mxu0 %v2997_v38 }
 0x802   :  { %4423 = vmatprep.subr.mxu0 %v5992_v44 }
 0x863   :  { %v2984_v43 = vpop.f32.mrf.mxu1 }
 0x865   :  { %v4390_v47 = vpop.f32.mrf.mxu1 }
 0x8ba   :  { %v2911_v25 = vpop.f32.mrf.mxu0 }
 0x8bb   :  { %v2985_v36 = vadd.f32 %v2984_v43, %v2911_v25 }
 0x8bc   :  { %v4379_v49 = vpop.f32.mrf.mxu0 }
 0x8bd   :  { %v2995_v8 = vadd.f32 %v3809_v10, %v2985_v36 }
 0x8bf   :  { %v2996_v51 = vadd.f32 %v2995_v8, %v5796_v21  ;;  %v3810_v21 = vld [vmem:[%s6020_s20] ss:$0 sm:$0xff]  ;;  %v3555_v8 = vld [vmem:[%s5091_s7 + $0x18] sm:$0xff] }
 0x8c1   :  { %4400 = vmatmul.mubr.msk.f32.vlgmr.msra.gmra.mxu0 %vm241_vm0, %v2996_v51 }
 0x8c2   :  { %4425 = vmatprep.mubr.msk.f32.mxu0 %vm4914_vm1, %v5992_v44 }
 0x981   :  { %v3077_v54 = vpop.f32.mrf.mxu0 }
 0x982   :  { %v3078_v19 = vadd.f32 %v3810_v21, %v3077_v54 }
 0x983   :  { %v4401_v0 = vpop.f32.mrf.mxu0 }
 0x984   :  { %v3081_v30 = vsub.f32 0.0, %v3078_v19 }
 0x986   :  { %v3082_v58 = vmul.f32 1.442695, %v3081_v30 }
 0x988   :  { %4699 = vpow2.f32 %v3082_v58 }
 0x995   :  { %v4700_v23 = vpop.eup %4699 }
 0x996   :  { %v3084_v33 = vadd.f32 1.0, %v4700_v23  ;;  %v3827_v23 = vld [vmem:[%s6023_s13] ss:$0 sm:$0xff] }
 0x998   :  { %4701 = vrcp.f32 %v3084_v33 }
 0x9a5   :  { %v4702_v35 = vpop.eup %4701 }
 0x9a6   :  { %v3087_v14 = vmul.f32 %v4702_v35, %v3078_v19 }
 0x9a8   :  { %v3088_v16 = vadd.f32 %v3087_v14, %v2996_v51  ;;  %v3554_v51 = vld [vmem:[%s5091_s7 + $0x10] sm:$0xff]  ;;  %v3830_v14 = vld [vmem:[%s6024_s26] ss:$0 sm:$0xff]  ;;  %s4919_s7 = smov [#allocation18]  }
 0x9a9   :  { %s3643_s3 = sshll.u32 %s4919_s7, 4  ;;  %s3644_s3 = int_to_ptr.vmem [resolvable:$true] %s3643_s3 }
 0x9aa   :  { %v3089_v46 = vsub.f32 0.0, %v3088_v16  ;;  %s4841_s27 = scalar_lea.vmem %s3644_s3, 128  ;;  %p4846_p3 = scmp.lt.s32.totalorder %s3644_s3, %s3644_s3 }
 0x9ab   :  { %p4842_p2 = scmp.ne.s32.totalorder %s3644_s3, %s4841_s27  ;;  %p4847_p4 = scmp.lt.s32.totalorder %s4841_s27, %s4841_s27 }
 0x9ac   :  { %v3090_v34 = vmul.f32 1.442695, %v3089_v46  ;;  %v3831_v46 = vld [vmem:[%s5096_s15] ss:$0 sm:$0xff] }
 0x9ad   :  { %p4848_p5 = por %p4847_p4, %p4846_p3 }
 0x9ae   :  { %4703 = vpow2.f32 %v3090_v34 }
 0x9af   :  { %p4849_p6 = pnand %p4848_p5, %p4842_p2 }
 0x9bb   :  { %v4704_v3 = vpop.eup %4703 }
 0x9bc   :  { %v3092_v48 = vadd.f32 1.0, %v4704_v3 }
 0x9be   :  { %4705 = vrcp.f32 %v3092_v48 }
 0x9cb   :  { %v4706_v5 = vpop.eup %4705 }
 0x9cc   :  { %v3095_v32 = vmul.f32 %v4706_v5, %v3088_v16 }
 0x9ce   :  { %v3096_v2 = vadd.f32 %v3095_v32, %v3088_v16 }
 0x9d0   :  { %4411 = vmatmul.mubr.msk.f32.vlgmr.msra.gmra.mxu1 %vm241_vm0, %v3096_v2 }
 0x9d1   :  { %4415 = vmatprep.mubr.msk.f32.mxu1 %vm4914_vm1, %v5992_v44 }
 0xa90   :  { %v3179_v24 = vpop.f32.mrf.mxu1 }
 0xa91   :  { %v3180_v56 = vadd.f32 %v3817_v40, %v3179_v24 }
 0xa92   :  { %v4412_v18 = vpop.f32.mrf.mxu1 }
 0xa93   :  { %v3183_v20 = vsub.f32 0.0, %v3180_v56 }
 0xa95   :  { %v3184_v29 = vmul.f32 1.442695, %v3183_v20 }
 0xa97   :  { %4707 = vpow2.f32 %v3184_v29 }
 0xaa4   :  { %v4708_v53 = vpop.eup %4707 }
 0xaa5   :  { %v3186_v13 = vadd.f32 1.0, %v4708_v53 }
 0xaa7   :  { %4709 = vrcp.f32 %v3186_v13 }
 0xab4   :  { %v4710_v39 = vpop.eup %4709 }
 0xab5   :  { %v3189_v50 = vmul.f32 %v4710_v39, %v3180_v56 }
 0xab7   :  { %v3190_v62 = vadd.f32 %v3189_v50, %v3096_v2 }
 0xab9   :  { %v3191_v7 = vsub.f32 0.0, %v3190_v62 }
 0xabb   :  { %v3192_v4 = vmul.f32 1.442695, %v3191_v7 }
 0xabd   :  { %4711 = vpow2.f32 %v3192_v4 }
 0xaca   :  { %v4712_v28 = vpop.eup %4711 }
 0xacb   :  { %v3194_v15 = vadd.f32 1.0, %v4712_v28 }
 0xacd   :  { %4713 = vrcp.f32 %v3194_v15 }
 0xace   :  { %4715 = vrcp.f32 %v3218_v59 }
 0xada   :  { %v4714_v31 = vpop.eup %4713 }
 0xadb   :  { %v3197_v61 = vmul.f32 %v4714_v31, %v3190_v62  ;;  %v4716_v57 = vpop.eup %4715 }
 0xadd   :  { %v3198_v60 = vadd.f32 %v3197_v61, %v3190_v62 }
 0xadf   :  { %4414 = vmatpush3.msra.mxu1 %v3198_v60 }
 0xae0   :  { %4416 = vmatmul.mubr.msk.f32.vlgmr.msra.gmra.mxu1 %vm990_vm5, %v3820_v22  ;;  %4418 = vmatprep.subr.mxu1 %v5992_v44 }
 0xae1   :  { %4420 = vmatprep.mubr.msk.f32.mxu1 %vm4914_vm1, %v5992_v44 }
 0xba0   :  { %v3290_v6 = vpop.f32.mrf.mxu1 }
 0xba1   :  { %v3294_v55 = vmul.f32 %v4716_v57, %v3290_v6 }
 0xba2   :  { %v4417_v52 = vpop.f32.mrf.mxu1 }
 0xba3   :  { %4419 = vmatpush3.msk.msra.mxu1 %vm3299_vm12, %v3294_v55 }
 0xba4   :  { %4421 = vmatmul.mubr.msk.f32.vlgmr.msra.gmra.mxu1 %vm3295_vm13, %v3821_v45  ;;  %4428 = vmatprep.subr.mxu1 %v5992_v44 }
 0xba5   :  { %4430 = vmatprep.mubr.msk.f32.mxu1 %vm4914_vm1, %v5992_v44 }
 0xc64   :  { %v3369_v1 = vpop.f32.mrf.mxu1 }
 0xc65   :  { %v3380_v38 = vmul.f32 %v3825_v37, %v3369_v1 }
 0xc66   :  { %v4422_v43 = vpop.f32.mrf.mxu1 }
 0xc67   :  { %v3381_v47 = vsub.f32 %v3198_v60, %v3380_v38 }
 0xc69   :  { %v3382_v25 = vmul.f32 %v3381_v47, %v3381_v47  ;;  %v3461_v33 = vmul.f32 %v3827_v23, %v3381_v47 }
 0xc6b   :  { %4424 = vmatpush3.msra.mxu0 %v3382_v25 }
 0xc6c   :  { %4426 = vmatmul.mubr.msk.f32.vlgmr.msra.gmra.mxu0 %vm990_vm5, %v3820_v22  ;;  %4433 = vmatprep.subr.mxu0 %v5992_v44 }
 0xc6d   :  { %4441 = vmatprep.mubr.msk.f32.mxu0 %vm4914_vm1, %v5992_v44  ;;  %4434 = vmatpush3.msra.mxu0 %v3555_v8 }
 0xc6e   :  { %4435 = vmatprep.subr.mxu0 %v5992_v44 }
 0xc6f   :  { %4436 = vmatpush3.msra.mxu0 %v3554_v51 }
 0xc70   :  { %4437 = vmatprep.subr.mxu0 %v5992_v44 }
 0xc71   :  { %4438 = vmatpush3.msra.mxu0 %v3553_v27 }
 0xc72   :  { %4439 = vmatprep.subr.mxu0 %v5992_v44 }
 0xc73   :  { %4440 = vmatpush3.msra.mxu0 %v3552_v42 }
 0xd2c   :  { %v3449_v10 = vpop.f32.mrf.mxu0 }
 0xd2d   :  { %v3453_v36 = vmul.f32 %v4716_v57, %v3449_v10 }
 0xd2e   :  { %v4427_v49 = vpop.f32.mrf.mxu0 }
 0xd2f   :  { %4429 = vmatpush3.msk.msra.mxu1 %vm3299_vm12, %v3453_v36 }
 0xd30   :  { %4431 = vmatmul.mubr.msk.f32.vlgmr.msra.gmra.mxu1 %vm3295_vm13, %v3821_v45 }
 0xdf0   :  { %v3531_v63 = vpop.f32.mrf.mxu1 }
 0xdf1   :  { %v3532_v12 = vadd.f32 1e-05, %v3531_v63 }
 0xdf2   :  { %v4432_v21 = vpop.f32.mrf.mxu1 }
 0xdf3   :  { %4717 = vrsqrt.f32 %v3532_v12  ;;  %vm3537_vm1 = vcmp.eq.f32.partialorder %v3532_v12, inf  ;;  %v3540_v0 = vand.u32 2147483648, %v3532_v12  ;;  %vm3539_vm5 = vcmp.eq.f32.partialorder %v3532_v12, 0.0 }
 0xe00   :  { %v4718_v54 = vpop.eup %4717 }
 0xe01   :  { %v3536_v19 = vmul.f32 %v4718_v54, %v3532_v12 }
 0xe03   :  { %v3538_v30 = vsel %vm3537_vm1, %v3532_v12, %v3536_v19 }
 0xe04   :  { %v3541_v58 = vsel %vm3539_vm5, %v3540_v0, %v3538_v30 }
 0xe05   :  { %4719 = vrcp.f32 %v3541_v58 }
 0xe12   :  { %v4720_v35 = vpop.eup %4719 }
 0xe13   :  { %v3543_v44 = vmul.f32 %v4720_v35, %v3461_v33 }
 0xe15   :  { %v3551_v16 = vadd.f32 %v3830_v14, %v3543_v44 }
 0xe17   :  { %4442 = vmatmul.mubr.msk.f32.vlgmr.msra.gmra.mxu0 %vm241_vm0, %v3551_v16 }
 0xed7   :  { %v3632_v34 = vpop.f32.mrf.mxu0 }
 0xed8   :  { %v3633_v3 = vadd.f32 %v3831_v46, %v3632_v34 }
 0xed9   :  { %v4443_v48 = vpop.f32.mrf.mxu0 }
 0xeda   :  { %3636 = vst [vmem:[#allocation18] sm:$0xff] %v3633_v3 }
 0xedb   :  { %4852 = shalt.err (!%p4849_p6)
}
 0xedc   :  { %3646 = dma.vmem_to_hbm [thread:$0]  %s3644_s3, 128, %s5101_s23, [#allocation9]  }
 0xedd   :  { %4869 = dma.done.wait [#allocation9], 128  }
 0xede   :  { %4870 = vsyncadd [#allocation9], 4294967168 }
 0xedf   :  { %3650 = vsyncpa [#allocation8], 1 }
 0xee0   :  { %3651 = vsyncpa [#allocation11], 1 }
 0xee1   :  { %3652 = vsyncpa [#allocation14], 1 }
 0xee2   :  { %3653 = vsyncpa [#allocation17], 1 }
 0xee3   :  { %3654 = vsyncpa [#allocation9], 1 }

</bundles_post_ra>
